<compile_context>
chip_gen: v7x
topology: tpu7x:2x2x1
jax: 0.10.0
libtpu: 0.0.40
codegen_flags: <defaults>
</compile_context>

<pallas_src>
import functools

import jax
import jax.numpy as jnp
from jax import lax
from jax.experimental import pallas as pl
from jax.experimental.pallas import tpu as pltpu


# ----------------------------------------------------------------------------
# Fused Pallas kernel: full Decoder_T forward
# ----------------------------------------------------------------------------
def _decoder_kernel(
    z_ref, mem_ref,
    in_w_ref, in_b_ref,
    sa_qkv_w_ref, sa_qkv_b_ref, sa_out_w_ref, sa_out_b_ref,
    ca_qkv_w_ref, ca_qkv_b_ref, ca_out_w_ref, ca_out_b_ref,
    ff_w1_ref, ff_b1_ref, ff_w2_ref, ff_b2_ref,
    ln1_w_ref, ln1_b_ref, ln2_w_ref, ln2_b_ref, ln3_w_ref, ln3_b_ref,
    out_w_ref, out_b_ref,
    o_ref,
    *, B, T, S, H, D, num_layers,
):
    E = H * D
    f32 = jnp.float32
    scale = 1.0 / float(D) ** 0.5

    def mm(a, b):
        return jnp.dot(a, b, preferred_element_type=f32)

    def mm_nt(a, b):
        # a @ b.T without materializing a transpose.
        return lax.dot_general(
            a, b, dimension_numbers=(((1,), (1,)), ((), ())),
            preferred_element_type=f32,
        )

    def add_ln(x, res, gamma, beta):
        # LayerNorm(x + res) over last axis, eps = 1e-5 (PyTorch default).
        y = x + res
        mu = jnp.mean(y, axis=-1, keepdims=True)
        var = jnp.mean((y - mu) * (y - mu), axis=-1, keepdims=True)
        return (y - mu) * lax.rsqrt(var + 1e-5) * gamma + beta

    def attention(q, k, v, Tq, Tk):
        # q: (B*Tq, E), k/v: (B*Tk, E)  (batch-major, contiguous per batch)
        batch_rows = []
        for b in range(B):                       # static unroll (B tiny)
            qb = q[b * Tq:(b + 1) * Tq, :]
            kb = k[b * Tk:(b + 1) * Tk, :]
            vb = v[b * Tk:(b + 1) * Tk, :]
            head_cols = []
            for h in range(H):                   # static unroll (H tiny)
                qh = qb[:, h * D:(h + 1) * D]
                kh = kb[:, h * D:(h + 1) * D]
                vh = vb[:, h * D:(h + 1) * D]
                s = mm_nt(qh, kh) * scale        # (Tq, Tk)
                m = jnp.max(s, axis=-1, keepdims=True)
                p = jnp.exp(s - m)
                inv = pl.reciprocal(jnp.sum(p, axis=-1, keepdims=True),
                                    approx=True)
                head_cols.append(mm(p * inv, vh))  # (Tq, D)
            batch_rows.append(jnp.concatenate(head_cols, axis=1))  # (Tq, E)
        return jnp.concatenate(batch_rows, axis=0)                  # (B*Tq, E)

    def mha_self(x, w_qkv, b_qkv, w_out, b_out):
        qkv = mm(x, w_qkv) + b_qkv               # single packed QKV matmul
        q = qkv[:, :E]
        k = qkv[:, E:2 * E]
        v = qkv[:, 2 * E:]
        return mm(attention(q, k, v, T, T), w_out) + b_out

    def mha_cross(xq, xkv, w_qkv, b_qkv, w_out, b_out):
        q = mm(xq, w_qkv[:, :E]) + b_qkv[:, :E]
        kv = mm(xkv, w_qkv[:, E:]) + b_qkv[:, E:]   # packed K/V matmul
        k = kv[:, :E]
        v = kv[:, E:]
        return mm(attention(q, k, v, T, S), w_out) + b_out

    # latent -> decoder input
    x = mm(z_ref[...], in_w_ref[...]) + in_b_ref[...]       # (B*T, E)
    mem = mem_ref[...]                                        # (B*S, E)

    for l in range(num_layers):                               # static unroll
        sa = mha_self(x, sa_qkv_w_ref[l], sa_qkv_b_ref[l],
                      sa_out_w_ref[l], sa_out_b_ref[l])
        x = add_ln(x, sa, ln1_w_ref[l], ln1_b_ref[l])
        ca = mha_cross(x, mem, ca_qkv_w_ref[l], ca_qkv_b_ref[l],
                       ca_out_w_ref[l], ca_out_b_ref[l])
        x = add_ln(x, ca, ln2_w_ref[l], ln2_b_ref[l])
        hdn = jnp.maximum(mm(x, ff_w1_ref[l]) + ff_b1_ref[l], 0.0)
        ff = mm(hdn, ff_w2_ref[l]) + ff_b2_ref[l]
        x = add_ln(x, ff, ln3_w_ref[l], ln3_b_ref[l])

    o_ref[...] = mm(x, out_w_ref[...]) + out_b_ref[...]


# ----------------------------------------------------------------------------
# Wrapper: one pallas_call for the whole forward
# ----------------------------------------------------------------------------
def decoder_t_forward(z, enc_output, packed, sigma, *, nhead):
    """Forward of Decoder_T.

    z:          (T, B, latent_dim)
    enc_output: (S, B, embedding_dim)
    returns:    ((T, B, input_dim), (input_dim,))
    """
    T, B, L = z.shape
    S = enc_output.shape[0]
    E = packed["in_w"].shape[1]
    D = E // nhead
    num_layers = packed["sa_qkv_w"].shape[0]
    out_dim = packed["out_w"].shape[1]

    # One boundary transpose each (batch-major) so the kernel can use purely
    # static contiguous slices for batches/heads; transposed back at the end.
    z2d = jnp.transpose(z, (1, 0, 2)).reshape(B * T, L)
    mem2d = jnp.transpose(enc_output, (1, 0, 2)).reshape(B * S, E)

    args = (
        z2d, mem2d,
        packed["in_w"], packed["in_b"],
        packed["sa_qkv_w"], packed["sa_qkv_b"],
        packed["sa_out_w"], packed["sa_out_b"],
        packed["ca_qkv_w"], packed["ca_qkv_b"],
        packed["ca_out_w"], packed["ca_out_b"],
        packed["ff_w1"], packed["ff_b1"], packed["ff_w2"], packed["ff_b2"],
        packed["ln1_w"], packed["ln1_b"],
        packed["ln2_w"], packed["ln2_b"],
        packed["ln3_w"], packed["ln3_b"],
        packed["out_w"], packed["out_b"],
    )

    kernel = functools.partial(
        _decoder_kernel, B=B, T=T, S=S, H=nhead, D=D, num_layers=num_layers
    )

    out2d = pl.pallas_call(
        kernel,
        grid=(1,),
        in_specs=[
            pl.BlockSpec(a.shape, (lambda i, n=a.ndim: (0,) * n)) for a in args
        ],
        out_specs=pl.BlockSpec((B * T, out_dim), lambda i: (0, 0)),
        out_shape=jax.ShapeDtypeStruct((B * T, out_dim), jnp.float32),
        compiler_params=pltpu.CompilerParams(
            dimension_semantics=("arbitrary",)
        ),
    )(*args)

    out = out2d.reshape(B, T, out_dim).transpose(1, 0, 2)  # -> (T, B, out_dim)
    return out, sigma


# ----------------------------------------------------------------------------
# Parameters: PyTorch-layout init, then one-time pack (transpose + stack)
# ----------------------------------------------------------------------------
def _init_linear_params(key, out_dim, in_dim, scale=0.05):
    kw, kb = jax.random.split(key)
    w = jax.random.normal(kw, (out_dim, in_dim), jnp.float32) * scale
    b = jax.random.normal(kb, (out_dim,), jnp.float32) * scale
    return w, b


def init_decoder_t_params(key, input_dim, latent_dim, embedding_dim,
                          dim_feedforward, num_layers=2):
    keys = jax.random.split(key, 3)
    in_w, in_b = _init_linear_params(keys[0], embedding_dim, latent_dim)
    out_w, out_b = _init_linear_params(keys[1], input_dim, embedding_dim)

    layers = []
    for lk in jax.random.split(keys[2], num_layers):
        ks = jax.random.split(lk, 6)
        sa_in_w, sa_in_b = _init_linear_params(ks[0], 3 * embedding_dim, embedding_dim)
        sa_out_w, sa_out_b = _init_linear_params(ks[1], embedding_dim, embedding_dim)
        ca_in_w, ca_in_b = _init_linear_params(ks[2], 3 * embedding_dim, embedding_dim)
        ca_out_w, ca_out_b = _init_linear_params(ks[3], embedding_dim, embedding_dim)
        ff_w1, ff_b1 = _init_linear_params(ks[4], dim_feedforward, embedding_dim)
        ff_w2, ff_b2 = _init_linear_params(ks[5], embedding_dim, dim_feedforward)
        layers.append(dict(
            sa_in_w=sa_in_w, sa_in_b=sa_in_b,
            sa_out_w=sa_out_w, sa_out_b=sa_out_b,
            ca_in_w=ca_in_w, ca_in_b=ca_in_b,
            ca_out_w=ca_out_w, ca_out_b=ca_out_b,
            ff_w1=ff_w1, ff_b1=ff_b1, ff_w2=ff_w2, ff_b2=ff_b2,
            ln1_w=jnp.ones((embedding_dim,), jnp.float32),
            ln1_b=jnp.zeros((embedding_dim,), jnp.float32),
            ln2_w=jnp.ones((embedding_dim,), jnp.float32),
            ln2_b=jnp.zeros((embedding_dim,), jnp.float32),
            ln3_w=jnp.ones((embedding_dim,), jnp.float32),
            ln3_b=jnp.zeros((embedding_dim,), jnp.float32),
        ))

    return dict(in_w=in_w, in_b=in_b, out_w=out_w, out_b=out_b,
                sigma=jnp.ones((input_dim,), jnp.float32) * 0.1,
                layers=layers)


def pack_params(params):
    """One-time repack: pre-transpose weights to (in, out) and stack layers."""
    layers = params["layers"]

    def stk(fn):
        return jnp.stack([fn(lp) for lp in layers])

    return dict(
        in_w=params["in_w"].T,                         # (latent, E)
        in_b=params["in_b"].reshape(1, -1),
        out_w=params["out_w"].T,                       # (E, input_dim)
        out_b=params["out_b"].reshape(1, -1),
        sa_qkv_w=stk(lambda p: p["sa_in_w"].T),        # (nl, E, 3E)
        sa_qkv_b=stk(lambda p: p["sa_in_b"].reshape(1, -1)),
        sa_out_w=stk(lambda p: p["sa_out_w"].T),       # (nl, E, E)
        sa_out_b=stk(lambda p: p["sa_out_b"].reshape(1, -1)),
        ca_qkv_w=stk(lambda p: p["ca_in_w"].T),
        ca_qkv_b=stk(lambda p: p["ca_in_b"].reshape(1, -1)),
        ca_out_w=stk(lambda p: p["ca_out_w"].T),
        ca_out_b=stk(lambda p: p["ca_out_b"].reshape(1, -1)),
        ff_w1=stk(lambda p: p["ff_w1"].T),             # (nl, E, F)
        ff_b1=stk(lambda p: p["ff_b1"].reshape(1, -1)),
        ff_w2=stk(lambda p: p["ff_w2"].T),             # (nl, F, E)
        ff_b2=stk(lambda p: p["ff_b2"].reshape(1, -1)),
        ln1_w=stk(lambda p: p["ln1_w"].reshape(1, -1)),
        ln1_b=stk(lambda p: p["ln1_b"].reshape(1, -1)),
        ln2_w=stk(lambda p: p["ln2_w"].reshape(1, -1)),
        ln2_b=stk(lambda p: p["ln2_b"].reshape(1, -1)),
        ln3_w=stk(lambda p: p["ln3_w"].reshape(1, -1)),
        ln3_b=stk(lambda p: p["ln3_b"].reshape(1, -1)),
    )


# ----------------------------------------------------------------------------
# Main
# ----------------------------------------------------------------------------
if __name__ == "__main__":
    input_dim = 24
    latent_dim = 16
    embedding_dim = 32
    nhead = 4
    dim_feedforward = 64
    num_layers = 2
    T, S, B = 8, 8, 2  # tgt seq len, memory seq len, batch

    root = jax.random.PRNGKey(0)
    k_params, k_z, k_mem = jax.random.split(root, 3)

    params = init_decoder_t_params(
        k_params, input_dim, latent_dim, embedding_dim, dim_feedforward,
        num_layers=num_layers,
    )
    packed = pack_params(params)  # one-time transpose/stack (not per call)

    z = jax.random.normal(k_z, (T, B, latent_dim), jnp.float32)
    enc_output = jax.random.normal(k_mem, (S, B, embedding_dim), jnp.float32)

    fwd = jax.jit(functools.partial(decoder_t_forward, nhead=nhead))
    out, sigma = fwd(z, enc_output, packed, params["sigma"])
    jax.block_until_ready(out)
    jax.block_until_ready(sigma)

    assert out.shape == (T, B, input_dim)
    assert sigma.shape == (input_dim,)
    print("KERNEL_OK")
</pallas_src>

<mosaic_0001>
module attributes {stable_mosaic.version = 11 : i64} {
  func.func @_decoder_kernel(%arg0: i32, %arg1: memref<16x16xf32, #tpu.memory_space<vmem>>, %arg2: memref<16x32xf32, #tpu.memory_space<vmem>>, %arg3: memref<16x32xf32, #tpu.memory_space<vmem>>, %arg4: memref<1x32xf32, #tpu.memory_space<vmem>>, %arg5: memref<2x32x96xf32, #tpu.memory_space<vmem>>, %arg6: memref<2x1x96xf32, #tpu.memory_space<vmem>>, %arg7: memref<2x32x32xf32, #tpu.memory_space<vmem>>, %arg8: memref<2x1x32xf32, #tpu.memory_space<vmem>>, %arg9: memref<2x32x96xf32, #tpu.memory_space<vmem>>, %arg10: memref<2x1x96xf32, #tpu.memory_space<vmem>>, %arg11: memref<2x32x32xf32, #tpu.memory_space<vmem>>, %arg12: memref<2x1x32xf32, #tpu.memory_space<vmem>>, %arg13: memref<2x32x64xf32, #tpu.memory_space<vmem>>, %arg14: memref<2x1x64xf32, #tpu.memory_space<vmem>>, %arg15: memref<2x64x32xf32, #tpu.memory_space<vmem>>, %arg16: memref<2x1x32xf32, #tpu.memory_space<vmem>>, %arg17: memref<2x1x32xf32, #tpu.memory_space<vmem>>, %arg18: memref<2x1x32xf32, #tpu.memory_space<vmem>>, %arg19: memref<2x1x32xf32, #tpu.memory_space<vmem>>, %arg20: memref<2x1x32xf32, #tpu.memory_space<vmem>>, %arg21: memref<2x1x32xf32, #tpu.memory_space<vmem>>, %arg22: memref<2x1x32xf32, #tpu.memory_space<vmem>>, %arg23: memref<32x24xf32, #tpu.memory_space<vmem>>, %arg24: memref<1x24xf32, #tpu.memory_space<vmem>>, %arg25: memref<16x24xf32, #tpu.memory_space<vmem>>) attributes {dimension_semantics = [#tpu.dimension_semantics<arbitrary>], iteration_bounds = array<i64: 1>, scalar_prefetch = 0 : i64, scratch_operands = 0 : i64, tpu.core_type = #tpu.core_type<tc>, window_params = [{pipeline_mode = #tpu.pipeline_mode<synchronous>, transform_indices = @transform_0, window_bounds = array<i64: 16, 16>}, {pipeline_mode = #tpu.pipeline_mode<synchronous>, transform_indices = @transform_1, window_bounds = array<i64: 16, 32>}, {pipeline_mode = #tpu.pipeline_mode<synchronous>, transform_indices = @transform_2, window_bounds = array<i64: 16, 32>}, {pipeline_mode = #tpu.pipeline_mode<synchronous>, transform_indices = @transform_3, window_bounds = array<i64: 1, 32>}, {pipeline_mode = #tpu.pipeline_mode<synchronous>, transform_indices = @transform_4, window_bounds = array<i64: 2, 32, 96>}, {pipeline_mode = #tpu.pipeline_mode<synchronous>, transform_indices = @transform_5, window_bounds = array<i64: 2, 1, 96>}, {pipeline_mode = #tpu.pipeline_mode<synchronous>, transform_indices = @transform_6, window_bounds = array<i64: 2, 32, 32>}, {pipeline_mode = #tpu.pipeline_mode<synchronous>, transform_indices = @transform_7, window_bounds = array<i64: 2, 1, 32>}, {pipeline_mode = #tpu.pipeline_mode<synchronous>, transform_indices = @transform_8, window_bounds = array<i64: 2, 32, 96>}, {pipeline_mode = #tpu.pipeline_mode<synchronous>, transform_indices = @transform_9, window_bounds = array<i64: 2, 1, 96>}, {pipeline_mode = #tpu.pipeline_mode<synchronous>, transform_indices = @transform_10, window_bounds = array<i64: 2, 32, 32>}, {pipeline_mode = #tpu.pipeline_mode<synchronous>, transform_indices = @transform_11, window_bounds = array<i64: 2, 1, 32>}, {pipeline_mode = #tpu.pipeline_mode<synchronous>, transform_indices = @transform_12, window_bounds = array<i64: 2, 32, 64>}, {pipeline_mode = #tpu.pipeline_mode<synchronous>, transform_indices = @transform_13, window_bounds = array<i64: 2, 1, 64>}, {pipeline_mode = #tpu.pipeline_mode<synchronous>, transform_indices = @transform_14, window_bounds = array<i64: 2, 64, 32>}, {pipeline_mode = #tpu.pipeline_mode<synchronous>, transform_indices = @transform_15, window_bounds = array<i64: 2, 1, 32>}, {pipeline_mode = #tpu.pipeline_mode<synchronous>, transform_indices = @transform_16, window_bounds = array<i64: 2, 1, 32>}, {pipeline_mode = #tpu.pipeline_mode<synchronous>, transform_indices = @transform_17, window_bounds = array<i64: 2, 1, 32>}, {pipeline_mode = #tpu.pipeline_mode<synchronous>, transform_indices = @transform_18, window_bounds = array<i64: 2, 1, 32>}, {pipeline_mode = #tpu.pipeline_mode<synchronous>, transform_indices = @transform_19, window_bounds = array<i64: 2, 1, 32>}, {pipeline_mode = #tpu.pipeline_mode<synchronous>, transform_indices = @transform_20, window_bounds = array<i64: 2, 1, 32>}, {pipeline_mode = #tpu.pipeline_mode<synchronous>, transform_indices = @transform_21, window_bounds = array<i64: 2, 1, 32>}, {pipeline_mode = #tpu.pipeline_mode<synchronous>, transform_indices = @transform_22, window_bounds = array<i64: 32, 24>}, {pipeline_mode = #tpu.pipeline_mode<synchronous>, transform_indices = @transform_23, window_bounds = array<i64: 1, 24>}, {pipeline_mode = #tpu.pipeline_mode<synchronous>, transform_indices = @transform_24, window_bounds = array<i64: 16, 24>}]} {
    %c0 = arith.constant 0 : index
    %c0_0 = arith.constant 0 : index
    %0 = vector.load %arg1[%c0, %c0_0] : memref<16x16xf32, #tpu.memory_space<vmem>>, vector<16x16xf32>
    %c0_1 = arith.constant 0 : index
    %c0_2 = arith.constant 0 : index
    %1 = vector.load %arg3[%c0_1, %c0_2] : memref<16x32xf32, #tpu.memory_space<vmem>>, vector<16x32xf32>
    %cst = arith.constant dense<0.000000e+00> : vector<16x32xf32>
    %2 = tpu.matmul %0, %1, %cst {dimension_numbers = #tpu.dot_dimension_numbers<[1], [0], [0], [1], [0, 0, 1, 1], [], []>} : vector<16x16xf32>, vector<16x32xf32>, vector<16x32xf32> -> vector<16x32xf32>
    %c0_3 = arith.constant 0 : index
    %c0_4 = arith.constant 0 : index
    %3 = vector.load %arg4[%c0_3, %c0_4] : memref<1x32xf32, #tpu.memory_space<vmem>>, vector<1x32xf32>
    %4 = vector.broadcast %3 : vector<1x32xf32> to vector<16x32xf32>
    %5 = arith.addf %2, %4 : vector<16x32xf32>
    %c0_5 = arith.constant 0 : index
    %c0_6 = arith.constant 0 : index
    %6 = vector.load %arg2[%c0_5, %c0_6] : memref<16x32xf32, #tpu.memory_space<vmem>>, vector<16x32xf32>
    %c0_7 = arith.constant 0 : index
    %c0_8 = arith.constant 0 : index
    %c0_9 = arith.constant 0 : index
    %7 = vector.load %arg5[%c0_7, %c0_8, %c0_9] : memref<2x32x96xf32, #tpu.memory_space<vmem>>, vector<1x32x96xf32>
    %8 = vector.shape_cast %7 : vector<1x32x96xf32> to vector<32x96xf32>
    %c0_10 = arith.constant 0 : index
    %c0_11 = arith.constant 0 : index
    %c0_12 = arith.constant 0 : index
    %9 = vector.load %arg6[%c0_10, %c0_11, %c0_12] : memref<2x1x96xf32, #tpu.memory_space<vmem>>, vector<1x1x96xf32>
    %10 = vector.shape_cast %9 : vector<1x1x96xf32> to vector<1x96xf32>
    %c0_13 = arith.constant 0 : index
    %c0_14 = arith.constant 0 : index
    %c0_15 = arith.constant 0 : index
    %11 = vector.load %arg7[%c0_13, %c0_14, %c0_15] : memref<2x32x32xf32, #tpu.memory_space<vmem>>, vector<1x32x32xf32>
    %12 = vector.shape_cast %11 : vector<1x32x32xf32> to vector<32x32xf32>
    %c0_16 = arith.constant 0 : index
    %c0_17 = arith.constant 0 : index
    %c0_18 = arith.constant 0 : index
    %13 = vector.load %arg8[%c0_16, %c0_17, %c0_18] : memref<2x1x32xf32, #tpu.memory_space<vmem>>, vector<1x1x32xf32>
    %14 = vector.shape_cast %13 : vector<1x1x32xf32> to vector<1x32xf32>
    %cst_19 = arith.constant dense<0.000000e+00> : vector<16x96xf32>
    %15 = tpu.matmul %5, %8, %cst_19 {dimension_numbers = #tpu.dot_dimension_numbers<[1], [0], [0], [1], [0, 0, 1, 1], [], []>} : vector<16x32xf32>, vector<32x96xf32>, vector<16x96xf32> -> vector<16x96xf32>
    %16 = vector.broadcast %10 : vector<1x96xf32> to vector<16x96xf32>
    %17 = arith.addf %15, %16 : vector<16x96xf32>
    %18 = vector.extract_strided_slice %17 {offsets = [0, 0], sizes = [16, 32], strides = [1, 1]} : vector<16x96xf32> to vector<16x32xf32>
    %19 = vector.extract_strided_slice %17 {offsets = [0, 32], sizes = [16, 32], strides = [1, 1]} : vector<16x96xf32> to vector<16x32xf32>
    %20 = vector.extract_strided_slice %17 {offsets = [0, 64], sizes = [16, 32], strides = [1, 1]} : vector<16x96xf32> to vector<16x32xf32>
    %21 = vector.extract_strided_slice %18 {offsets = [0, 0], sizes = [8, 32], strides = [1, 1]} : vector<16x32xf32> to vector<8x32xf32>
    %22 = vector.extract_strided_slice %19 {offsets = [0, 0], sizes = [8, 32], strides = [1, 1]} : vector<16x32xf32> to vector<8x32xf32>
    %23 = vector.extract_strided_slice %20 {offsets = [0, 0], sizes = [8, 32], strides = [1, 1]} : vector<16x32xf32> to vector<8x32xf32>
    %24 = vector.extract_strided_slice %21 {offsets = [0, 0], sizes = [8, 8], strides = [1, 1]} : vector<8x32xf32> to vector<8x8xf32>
    %25 = vector.extract_strided_slice %22 {offsets = [0, 0], sizes = [8, 8], strides = [1, 1]} : vector<8x32xf32> to vector<8x8xf32>
    %26 = vector.extract_strided_slice %23 {offsets = [0, 0], sizes = [8, 8], strides = [1, 1]} : vector<8x32xf32> to vector<8x8xf32>
    %cst_20 = arith.constant dense<0.000000e+00> : vector<8x8xf32>
    %27 = tpu.matmul %24, %25, %cst_20 {dimension_numbers = #tpu.dot_dimension_numbers<[1], [1], [0], [0], [0, 0, 1, 0], [], []>} : vector<8x8xf32>, vector<8x8xf32>, vector<8x8xf32> -> vector<8x8xf32>
    %cst_21 = arith.constant 0.353553385 : f32
    %28 = vector.broadcast %cst_21 : f32 to vector<8x8xf32>
    %29 = arith.mulf %27, %28 : vector<8x8xf32>
    %cst_22 = arith.constant dense<0xFF800000> : vector<8xf32>
    %30 = vector.multi_reduction <maximumf>, %29, %cst_22 [1] : vector<8x8xf32> to vector<8xf32>
    %31 = vector.shape_cast %30 : vector<8xf32> to vector<8x1xf32>
    %32 = vector.broadcast %31 : vector<8x1xf32> to vector<8x8xf32>
    %33 = arith.subf %29, %32 : vector<8x8xf32>
    %34 = math.exp %33 : vector<8x8xf32>
    %cst_23 = arith.constant dense<0.000000e+00> : vector<8xf32>
    %35 = vector.multi_reduction <add>, %34, %cst_23 [1] : vector<8x8xf32> to vector<8xf32>
    %36 = vector.shape_cast %35 : vector<8xf32> to vector<8x1xf32>
    %37 = tpu.reciprocal %36 {approx = true} : vector<8x1xf32> -> vector<8x1xf32>
    %38 = vector.broadcast %37 : vector<8x1xf32> to vector<8x8xf32>
    %39 = arith.mulf %34, %38 : vector<8x8xf32>
    %cst_24 = arith.constant dense<0.000000e+00> : vector<8x8xf32>
    %40 = tpu.matmul %39, %26, %cst_24 {dimension_numbers = #tpu.dot_dimension_numbers<[1], [0], [0], [1], [0, 0, 1, 1], [], []>} : vector<8x8xf32>, vector<8x8xf32>, vector<8x8xf32> -> vector<8x8xf32>
    %41 = vector.extract_strided_slice %21 {offsets = [0, 8], sizes = [8, 8], strides = [1, 1]} : vector<8x32xf32> to vector<8x8xf32>
    %42 = vector.extract_strided_slice %22 {offsets = [0, 8], sizes = [8, 8], strides = [1, 1]} : vector<8x32xf32> to vector<8x8xf32>
    %43 = vector.extract_strided_slice %23 {offsets = [0, 8], sizes = [8, 8], strides = [1, 1]} : vector<8x32xf32> to vector<8x8xf32>
    %cst_25 = arith.constant dense<0.000000e+00> : vector<8x8xf32>
    %44 = tpu.matmul %41, %42, %cst_25 {dimension_numbers = #tpu.dot_dimension_numbers<[1], [1], [0], [0], [0, 0, 1, 0], [], []>} : vector<8x8xf32>, vector<8x8xf32>, vector<8x8xf32> -> vector<8x8xf32>
    %cst_26 = arith.constant 0.353553385 : f32
    %45 = vector.broadcast %cst_26 : f32 to vector<8x8xf32>
    %46 = arith.mulf %44, %45 : vector<8x8xf32>
    %cst_27 = arith.constant dense<0xFF800000> : vector<8xf32>
    %47 = vector.multi_reduction <maximumf>, %46, %cst_27 [1] : vector<8x8xf32> to vector<8xf32>
    %48 = vector.shape_cast %47 : vector<8xf32> to vector<8x1xf32>
    %49 = vector.broadcast %48 : vector<8x1xf32> to vector<8x8xf32>
    %50 = arith.subf %46, %49 : vector<8x8xf32>
    %51 = math.exp %50 : vector<8x8xf32>
    %cst_28 = arith.constant dense<0.000000e+00> : vector<8xf32>
    %52 = vector.multi_reduction <add>, %51, %cst_28 [1] : vector<8x8xf32> to vector<8xf32>
    %53 = vector.shape_cast %52 : vector<8xf32> to vector<8x1xf32>
    %54 = tpu.reciprocal %53 {approx = true} : vector<8x1xf32> -> vector<8x1xf32>
    %55 = vector.broadcast %54 : vector<8x1xf32> to vector<8x8xf32>
    %56 = arith.mulf %51, %55 : vector<8x8xf32>
    %cst_29 = arith.constant dense<0.000000e+00> : vector<8x8xf32>
    %57 = tpu.matmul %56, %43, %cst_29 {dimension_numbers = #tpu.dot_dimension_numbers<[1], [0], [0], [1], [0, 0, 1, 1], [], []>} : vector<8x8xf32>, vector<8x8xf32>, vector<8x8xf32> -> vector<8x8xf32>
    %58 = vector.extract_strided_slice %21 {offsets = [0, 16], sizes = [8, 8], strides = [1, 1]} : vector<8x32xf32> to vector<8x8xf32>
    %59 = vector.extract_strided_slice %22 {offsets = [0, 16], sizes = [8, 8], strides = [1, 1]} : vector<8x32xf32> to vector<8x8xf32>
    %60 = vector.extract_strided_slice %23 {offsets = [0, 16], sizes = [8, 8], strides = [1, 1]} : vector<8x32xf32> to vector<8x8xf32>
    %cst_30 = arith.constant dense<0.000000e+00> : vector<8x8xf32>
    %61 = tpu.matmul %58, %59, %cst_30 {dimension_numbers = #tpu.dot_dimension_numbers<[1], [1], [0], [0], [0, 0, 1, 0], [], []>} : vector<8x8xf32>, vector<8x8xf32>, vector<8x8xf32> -> vector<8x8xf32>
    %cst_31 = arith.constant 0.353553385 : f32
    %62 = vector.broadcast %cst_31 : f32 to vector<8x8xf32>
    %63 = arith.mulf %61, %62 : vector<8x8xf32>
    %cst_32 = arith.constant dense<0xFF800000> : vector<8xf32>
    %64 = vector.multi_reduction <maximumf>, %63, %cst_32 [1] : vector<8x8xf32> to vector<8xf32>
    %65 = vector.shape_cast %64 : vector<8xf32> to vector<8x1xf32>
    %66 = vector.broadcast %65 : vector<8x1xf32> to vector<8x8xf32>
    %67 = arith.subf %63, %66 : vector<8x8xf32>
    %68 = math.exp %67 : vector<8x8xf32>
    %cst_33 = arith.constant dense<0.000000e+00> : vector<8xf32>
    %69 = vector.multi_reduction <add>, %68, %cst_33 [1] : vector<8x8xf32> to vector<8xf32>
    %70 = vector.shape_cast %69 : vector<8xf32> to vector<8x1xf32>
    %71 = tpu.reciprocal %70 {approx = true} : vector<8x1xf32> -> vector<8x1xf32>
    %72 = vector.broadcast %71 : vector<8x1xf32> to vector<8x8xf32>
    %73 = arith.mulf %68, %72 : vector<8x8xf32>
    %cst_34 = arith.constant dense<0.000000e+00> : vector<8x8xf32>
    %74 = tpu.matmul %73, %60, %cst_34 {dimension_numbers = #tpu.dot_dimension_numbers<[1], [0], [0], [1], [0, 0, 1, 1], [], []>} : vector<8x8xf32>, vector<8x8xf32>, vector<8x8xf32> -> vector<8x8xf32>
    %75 = vector.extract_strided_slice %21 {offsets = [0, 24], sizes = [8, 8], strides = [1, 1]} : vector<8x32xf32> to vector<8x8xf32>
    %76 = vector.extract_strided_slice %22 {offsets = [0, 24], sizes = [8, 8], strides = [1, 1]} : vector<8x32xf32> to vector<8x8xf32>
    %77 = vector.extract_strided_slice %23 {offsets = [0, 24], sizes = [8, 8], strides = [1, 1]} : vector<8x32xf32> to vector<8x8xf32>
    %cst_35 = arith.constant dense<0.000000e+00> : vector<8x8xf32>
    %78 = tpu.matmul %75, %76, %cst_35 {dimension_numbers = #tpu.dot_dimension_numbers<[1], [1], [0], [0], [0, 0, 1, 0], [], []>} : vector<8x8xf32>, vector<8x8xf32>, vector<8x8xf32> -> vector<8x8xf32>
    %cst_36 = arith.constant 0.353553385 : f32
    %79 = vector.broadcast %cst_36 : f32 to vector<8x8xf32>
    %80 = arith.mulf %78, %79 : vector<8x8xf32>
    %cst_37 = arith.constant dense<0xFF800000> : vector<8xf32>
    %81 = vector.multi_reduction <maximumf>, %80, %cst_37 [1] : vector<8x8xf32> to vector<8xf32>
    %82 = vector.shape_cast %81 : vector<8xf32> to vector<8x1xf32>
    %83 = vector.broadcast %82 : vector<8x1xf32> to vector<8x8xf32>
    %84 = arith.subf %80, %83 : vector<8x8xf32>
    %85 = math.exp %84 : vector<8x8xf32>
    %cst_38 = arith.constant dense<0.000000e+00> : vector<8xf32>
    %86 = vector.multi_reduction <add>, %85, %cst_38 [1] : vector<8x8xf32> to vector<8xf32>
    %87 = vector.shape_cast %86 : vector<8xf32> to vector<8x1xf32>
    %88 = tpu.reciprocal %87 {approx = true} : vector<8x1xf32> -> vector<8x1xf32>
    %89 = vector.broadcast %88 : vector<8x1xf32> to vector<8x8xf32>
    %90 = arith.mulf %85, %89 : vector<8x8xf32>
    %cst_39 = arith.constant dense<0.000000e+00> : vector<8x8xf32>
    %91 = tpu.matmul %90, %77, %cst_39 {dimension_numbers = #tpu.dot_dimension_numbers<[1], [0], [0], [1], [0, 0, 1, 1], [], []>} : vector<8x8xf32>, vector<8x8xf32>, vector<8x8xf32> -> vector<8x8xf32>
    %92 = tpu.concatenate %40, %57, %74, %91 in 1 : vector<8x8xf32>, vector<8x8xf32>, vector<8x8xf32>, vector<8x8xf32> -> vector<8x32xf32>
    %93 = vector.extract_strided_slice %18 {offsets = [8, 0], sizes = [8, 32], strides = [1, 1]} : vector<16x32xf32> to vector<8x32xf32>
    %94 = vector.extract_strided_slice %19 {offsets = [8, 0], sizes = [8, 32], strides = [1, 1]} : vector<16x32xf32> to vector<8x32xf32>
    %95 = vector.extract_strided_slice %20 {offsets = [8, 0], sizes = [8, 32], strides = [1, 1]} : vector<16x32xf32> to vector<8x32xf32>
    %96 = vector.extract_strided_slice %93 {offsets = [0, 0], sizes = [8, 8], strides = [1, 1]} : vector<8x32xf32> to vector<8x8xf32>
    %97 = vector.extract_strided_slice %94 {offsets = [0, 0], sizes = [8, 8], strides = [1, 1]} : vector<8x32xf32> to vector<8x8xf32>
    %98 = vector.extract_strided_slice %95 {offsets = [0, 0], sizes = [8, 8], strides = [1, 1]} : vector<8x32xf32> to vector<8x8xf32>
    %cst_40 = arith.constant dense<0.000000e+00> : vector<8x8xf32>
    %99 = tpu.matmul %96, %97, %cst_40 {dimension_numbers = #tpu.dot_dimension_numbers<[1], [1], [0], [0], [0, 0, 1, 0], [], []>} : vector<8x8xf32>, vector<8x8xf32>, vector<8x8xf32> -> vector<8x8xf32>
    %cst_41 = arith.constant 0.353553385 : f32
    %100 = vector.broadcast %cst_41 : f32 to vector<8x8xf32>
    %101 = arith.mulf %99, %100 : vector<8x8xf32>
    %cst_42 = arith.constant dense<0xFF800000> : vector<8xf32>
    %102 = vector.multi_reduction <maximumf>, %101, %cst_42 [1] : vector<8x8xf32> to vector<8xf32>
    %103 = vector.shape_cast %102 : vector<8xf32> to vector<8x1xf32>
    %104 = vector.broadcast %103 : vector<8x1xf32> to vector<8x8xf32>
    %105 = arith.subf %101, %104 : vector<8x8xf32>
    %106 = math.exp %105 : vector<8x8xf32>
    %cst_43 = arith.constant dense<0.000000e+00> : vector<8xf32>
    %107 = vector.multi_reduction <add>, %106, %cst_43 [1] : vector<8x8xf32> to vector<8xf32>
    %108 = vector.shape_cast %107 : vector<8xf32> to vector<8x1xf32>
    %109 = tpu.reciprocal %108 {approx = true} : vector<8x1xf32> -> vector<8x1xf32>
    %110 = vector.broadcast %109 : vector<8x1xf32> to vector<8x8xf32>
    %111 = arith.mulf %106, %110 : vector<8x8xf32>
    %cst_44 = arith.constant dense<0.000000e+00> : vector<8x8xf32>
    %112 = tpu.matmul %111, %98, %cst_44 {dimension_numbers = #tpu.dot_dimension_numbers<[1], [0], [0], [1], [0, 0, 1, 1], [], []>} : vector<8x8xf32>, vector<8x8xf32>, vector<8x8xf32> -> vector<8x8xf32>
    %113 = vector.extract_strided_slice %93 {offsets = [0, 8], sizes = [8, 8], strides = [1, 1]} : vector<8x32xf32> to vector<8x8xf32>
    %114 = vector.extract_strided_slice %94 {offsets = [0, 8], sizes = [8, 8], strides = [1, 1]} : vector<8x32xf32> to vector<8x8xf32>
    %115 = vector.extract_strided_slice %95 {offsets = [0, 8], sizes = [8, 8], strides = [1, 1]} : vector<8x32xf32> to vector<8x8xf32>
    %cst_45 = arith.constant dense<0.000000e+00> : vector<8x8xf32>
    %116 = tpu.matmul %113, %114, %cst_45 {dimension_numbers = #tpu.dot_dimension_numbers<[1], [1], [0], [0], [0, 0, 1, 0], [], []>} : vector<8x8xf32>, vector<8x8xf32>, vector<8x8xf32> -> vector<8x8xf32>
    %cst_46 = arith.constant 0.353553385 : f32
    %117 = vector.broadcast %cst_46 : f32 to vector<8x8xf32>
    %118 = arith.mulf %116, %117 : vector<8x8xf32>
    %cst_47 = arith.constant dense<0xFF800000> : vector<8xf32>
    %119 = vector.multi_reduction <maximumf>, %118, %cst_47 [1] : vector<8x8xf32> to vector<8xf32>
    %120 = vector.shape_cast %119 : vector<8xf32> to vector<8x1xf32>
    %121 = vector.broadcast %120 : vector<8x1xf32> to vector<8x8xf32>
    %122 = arith.subf %118, %121 : vector<8x8xf32>
    %123 = math.exp %122 : vector<8x8xf32>
    %cst_48 = arith.constant dense<0.000000e+00> : vector<8xf32>
    %124 = vector.multi_reduction <add>, %123, %cst_48 [1] : vector<8x8xf32> to vector<8xf32>
    %125 = vector.shape_cast %124 : vector<8xf32> to vector<8x1xf32>
    %126 = tpu.reciprocal %125 {approx = true} : vector<8x1xf32> -> vector<8x1xf32>
    %127 = vector.broadcast %126 : vector<8x1xf32> to vector<8x8xf32>
    %128 = arith.mulf %123, %127 : vector<8x8xf32>
    %cst_49 = arith.constant dense<0.000000e+00> : vector<8x8xf32>
    %129 = tpu.matmul %128, %115, %cst_49 {dimension_numbers = #tpu.dot_dimension_numbers<[1], [0], [0], [1], [0, 0, 1, 1], [], []>} : vector<8x8xf32>, vector<8x8xf32>, vector<8x8xf32> -> vector<8x8xf32>
    %130 = vector.extract_strided_slice %93 {offsets = [0, 16], sizes = [8, 8], strides = [1, 1]} : vector<8x32xf32> to vector<8x8xf32>
    %131 = vector.extract_strided_slice %94 {offsets = [0, 16], sizes = [8, 8], strides = [1, 1]} : vector<8x32xf32> to vector<8x8xf32>
    %132 = vector.extract_strided_slice %95 {offsets = [0, 16], sizes = [8, 8], strides = [1, 1]} : vector<8x32xf32> to vector<8x8xf32>
    %cst_50 = arith.constant dense<0.000000e+00> : vector<8x8xf32>
    %133 = tpu.matmul %130, %131, %cst_50 {dimension_numbers = #tpu.dot_dimension_numbers<[1], [1], [0], [0], [0, 0, 1, 0], [], []>} : vector<8x8xf32>, vector<8x8xf32>, vector<8x8xf32> -> vector<8x8xf32>
    %cst_51 = arith.constant 0.353553385 : f32
    %134 = vector.broadcast %cst_51 : f32 to vector<8x8xf32>
    %135 = arith.mulf %133, %134 : vector<8x8xf32>
    %cst_52 = arith.constant dense<0xFF800000> : vector<8xf32>
    %136 = vector.multi_reduction <maximumf>, %135, %cst_52 [1] : vector<8x8xf32> to vector<8xf32>
    %137 = vector.shape_cast %136 : vector<8xf32> to vector<8x1xf32>
    %138 = vector.broadcast %137 : vector<8x1xf32> to vector<8x8xf32>
    %139 = arith.subf %135, %138 : vector<8x8xf32>
    %140 = math.exp %139 : vector<8x8xf32>
    %cst_53 = arith.constant dense<0.000000e+00> : vector<8xf32>
    %141 = vector.multi_reduction <add>, %140, %cst_53 [1] : vector<8x8xf32> to vector<8xf32>
    %142 = vector.shape_cast %141 : vector<8xf32> to vector<8x1xf32>
    %143 = tpu.reciprocal %142 {approx = true} : vector<8x1xf32> -> vector<8x1xf32>
    %144 = vector.broadcast %143 : vector<8x1xf32> to vector<8x8xf32>
    %145 = arith.mulf %140, %144 : vector<8x8xf32>
    %cst_54 = arith.constant dense<0.000000e+00> : vector<8x8xf32>
    %146 = tpu.matmul %145, %132, %cst_54 {dimension_numbers = #tpu.dot_dimension_numbers<[1], [0], [0], [1], [0, 0, 1, 1], [], []>} : vector<8x8xf32>, vector<8x8xf32>, vector<8x8xf32> -> vector<8x8xf32>
    %147 = vector.extract_strided_slice %93 {offsets = [0, 24], sizes = [8, 8], strides = [1, 1]} : vector<8x32xf32> to vector<8x8xf32>
    %148 = vector.extract_strided_slice %94 {offsets = [0, 24], sizes = [8, 8], strides = [1, 1]} : vector<8x32xf32> to vector<8x8xf32>
    %149 = vector.extract_strided_slice %95 {offsets = [0, 24], sizes = [8, 8], strides = [1, 1]} : vector<8x32xf32> to vector<8x8xf32>
    %cst_55 = arith.constant dense<0.000000e+00> : vector<8x8xf32>
    %150 = tpu.matmul %147, %148, %cst_55 {dimension_numbers = #tpu.dot_dimension_numbers<[1], [1], [0], [0], [0, 0, 1, 0], [], []>} : vector<8x8xf32>, vector<8x8xf32>, vector<8x8xf32> -> vector<8x8xf32>
    %cst_56 = arith.constant 0.353553385 : f32
    %151 = vector.broadcast %cst_56 : f32 to vector<8x8xf32>
    %152 = arith.mulf %150, %151 : vector<8x8xf32>
    %cst_57 = arith.constant dense<0xFF800000> : vector<8xf32>
    %153 = vector.multi_reduction <maximumf>, %152, %cst_57 [1] : vector<8x8xf32> to vector<8xf32>
    %154 = vector.shape_cast %153 : vector<8xf32> to vector<8x1xf32>
    %155 = vector.broadcast %154 : vector<8x1xf32> to vector<8x8xf32>
    %156 = arith.subf %152, %155 : vector<8x8xf32>
    %157 = math.exp %156 : vector<8x8xf32>
    %cst_58 = arith.constant dense<0.000000e+00> : vector<8xf32>
    %158 = vector.multi_reduction <add>, %157, %cst_58 [1] : vector<8x8xf32> to vector<8xf32>
    %159 = vector.shape_cast %158 : vector<8xf32> to vector<8x1xf32>
    %160 = tpu.reciprocal %159 {approx = true} : vector<8x1xf32> -> vector<8x1xf32>
    %161 = vector.broadcast %160 : vector<8x1xf32> to vector<8x8xf32>
    %162 = arith.mulf %157, %161 : vector<8x8xf32>
    %cst_59 = arith.constant dense<0.000000e+00> : vector<8x8xf32>
    %163 = tpu.matmul %162, %149, %cst_59 {dimension_numbers = #tpu.dot_dimension_numbers<[1], [0], [0], [1], [0, 0, 1, 1], [], []>} : vector<8x8xf32>, vector<8x8xf32>, vector<8x8xf32> -> vector<8x8xf32>
    %164 = tpu.concatenate %112, %129, %146, %163 in 1 : vector<8x8xf32>, vector<8x8xf32>, vector<8x8xf32>, vector<8x8xf32> -> vector<8x32xf32>
    %165 = tpu.concatenate %92, %164 in 0 : vector<8x32xf32>, vector<8x32xf32> -> vector<16x32xf32>
    %cst_60 = arith.constant dense<0.000000e+00> : vector<16x32xf32>
    %166 = tpu.matmul %165, %12, %cst_60 {dimension_numbers = #tpu.dot_dimension_numbers<[1], [0], [0], [1], [0, 0, 1, 1], [], []>} : vector<16x32xf32>, vector<32x32xf32>, vector<16x32xf32> -> vector<16x32xf32>
    %167 = vector.broadcast %14 : vector<1x32xf32> to vector<16x32xf32>
    %168 = arith.addf %166, %167 : vector<16x32xf32>
    %c0_61 = arith.constant 0 : index
    %c0_62 = arith.constant 0 : index
    %c0_63 = arith.constant 0 : index
    %169 = vector.load %arg17[%c0_61, %c0_62, %c0_63] : memref<2x1x32xf32, #tpu.memory_space<vmem>>, vector<1x1x32xf32>
    %170 = vector.shape_cast %169 : vector<1x1x32xf32> to vector<1x32xf32>
    %c0_64 = arith.constant 0 : index
    %c0_65 = arith.constant 0 : index
    %c0_66 = arith.constant 0 : index
    %171 = vector.load %arg18[%c0_64, %c0_65, %c0_66] : memref<2x1x32xf32, #tpu.memory_space<vmem>>, vector<1x1x32xf32>
    %172 = vector.shape_cast %171 : vector<1x1x32xf32> to vector<1x32xf32>
    %173 = arith.addf %5, %168 : vector<16x32xf32>
    %cst_67 = arith.constant dense<0.000000e+00> : vector<16xf32>
    %174 = vector.multi_reduction <add>, %173, %cst_67 [1] : vector<16x32xf32> to vector<16xf32>
    %175 = vector.shape_cast %174 : vector<16xf32> to vector<16x1xf32>
    %cst_68 = arith.constant 3.200000e+01 : f32
    %176 = vector.broadcast %cst_68 : f32 to vector<16x1xf32>
    %177 = arith.divf %175, %176 : vector<16x1xf32>
    %178 = vector.broadcast %177 : vector<16x1xf32> to vector<16x32xf32>
    %179 = arith.subf %173, %178 : vector<16x32xf32>
    %180 = vector.broadcast %177 : vector<16x1xf32> to vector<16x32xf32>
    %181 = arith.subf %173, %180 : vector<16x32xf32>
    %182 = arith.mulf %179, %181 : vector<16x32xf32>
    %cst_69 = arith.constant dense<0.000000e+00> : vector<16xf32>
    %183 = vector.multi_reduction <add>, %182, %cst_69 [1] : vector<16x32xf32> to vector<16xf32>
    %184 = vector.shape_cast %183 : vector<16xf32> to vector<16x1xf32>
    %cst_70 = arith.constant 3.200000e+01 : f32
    %185 = vector.broadcast %cst_70 : f32 to vector<16x1xf32>
    %186 = arith.divf %184, %185 : vector<16x1xf32>
    %187 = vector.broadcast %177 : vector<16x1xf32> to vector<16x32xf32>
    %188 = arith.subf %173, %187 : vector<16x32xf32>
    %cst_71 = arith.constant 9.99999974E-6 : f32
    %189 = vector.broadcast %cst_71 : f32 to vector<16x1xf32>
    %190 = arith.addf %186, %189 : vector<16x1xf32>
    %191 = math.rsqrt %190 : vector<16x1xf32>
    %192 = vector.broadcast %191 : vector<16x1xf32> to vector<16x32xf32>
    %193 = arith.mulf %188, %192 : vector<16x32xf32>
    %194 = vector.broadcast %170 : vector<1x32xf32> to vector<16x32xf32>
    %195 = arith.mulf %193, %194 : vector<16x32xf32>
    %196 = vector.broadcast %172 : vector<1x32xf32> to vector<16x32xf32>
    %197 = arith.addf %195, %196 : vector<16x32xf32>
    %c0_72 = arith.constant 0 : index
    %c0_73 = arith.constant 0 : index
    %c0_74 = arith.constant 0 : index
    %198 = vector.load %arg9[%c0_72, %c0_73, %c0_74] : memref<2x32x96xf32, #tpu.memory_space<vmem>>, vector<1x32x96xf32>
    %199 = vector.shape_cast %198 : vector<1x32x96xf32> to vector<32x96xf32>
    %c0_75 = arith.constant 0 : index
    %c0_76 = arith.constant 0 : index
    %c0_77 = arith.constant 0 : index
    %200 = vector.load %arg10[%c0_75, %c0_76, %c0_77] : memref<2x1x96xf32, #tpu.memory_space<vmem>>, vector<1x1x96xf32>
    %201 = vector.shape_cast %200 : vector<1x1x96xf32> to vector<1x96xf32>
    %c0_78 = arith.constant 0 : index
    %c0_79 = arith.constant 0 : index
    %c0_80 = arith.constant 0 : index
    %202 = vector.load %arg11[%c0_78, %c0_79, %c0_80] : memref<2x32x32xf32, #tpu.memory_space<vmem>>, vector<1x32x32xf32>
    %203 = vector.shape_cast %202 : vector<1x32x32xf32> to vector<32x32xf32>
    %c0_81 = arith.constant 0 : index
    %c0_82 = arith.constant 0 : index
    %c0_83 = arith.constant 0 : index
    %204 = vector.load %arg12[%c0_81, %c0_82, %c0_83] : memref<2x1x32xf32, #tpu.memory_space<vmem>>, vector<1x1x32xf32>
    %205 = vector.shape_cast %204 : vector<1x1x32xf32> to vector<1x32xf32>
    %206 = vector.extract_strided_slice %199 {offsets = [0, 0], sizes = [32, 32], strides = [1, 1]} : vector<32x96xf32> to vector<32x32xf32>
    %cst_84 = arith.constant dense<0.000000e+00> : vector<16x32xf32>
    %207 = tpu.matmul %197, %206, %cst_84 {dimension_numbers = #tpu.dot_dimension_numbers<[1], [0], [0], [1], [0, 0, 1, 1], [], []>} : vector<16x32xf32>, vector<32x32xf32>, vector<16x32xf32> -> vector<16x32xf32>
    %208 = vector.extract_strided_slice %201 {offsets = [0, 0], sizes = [1, 32], strides = [1, 1]} : vector<1x96xf32> to vector<1x32xf32>
    %209 = vector.broadcast %208 : vector<1x32xf32> to vector<16x32xf32>
    %210 = arith.addf %207, %209 : vector<16x32xf32>
    %211 = vector.extract_strided_slice %199 {offsets = [0, 32], sizes = [32, 64], strides = [1, 1]} : vector<32x96xf32> to vector<32x64xf32>
    %cst_85 = arith.constant dense<0.000000e+00> : vector<16x64xf32>
    %212 = tpu.matmul %6, %211, %cst_85 {dimension_numbers = #tpu.dot_dimension_numbers<[1], [0], [0], [1], [0, 0, 1, 1], [], []>} : vector<16x32xf32>, vector<32x64xf32>, vector<16x64xf32> -> vector<16x64xf32>
    %213 = vector.extract_strided_slice %201 {offsets = [0, 32], sizes = [1, 64], strides = [1, 1]} : vector<1x96xf32> to vector<1x64xf32>
    %214 = vector.broadcast %213 : vector<1x64xf32> to vector<16x64xf32>
    %215 = arith.addf %212, %214 : vector<16x64xf32>
    %216 = vector.extract_strided_slice %215 {offsets = [0, 0], sizes = [16, 32], strides = [1, 1]} : vector<16x64xf32> to vector<16x32xf32>
    %217 = vector.extract_strided_slice %215 {offsets = [0, 32], sizes = [16, 32], strides = [1, 1]} : vector<16x64xf32> to vector<16x32xf32>
    %218 = vector.extract_strided_slice %210 {offsets = [0, 0], sizes = [8, 32], strides = [1, 1]} : vector<16x32xf32> to vector<8x32xf32>
    %219 = vector.extract_strided_slice %216 {offsets = [0, 0], sizes = [8, 32], strides = [1, 1]} : vector<16x32xf32> to vector<8x32xf32>
    %220 = vector.extract_strided_slice %217 {offsets = [0, 0], sizes = [8, 32], strides = [1, 1]} : vector<16x32xf32> to vector<8x32xf32>
    %221 = vector.extract_strided_slice %218 {offsets = [0, 0], sizes = [8, 8], strides = [1, 1]} : vector<8x32xf32> to vector<8x8xf32>
    %222 = vector.extract_strided_slice %219 {offsets = [0, 0], sizes = [8, 8], strides = [1, 1]} : vector<8x32xf32> to vector<8x8xf32>
    %223 = vector.extract_strided_slice %220 {offsets = [0, 0], sizes = [8, 8], strides = [1, 1]} : vector<8x32xf32> to vector<8x8xf32>
    %cst_86 = arith.constant dense<0.000000e+00> : vector<8x8xf32>
    %224 = tpu.matmul %221, %222, %cst_86 {dimension_numbers = #tpu.dot_dimension_numbers<[1], [1], [0], [0], [0, 0, 1, 0], [], []>} : vector<8x8xf32>, vector<8x8xf32>, vector<8x8xf32> -> vector<8x8xf32>
    %cst_87 = arith.constant 0.353553385 : f32
    %225 = vector.broadcast %cst_87 : f32 to vector<8x8xf32>
    %226 = arith.mulf %224, %225 : vector<8x8xf32>
    %cst_88 = arith.constant dense<0xFF800000> : vector<8xf32>
    %227 = vector.multi_reduction <maximumf>, %226, %cst_88 [1] : vector<8x8xf32> to vector<8xf32>
    %228 = vector.shape_cast %227 : vector<8xf32> to vector<8x1xf32>
    %229 = vector.broadcast %228 : vector<8x1xf32> to vector<8x8xf32>
    %230 = arith.subf %226, %229 : vector<8x8xf32>
    %231 = math.exp %230 : vector<8x8xf32>
    %cst_89 = arith.constant dense<0.000000e+00> : vector<8xf32>
    %232 = vector.multi_reduction <add>, %231, %cst_89 [1] : vector<8x8xf32> to vector<8xf32>
    %233 = vector.shape_cast %232 : vector<8xf32> to vector<8x1xf32>
    %234 = tpu.reciprocal %233 {approx = true} : vector<8x1xf32> -> vector<8x1xf32>
    %235 = vector.broadcast %234 : vector<8x1xf32> to vector<8x8xf32>
    %236 = arith.mulf %231, %235 : vector<8x8xf32>
    %cst_90 = arith.constant dense<0.000000e+00> : vector<8x8xf32>
    %237 = tpu.matmul %236, %223, %cst_90 {dimension_numbers = #tpu.dot_dimension_numbers<[1], [0], [0], [1], [0, 0, 1, 1], [], []>} : vector<8x8xf32>, vector<8x8xf32>, vector<8x8xf32> -> vector<8x8xf32>
    %238 = vector.extract_strided_slice %218 {offsets = [0, 8], sizes = [8, 8], strides = [1, 1]} : vector<8x32xf32> to vector<8x8xf32>
    %239 = vector.extract_strided_slice %219 {offsets = [0, 8], sizes = [8, 8], strides = [1, 1]} : vector<8x32xf32> to vector<8x8xf32>
    %240 = vector.extract_strided_slice %220 {offsets = [0, 8], sizes = [8, 8], strides = [1, 1]} : vector<8x32xf32> to vector<8x8xf32>
    %cst_91 = arith.constant dense<0.000000e+00> : vector<8x8xf32>
    %241 = tpu.matmul %238, %239, %cst_91 {dimension_numbers = #tpu.dot_dimension_numbers<[1], [1], [0], [0], [0, 0, 1, 0], [], []>} : vector<8x8xf32>, vector<8x8xf32>, vector<8x8xf32> -> vector<8x8xf32>
    %cst_92 = arith.constant 0.353553385 : f32
    %242 = vector.broadcast %cst_92 : f32 to vector<8x8xf32>
    %243 = arith.mulf %241, %242 : vector<8x8xf32>
    %cst_93 = arith.constant dense<0xFF800000> : vector<8xf32>
    %244 = vector.multi_reduction <maximumf>, %243, %cst_93 [1] : vector<8x8xf32> to vector<8xf32>
    %245 = vector.shape_cast %244 : vector<8xf32> to vector<8x1xf32>
    %246 = vector.broadcast %245 : vector<8x1xf32> to vector<8x8xf32>
    %247 = arith.subf %243, %246 : vector<8x8xf32>
    %248 = math.exp %247 : vector<8x8xf32>
    %cst_94 = arith.constant dense<0.000000e+00> : vector<8xf32>
    %249 = vector.multi_reduction <add>, %248, %cst_94 [1] : vector<8x8xf32> to vector<8xf32>
    %250 = vector.shape_cast %249 : vector<8xf32> to vector<8x1xf32>
    %251 = tpu.reciprocal %250 {approx = true} : vector<8x1xf32> -> vector<8x1xf32>
    %252 = vector.broadcast %251 : vector<8x1xf32> to vector<8x8xf32>
    %253 = arith.mulf %248, %252 : vector<8x8xf32>
    %cst_95 = arith.constant dense<0.000000e+00> : vector<8x8xf32>
    %254 = tpu.matmul %253, %240, %cst_95 {dimension_numbers = #tpu.dot_dimension_numbers<[1], [0], [0], [1], [0, 0, 1, 1], [], []>} : vector<8x8xf32>, vector<8x8xf32>, vector<8x8xf32> -> vector<8x8xf32>
    %255 = vector.extract_strided_slice %218 {offsets = [0, 16], sizes = [8, 8], strides = [1, 1]} : vector<8x32xf32> to vector<8x8xf32>
    %256 = vector.extract_strided_slice %219 {offsets = [0, 16], sizes = [8, 8], strides = [1, 1]} : vector<8x32xf32> to vector<8x8xf32>
    %257 = vector.extract_strided_slice %220 {offsets = [0, 16], sizes = [8, 8], strides = [1, 1]} : vector<8x32xf32> to vector<8x8xf32>
    %cst_96 = arith.constant dense<0.000000e+00> : vector<8x8xf32>
    %258 = tpu.matmul %255, %256, %cst_96 {dimension_numbers = #tpu.dot_dimension_numbers<[1], [1], [0], [0], [0, 0, 1, 0], [], []>} : vector<8x8xf32>, vector<8x8xf32>, vector<8x8xf32> -> vector<8x8xf32>
    %cst_97 = arith.constant 0.353553385 : f32
    %259 = vector.broadcast %cst_97 : f32 to vector<8x8xf32>
    %260 = arith.mulf %258, %259 : vector<8x8xf32>
    %cst_98 = arith.constant dense<0xFF800000> : vector<8xf32>
    %261 = vector.multi_reduction <maximumf>, %260, %cst_98 [1] : vector<8x8xf32> to vector<8xf32>
    %262 = vector.shape_cast %261 : vector<8xf32> to vector<8x1xf32>
    %263 = vector.broadcast %262 : vector<8x1xf32> to vector<8x8xf32>
    %264 = arith.subf %260, %263 : vector<8x8xf32>
    %265 = math.exp %264 : vector<8x8xf32>
    %cst_99 = arith.constant dense<0.000000e+00> : vector<8xf32>
    %266 = vector.multi_reduction <add>, %265, %cst_99 [1] : vector<8x8xf32> to vector<8xf32>
    %267 = vector.shape_cast %266 : vector<8xf32> to vector<8x1xf32>
    %268 = tpu.reciprocal %267 {approx = true} : vector<8x1xf32> -> vector<8x1xf32>
    %269 = vector.broadcast %268 : vector<8x1xf32> to vector<8x8xf32>
    %270 = arith.mulf %265, %269 : vector<8x8xf32>
    %cst_100 = arith.constant dense<0.000000e+00> : vector<8x8xf32>
    %271 = tpu.matmul %270, %257, %cst_100 {dimension_numbers = #tpu.dot_dimension_numbers<[1], [0], [0], [1], [0, 0, 1, 1], [], []>} : vector<8x8xf32>, vector<8x8xf32>, vector<8x8xf32> -> vector<8x8xf32>
    %272 = vector.extract_strided_slice %218 {offsets = [0, 24], sizes = [8, 8], strides = [1, 1]} : vector<8x32xf32> to vector<8x8xf32>
    %273 = vector.extract_strided_slice %219 {offsets = [0, 24], sizes = [8, 8], strides = [1, 1]} : vector<8x32xf32> to vector<8x8xf32>
    %274 = vector.extract_strided_slice %220 {offsets = [0, 24], sizes = [8, 8], strides = [1, 1]} : vector<8x32xf32> to vector<8x8xf32>
    %cst_101 = arith.constant dense<0.000000e+00> : vector<8x8xf32>
    %275 = tpu.matmul %272, %273, %cst_101 {dimension_numbers = #tpu.dot_dimension_numbers<[1], [1], [0], [0], [0, 0, 1, 0], [], []>} : vector<8x8xf32>, vector<8x8xf32>, vector<8x8xf32> -> vector<8x8xf32>
    %cst_102 = arith.constant 0.353553385 : f32
    %276 = vector.broadcast %cst_102 : f32 to vector<8x8xf32>
    %277 = arith.mulf %275, %276 : vector<8x8xf32>
    %cst_103 = arith.constant dense<0xFF800000> : vector<8xf32>
    %278 = vector.multi_reduction <maximumf>, %277, %cst_103 [1] : vector<8x8xf32> to vector<8xf32>
    %279 = vector.shape_cast %278 : vector<8xf32> to vector<8x1xf32>
    %280 = vector.broadcast %279 : vector<8x1xf32> to vector<8x8xf32>
    %281 = arith.subf %277, %280 : vector<8x8xf32>
    %282 = math.exp %281 : vector<8x8xf32>
    %cst_104 = arith.constant dense<0.000000e+00> : vector<8xf32>
    %283 = vector.multi_reduction <add>, %282, %cst_104 [1] : vector<8x8xf32> to vector<8xf32>
    %284 = vector.shape_cast %283 : vector<8xf32> to vector<8x1xf32>
    %285 = tpu.reciprocal %284 {approx = true} : vector<8x1xf32> -> vector<8x1xf32>
    %286 = vector.broadcast %285 : vector<8x1xf32> to vector<8x8xf32>
    %287 = arith.mulf %282, %286 : vector<8x8xf32>
    %cst_105 = arith.constant dense<0.000000e+00> : vector<8x8xf32>
    %288 = tpu.matmul %287, %274, %cst_105 {dimension_numbers = #tpu.dot_dimension_numbers<[1], [0], [0], [1], [0, 0, 1, 1], [], []>} : vector<8x8xf32>, vector<8x8xf32>, vector<8x8xf32> -> vector<8x8xf32>
    %289 = tpu.concatenate %237, %254, %271, %288 in 1 : vector<8x8xf32>, vector<8x8xf32>, vector<8x8xf32>, vector<8x8xf32> -> vector<8x32xf32>
    %290 = vector.extract_strided_slice %210 {offsets = [8, 0], sizes = [8, 32], strides = [1, 1]} : vector<16x32xf32> to vector<8x32xf32>
    %291 = vector.extract_strided_slice %216 {offsets = [8, 0], sizes = [8, 32], strides = [1, 1]} : vector<16x32xf32> to vector<8x32xf32>
    %292 = vector.extract_strided_slice %217 {offsets = [8, 0], sizes = [8, 32], strides = [1, 1]} : vector<16x32xf32> to vector<8x32xf32>
    %293 = vector.extract_strided_slice %290 {offsets = [0, 0], sizes = [8, 8], strides = [1, 1]} : vector<8x32xf32> to vector<8x8xf32>
    %294 = vector.extract_strided_slice %291 {offsets = [0, 0], sizes = [8, 8], strides = [1, 1]} : vector<8x32xf32> to vector<8x8xf32>
    %295 = vector.extract_strided_slice %292 {offsets = [0, 0], sizes = [8, 8], strides = [1, 1]} : vector<8x32xf32> to vector<8x8xf32>
    %cst_106 = arith.constant dense<0.000000e+00> : vector<8x8xf32>
    %296 = tpu.matmul %293, %294, %cst_106 {dimension_numbers = #tpu.dot_dimension_numbers<[1], [1], [0], [0], [0, 0, 1, 0], [], []>} : vector<8x8xf32>, vector<8x8xf32>, vector<8x8xf32> -> vector<8x8xf32>
    %cst_107 = arith.constant 0.353553385 : f32
    %297 = vector.broadcast %cst_107 : f32 to vector<8x8xf32>
    %298 = arith.mulf %296, %297 : vector<8x8xf32>
    %cst_108 = arith.constant dense<0xFF800000> : vector<8xf32>
    %299 = vector.multi_reduction <maximumf>, %298, %cst_108 [1] : vector<8x8xf32> to vector<8xf32>
    %300 = vector.shape_cast %299 : vector<8xf32> to vector<8x1xf32>
    %301 = vector.broadcast %300 : vector<8x1xf32> to vector<8x8xf32>
    %302 = arith.subf %298, %301 : vector<8x8xf32>
    %303 = math.exp %302 : vector<8x8xf32>
    %cst_109 = arith.constant dense<0.000000e+00> : vector<8xf32>
    %304 = vector.multi_reduction <add>, %303, %cst_109 [1] : vector<8x8xf32> to vector<8xf32>
    %305 = vector.shape_cast %304 : vector<8xf32> to vector<8x1xf32>
    %306 = tpu.reciprocal %305 {approx = true} : vector<8x1xf32> -> vector<8x1xf32>
    %307 = vector.broadcast %306 : vector<8x1xf32> to vector<8x8xf32>
    %308 = arith.mulf %303, %307 : vector<8x8xf32>
    %cst_110 = arith.constant dense<0.000000e+00> : vector<8x8xf32>
    %309 = tpu.matmul %308, %295, %cst_110 {dimension_numbers = #tpu.dot_dimension_numbers<[1], [0], [0], [1], [0, 0, 1, 1], [], []>} : vector<8x8xf32>, vector<8x8xf32>, vector<8x8xf32> -> vector<8x8xf32>
    %310 = vector.extract_strided_slice %290 {offsets = [0, 8], sizes = [8, 8], strides = [1, 1]} : vector<8x32xf32> to vector<8x8xf32>
    %311 = vector.extract_strided_slice %291 {offsets = [0, 8], sizes = [8, 8], strides = [1, 1]} : vector<8x32xf32> to vector<8x8xf32>
    %312 = vector.extract_strided_slice %292 {offsets = [0, 8], sizes = [8, 8], strides = [1, 1]} : vector<8x32xf32> to vector<8x8xf32>
    %cst_111 = arith.constant dense<0.000000e+00> : vector<8x8xf32>
    %313 = tpu.matmul %310, %311, %cst_111 {dimension_numbers = #tpu.dot_dimension_numbers<[1], [1], [0], [0], [0, 0, 1, 0], [], []>} : vector<8x8xf32>, vector<8x8xf32>, vector<8x8xf32> -> vector<8x8xf32>
    %cst_112 = arith.constant 0.353553385 : f32
    %314 = vector.broadcast %cst_112 : f32 to vector<8x8xf32>
    %315 = arith.mulf %313, %314 : vector<8x8xf32>
    %cst_113 = arith.constant dense<0xFF800000> : vector<8xf32>
    %316 = vector.multi_reduction <maximumf>, %315, %cst_113 [1] : vector<8x8xf32> to vector<8xf32>
    %317 = vector.shape_cast %316 : vector<8xf32> to vector<8x1xf32>
    %318 = vector.broadcast %317 : vector<8x1xf32> to vector<8x8xf32>
    %319 = arith.subf %315, %318 : vector<8x8xf32>
    %320 = math.exp %319 : vector<8x8xf32>
    %cst_114 = arith.constant dense<0.000000e+00> : vector<8xf32>
    %321 = vector.multi_reduction <add>, %320, %cst_114 [1] : vector<8x8xf32> to vector<8xf32>
    %322 = vector.shape_cast %321 : vector<8xf32> to vector<8x1xf32>
    %323 = tpu.reciprocal %322 {approx = true} : vector<8x1xf32> -> vector<8x1xf32>
    %324 = vector.broadcast %323 : vector<8x1xf32> to vector<8x8xf32>
    %325 = arith.mulf %320, %324 : vector<8x8xf32>
    %cst_115 = arith.constant dense<0.000000e+00> : vector<8x8xf32>
    %326 = tpu.matmul %325, %312, %cst_115 {dimension_numbers = #tpu.dot_dimension_numbers<[1], [0], [0], [1], [0, 0, 1, 1], [], []>} : vector<8x8xf32>, vector<8x8xf32>, vector<8x8xf32> -> vector<8x8xf32>
    %327 = vector.extract_strided_slice %290 {offsets = [0, 16], sizes = [8, 8], strides = [1, 1]} : vector<8x32xf32> to vector<8x8xf32>
    %328 = vector.extract_strided_slice %291 {offsets = [0, 16], sizes = [8, 8], strides = [1, 1]} : vector<8x32xf32> to vector<8x8xf32>
    %329 = vector.extract_strided_slice %292 {offsets = [0, 16], sizes = [8, 8], strides = [1, 1]} : vector<8x32xf32> to vector<8x8xf32>
    %cst_116 = arith.constant dense<0.000000e+00> : vector<8x8xf32>
    %330 = tpu.matmul %327, %328, %cst_116 {dimension_numbers = #tpu.dot_dimension_numbers<[1], [1], [0], [0], [0, 0, 1, 0], [], []>} : vector<8x8xf32>, vector<8x8xf32>, vector<8x8xf32> -> vector<8x8xf32>
    %cst_117 = arith.constant 0.353553385 : f32
    %331 = vector.broadcast %cst_117 : f32 to vector<8x8xf32>
    %332 = arith.mulf %330, %331 : vector<8x8xf32>
    %cst_118 = arith.constant dense<0xFF800000> : vector<8xf32>
    %333 = vector.multi_reduction <maximumf>, %332, %cst_118 [1] : vector<8x8xf32> to vector<8xf32>
    %334 = vector.shape_cast %333 : vector<8xf32> to vector<8x1xf32>
    %335 = vector.broadcast %334 : vector<8x1xf32> to vector<8x8xf32>
    %336 = arith.subf %332, %335 : vector<8x8xf32>
    %337 = math.exp %336 : vector<8x8xf32>
    %cst_119 = arith.constant dense<0.000000e+00> : vector<8xf32>
    %338 = vector.multi_reduction <add>, %337, %cst_119 [1] : vector<8x8xf32> to vector<8xf32>
    %339 = vector.shape_cast %338 : vector<8xf32> to vector<8x1xf32>
    %340 = tpu.reciprocal %339 {approx = true} : vector<8x1xf32> -> vector<8x1xf32>
    %341 = vector.broadcast %340 : vector<8x1xf32> to vector<8x8xf32>
    %342 = arith.mulf %337, %341 : vector<8x8xf32>
    %cst_120 = arith.constant dense<0.000000e+00> : vector<8x8xf32>
    %343 = tpu.matmul %342, %329, %cst_120 {dimension_numbers = #tpu.dot_dimension_numbers<[1], [0], [0], [1], [0, 0, 1, 1], [], []>} : vector<8x8xf32>, vector<8x8xf32>, vector<8x8xf32> -> vector<8x8xf32>
    %344 = vector.extract_strided_slice %290 {offsets = [0, 24], sizes = [8, 8], strides = [1, 1]} : vector<8x32xf32> to vector<8x8xf32>
    %345 = vector.extract_strided_slice %291 {offsets = [0, 24], sizes = [8, 8], strides = [1, 1]} : vector<8x32xf32> to vector<8x8xf32>
    %346 = vector.extract_strided_slice %292 {offsets = [0, 24], sizes = [8, 8], strides = [1, 1]} : vector<8x32xf32> to vector<8x8xf32>
    %cst_121 = arith.constant dense<0.000000e+00> : vector<8x8xf32>
    %347 = tpu.matmul %344, %345, %cst_121 {dimension_numbers = #tpu.dot_dimension_numbers<[1], [1], [0], [0], [0, 0, 1, 0], [], []>} : vector<8x8xf32>, vector<8x8xf32>, vector<8x8xf32> -> vector<8x8xf32>
    %cst_122 = arith.constant 0.353553385 : f32
    %348 = vector.broadcast %cst_122 : f32 to vector<8x8xf32>
    %349 = arith.mulf %347, %348 : vector<8x8xf32>
    %cst_123 = arith.constant dense<0xFF800000> : vector<8xf32>
    %350 = vector.multi_reduction <maximumf>, %349, %cst_123 [1] : vector<8x8xf32> to vector<8xf32>
    %351 = vector.shape_cast %350 : vector<8xf32> to vector<8x1xf32>
    %352 = vector.broadcast %351 : vector<8x1xf32> to vector<8x8xf32>
    %353 = arith.subf %349, %352 : vector<8x8xf32>
    %354 = math.exp %353 : vector<8x8xf32>
    %cst_124 = arith.constant dense<0.000000e+00> : vector<8xf32>
    %355 = vector.multi_reduction <add>, %354, %cst_124 [1] : vector<8x8xf32> to vector<8xf32>
    %356 = vector.shape_cast %355 : vector<8xf32> to vector<8x1xf32>
    %357 = tpu.reciprocal %356 {approx = true} : vector<8x1xf32> -> vector<8x1xf32>
    %358 = vector.broadcast %357 : vector<8x1xf32> to vector<8x8xf32>
    %359 = arith.mulf %354, %358 : vector<8x8xf32>
    %cst_125 = arith.constant dense<0.000000e+00> : vector<8x8xf32>
    %360 = tpu.matmul %359, %346, %cst_125 {dimension_numbers = #tpu.dot_dimension_numbers<[1], [0], [0], [1], [0, 0, 1, 1], [], []>} : vector<8x8xf32>, vector<8x8xf32>, vector<8x8xf32> -> vector<8x8xf32>
    %361 = tpu.concatenate %309, %326, %343, %360 in 1 : vector<8x8xf32>, vector<8x8xf32>, vector<8x8xf32>, vector<8x8xf32> -> vector<8x32xf32>
    %362 = tpu.concatenate %289, %361 in 0 : vector<8x32xf32>, vector<8x32xf32> -> vector<16x32xf32>
    %cst_126 = arith.constant dense<0.000000e+00> : vector<16x32xf32>
    %363 = tpu.matmul %362, %203, %cst_126 {dimension_numbers = #tpu.dot_dimension_numbers<[1], [0], [0], [1], [0, 0, 1, 1], [], []>} : vector<16x32xf32>, vector<32x32xf32>, vector<16x32xf32> -> vector<16x32xf32>
    %364 = vector.broadcast %205 : vector<1x32xf32> to vector<16x32xf32>
    %365 = arith.addf %363, %364 : vector<16x32xf32>
    %c0_127 = arith.constant 0 : index
    %c0_128 = arith.constant 0 : index
    %c0_129 = arith.constant 0 : index
    %366 = vector.load %arg19[%c0_127, %c0_128, %c0_129] : memref<2x1x32xf32, #tpu.memory_space<vmem>>, vector<1x1x32xf32>
    %367 = vector.shape_cast %366 : vector<1x1x32xf32> to vector<1x32xf32>
    %c0_130 = arith.constant 0 : index
    %c0_131 = arith.constant 0 : index
    %c0_132 = arith.constant 0 : index
    %368 = vector.load %arg20[%c0_130, %c0_131, %c0_132] : memref<2x1x32xf32, #tpu.memory_space<vmem>>, vector<1x1x32xf32>
    %369 = vector.shape_cast %368 : vector<1x1x32xf32> to vector<1x32xf32>
    %370 = arith.addf %197, %365 : vector<16x32xf32>
    %cst_133 = arith.constant dense<0.000000e+00> : vector<16xf32>
    %371 = vector.multi_reduction <add>, %370, %cst_133 [1] : vector<16x32xf32> to vector<16xf32>
    %372 = vector.shape_cast %371 : vector<16xf32> to vector<16x1xf32>
    %cst_134 = arith.constant 3.200000e+01 : f32
    %373 = vector.broadcast %cst_134 : f32 to vector<16x1xf32>
    %374 = arith.divf %372, %373 : vector<16x1xf32>
    %375 = vector.broadcast %374 : vector<16x1xf32> to vector<16x32xf32>
    %376 = arith.subf %370, %375 : vector<16x32xf32>
    %377 = vector.broadcast %374 : vector<16x1xf32> to vector<16x32xf32>
    %378 = arith.subf %370, %377 : vector<16x32xf32>
    %379 = arith.mulf %376, %378 : vector<16x32xf32>
    %cst_135 = arith.constant dense<0.000000e+00> : vector<16xf32>
    %380 = vector.multi_reduction <add>, %379, %cst_135 [1] : vector<16x32xf32> to vector<16xf32>
    %381 = vector.shape_cast %380 : vector<16xf32> to vector<16x1xf32>
    %cst_136 = arith.constant 3.200000e+01 : f32
    %382 = vector.broadcast %cst_136 : f32 to vector<16x1xf32>
    %383 = arith.divf %381, %382 : vector<16x1xf32>
    %384 = vector.broadcast %374 : vector<16x1xf32> to vector<16x32xf32>
    %385 = arith.subf %370, %384 : vector<16x32xf32>
    %cst_137 = arith.constant 9.99999974E-6 : f32
    %386 = vector.broadcast %cst_137 : f32 to vector<16x1xf32>
    %387 = arith.addf %383, %386 : vector<16x1xf32>
    %388 = math.rsqrt %387 : vector<16x1xf32>
    %389 = vector.broadcast %388 : vector<16x1xf32> to vector<16x32xf32>
    %390 = arith.mulf %385, %389 : vector<16x32xf32>
    %391 = vector.broadcast %367 : vector<1x32xf32> to vector<16x32xf32>
    %392 = arith.mulf %390, %391 : vector<16x32xf32>
    %393 = vector.broadcast %369 : vector<1x32xf32> to vector<16x32xf32>
    %394 = arith.addf %392, %393 : vector<16x32xf32>
    %c0_138 = arith.constant 0 : index
    %c0_139 = arith.constant 0 : index
    %c0_140 = arith.constant 0 : index
    %395 = vector.load %arg13[%c0_138, %c0_139, %c0_140] : memref<2x32x64xf32, #tpu.memory_space<vmem>>, vector<1x32x64xf32>
    %396 = vector.shape_cast %395 : vector<1x32x64xf32> to vector<32x64xf32>
    %cst_141 = arith.constant dense<0.000000e+00> : vector<16x64xf32>
    %397 = tpu.matmul %394, %396, %cst_141 {dimension_numbers = #tpu.dot_dimension_numbers<[1], [0], [0], [1], [0, 0, 1, 1], [], []>} : vector<16x32xf32>, vector<32x64xf32>, vector<16x64xf32> -> vector<16x64xf32>
    %c0_142 = arith.constant 0 : index
    %c0_143 = arith.constant 0 : index
    %c0_144 = arith.constant 0 : index
    %398 = vector.load %arg14[%c0_142, %c0_143, %c0_144] : memref<2x1x64xf32, #tpu.memory_space<vmem>>, vector<1x1x64xf32>
    %399 = vector.shape_cast %398 : vector<1x1x64xf32> to vector<1x64xf32>
    %400 = vector.broadcast %399 : vector<1x64xf32> to vector<16x64xf32>
    %401 = arith.addf %397, %400 : vector<16x64xf32>
    %cst_145 = arith.constant 0.000000e+00 : f32
    %402 = vector.broadcast %cst_145 : f32 to vector<16x64xf32>
    %403 = arith.maximumf %401, %402 : vector<16x64xf32>
    %c0_146 = arith.constant 0 : index
    %c0_147 = arith.constant 0 : index
    %c0_148 = arith.constant 0 : index
    %404 = vector.load %arg15[%c0_146, %c0_147, %c0_148] : memref<2x64x32xf32, #tpu.memory_space<vmem>>, vector<1x64x32xf32>
    %405 = vector.shape_cast %404 : vector<1x64x32xf32> to vector<64x32xf32>
    %cst_149 = arith.constant dense<0.000000e+00> : vector<16x32xf32>
    %406 = tpu.matmul %403, %405, %cst_149 {dimension_numbers = #tpu.dot_dimension_numbers<[1], [0], [0], [1], [0, 0, 1, 1], [], []>} : vector<16x64xf32>, vector<64x32xf32>, vector<16x32xf32> -> vector<16x32xf32>
    %c0_150 = arith.constant 0 : index
    %c0_151 = arith.constant 0 : index
    %c0_152 = arith.constant 0 : index
    %407 = vector.load %arg16[%c0_150, %c0_151, %c0_152] : memref<2x1x32xf32, #tpu.memory_space<vmem>>, vector<1x1x32xf32>
    %408 = vector.shape_cast %407 : vector<1x1x32xf32> to vector<1x32xf32>
    %409 = vector.broadcast %408 : vector<1x32xf32> to vector<16x32xf32>
    %410 = arith.addf %406, %409 : vector<16x32xf32>
    %c0_153 = arith.constant 0 : index
    %c0_154 = arith.constant 0 : index
    %c0_155 = arith.constant 0 : index
    %411 = vector.load %arg21[%c0_153, %c0_154, %c0_155] : memref<2x1x32xf32, #tpu.memory_space<vmem>>, vector<1x1x32xf32>
    %412 = vector.shape_cast %411 : vector<1x1x32xf32> to vector<1x32xf32>
    %c0_156 = arith.constant 0 : index
    %c0_157 = arith.constant 0 : index
    %c0_158 = arith.constant 0 : index
    %413 = vector.load %arg22[%c0_156, %c0_157, %c0_158] : memref<2x1x32xf32, #tpu.memory_space<vmem>>, vector<1x1x32xf32>
    %414 = vector.shape_cast %413 : vector<1x1x32xf32> to vector<1x32xf32>
    %415 = arith.addf %394, %410 : vector<16x32xf32>
    %cst_159 = arith.constant dense<0.000000e+00> : vector<16xf32>
    %416 = vector.multi_reduction <add>, %415, %cst_159 [1] : vector<16x32xf32> to vector<16xf32>
    %417 = vector.shape_cast %416 : vector<16xf32> to vector<16x1xf32>
    %cst_160 = arith.constant 3.200000e+01 : f32
    %418 = vector.broadcast %cst_160 : f32 to vector<16x1xf32>
    %419 = arith.divf %417, %418 : vector<16x1xf32>
    %420 = vector.broadcast %419 : vector<16x1xf32> to vector<16x32xf32>
    %421 = arith.subf %415, %420 : vector<16x32xf32>
    %422 = vector.broadcast %419 : vector<16x1xf32> to vector<16x32xf32>
    %423 = arith.subf %415, %422 : vector<16x32xf32>
    %424 = arith.mulf %421, %423 : vector<16x32xf32>
    %cst_161 = arith.constant dense<0.000000e+00> : vector<16xf32>
    %425 = vector.multi_reduction <add>, %424, %cst_161 [1] : vector<16x32xf32> to vector<16xf32>
    %426 = vector.shape_cast %425 : vector<16xf32> to vector<16x1xf32>
    %cst_162 = arith.constant 3.200000e+01 : f32
    %427 = vector.broadcast %cst_162 : f32 to vector<16x1xf32>
    %428 = arith.divf %426, %427 : vector<16x1xf32>
    %429 = vector.broadcast %419 : vector<16x1xf32> to vector<16x32xf32>
    %430 = arith.subf %415, %429 : vector<16x32xf32>
    %cst_163 = arith.constant 9.99999974E-6 : f32
    %431 = vector.broadcast %cst_163 : f32 to vector<16x1xf32>
    %432 = arith.addf %428, %431 : vector<16x1xf32>
    %433 = math.rsqrt %432 : vector<16x1xf32>
    %434 = vector.broadcast %433 : vector<16x1xf32> to vector<16x32xf32>
    %435 = arith.mulf %430, %434 : vector<16x32xf32>
    %436 = vector.broadcast %412 : vector<1x32xf32> to vector<16x32xf32>
    %437 = arith.mulf %435, %436 : vector<16x32xf32>
    %438 = vector.broadcast %414 : vector<1x32xf32> to vector<16x32xf32>
    %439 = arith.addf %437, %438 : vector<16x32xf32>
    %c1 = arith.constant 1 : index
    %c0_164 = arith.constant 0 : index
    %c0_165 = arith.constant 0 : index
    %440 = vector.load %arg5[%c1, %c0_164, %c0_165] : memref<2x32x96xf32, #tpu.memory_space<vmem>>, vector<1x32x96xf32>
    %441 = vector.shape_cast %440 : vector<1x32x96xf32> to vector<32x96xf32>
    %c1_166 = arith.constant 1 : index
    %c0_167 = arith.constant 0 : index
    %c0_168 = arith.constant 0 : index
    %442 = vector.load %arg6[%c1_166, %c0_167, %c0_168] : memref<2x1x96xf32, #tpu.memory_space<vmem>>, vector<1x1x96xf32>
    %443 = vector.shape_cast %442 : vector<1x1x96xf32> to vector<1x96xf32>
    %c1_169 = arith.constant 1 : index
    %c0_170 = arith.constant 0 : index
    %c0_171 = arith.constant 0 : index
    %444 = vector.load %arg7[%c1_169, %c0_170, %c0_171] : memref<2x32x32xf32, #tpu.memory_space<vmem>>, vector<1x32x32xf32>
    %445 = vector.shape_cast %444 : vector<1x32x32xf32> to vector<32x32xf32>
    %c1_172 = arith.constant 1 : index
    %c0_173 = arith.constant 0 : index
    %c0_174 = arith.constant 0 : index
    %446 = vector.load %arg8[%c1_172, %c0_173, %c0_174] : memref<2x1x32xf32, #tpu.memory_space<vmem>>, vector<1x1x32xf32>
    %447 = vector.shape_cast %446 : vector<1x1x32xf32> to vector<1x32xf32>
    %cst_175 = arith.constant dense<0.000000e+00> : vector<16x96xf32>
    %448 = tpu.matmul %439, %441, %cst_175 {dimension_numbers = #tpu.dot_dimension_numbers<[1], [0], [0], [1], [0, 0, 1, 1], [], []>} : vector<16x32xf32>, vector<32x96xf32>, vector<16x96xf32> -> vector<16x96xf32>
    %449 = vector.broadcast %443 : vector<1x96xf32> to vector<16x96xf32>
    %450 = arith.addf %448, %449 : vector<16x96xf32>
    %451 = vector.extract_strided_slice %450 {offsets = [0, 0], sizes = [16, 32], strides = [1, 1]} : vector<16x96xf32> to vector<16x32xf32>
    %452 = vector.extract_strided_slice %450 {offsets = [0, 32], sizes = [16, 32], strides = [1, 1]} : vector<16x96xf32> to vector<16x32xf32>
    %453 = vector.extract_strided_slice %450 {offsets = [0, 64], sizes = [16, 32], strides = [1, 1]} : vector<16x96xf32> to vector<16x32xf32>
    %454 = vector.extract_strided_slice %451 {offsets = [0, 0], sizes = [8, 32], strides = [1, 1]} : vector<16x32xf32> to vector<8x32xf32>
    %455 = vector.extract_strided_slice %452 {offsets = [0, 0], sizes = [8, 32], strides = [1, 1]} : vector<16x32xf32> to vector<8x32xf32>
    %456 = vector.extract_strided_slice %453 {offsets = [0, 0], sizes = [8, 32], strides = [1, 1]} : vector<16x32xf32> to vector<8x32xf32>
    %457 = vector.extract_strided_slice %454 {offsets = [0, 0], sizes = [8, 8], strides = [1, 1]} : vector<8x32xf32> to vector<8x8xf32>
    %458 = vector.extract_strided_slice %455 {offsets = [0, 0], sizes = [8, 8], strides = [1, 1]} : vector<8x32xf32> to vector<8x8xf32>
    %459 = vector.extract_strided_slice %456 {offsets = [0, 0], sizes = [8, 8], strides = [1, 1]} : vector<8x32xf32> to vector<8x8xf32>
    %cst_176 = arith.constant dense<0.000000e+00> : vector<8x8xf32>
    %460 = tpu.matmul %457, %458, %cst_176 {dimension_numbers = #tpu.dot_dimension_numbers<[1], [1], [0], [0], [0, 0, 1, 0], [], []>} : vector<8x8xf32>, vector<8x8xf32>, vector<8x8xf32> -> vector<8x8xf32>
    %cst_177 = arith.constant 0.353553385 : f32
    %461 = vector.broadcast %cst_177 : f32 to vector<8x8xf32>
    %462 = arith.mulf %460, %461 : vector<8x8xf32>
    %cst_178 = arith.constant dense<0xFF800000> : vector<8xf32>
    %463 = vector.multi_reduction <maximumf>, %462, %cst_178 [1] : vector<8x8xf32> to vector<8xf32>
    %464 = vector.shape_cast %463 : vector<8xf32> to vector<8x1xf32>
    %465 = vector.broadcast %464 : vector<8x1xf32> to vector<8x8xf32>
    %466 = arith.subf %462, %465 : vector<8x8xf32>
    %467 = math.exp %466 : vector<8x8xf32>
    %cst_179 = arith.constant dense<0.000000e+00> : vector<8xf32>
    %468 = vector.multi_reduction <add>, %467, %cst_179 [1] : vector<8x8xf32> to vector<8xf32>
    %469 = vector.shape_cast %468 : vector<8xf32> to vector<8x1xf32>
    %470 = tpu.reciprocal %469 {approx = true} : vector<8x1xf32> -> vector<8x1xf32>
    %471 = vector.broadcast %470 : vector<8x1xf32> to vector<8x8xf32>
    %472 = arith.mulf %467, %471 : vector<8x8xf32>
    %cst_180 = arith.constant dense<0.000000e+00> : vector<8x8xf32>
    %473 = tpu.matmul %472, %459, %cst_180 {dimension_numbers = #tpu.dot_dimension_numbers<[1], [0], [0], [1], [0, 0, 1, 1], [], []>} : vector<8x8xf32>, vector<8x8xf32>, vector<8x8xf32> -> vector<8x8xf32>
    %474 = vector.extract_strided_slice %454 {offsets = [0, 8], sizes = [8, 8], strides = [1, 1]} : vector<8x32xf32> to vector<8x8xf32>
    %475 = vector.extract_strided_slice %455 {offsets = [0, 8], sizes = [8, 8], strides = [1, 1]} : vector<8x32xf32> to vector<8x8xf32>
    %476 = vector.extract_strided_slice %456 {offsets = [0, 8], sizes = [8, 8], strides = [1, 1]} : vector<8x32xf32> to vector<8x8xf32>
    %cst_181 = arith.constant dense<0.000000e+00> : vector<8x8xf32>
    %477 = tpu.matmul %474, %475, %cst_181 {dimension_numbers = #tpu.dot_dimension_numbers<[1], [1], [0], [0], [0, 0, 1, 0], [], []>} : vector<8x8xf32>, vector<8x8xf32>, vector<8x8xf32> -> vector<8x8xf32>
    %cst_182 = arith.constant 0.353553385 : f32
    %478 = vector.broadcast %cst_182 : f32 to vector<8x8xf32>
    %479 = arith.mulf %477, %478 : vector<8x8xf32>
    %cst_183 = arith.constant dense<0xFF800000> : vector<8xf32>
    %480 = vector.multi_reduction <maximumf>, %479, %cst_183 [1] : vector<8x8xf32> to vector<8xf32>
    %481 = vector.shape_cast %480 : vector<8xf32> to vector<8x1xf32>
    %482 = vector.broadcast %481 : vector<8x1xf32> to vector<8x8xf32>
    %483 = arith.subf %479, %482 : vector<8x8xf32>
    %484 = math.exp %483 : vector<8x8xf32>
    %cst_184 = arith.constant dense<0.000000e+00> : vector<8xf32>
    %485 = vector.multi_reduction <add>, %484, %cst_184 [1] : vector<8x8xf32> to vector<8xf32>
    %486 = vector.shape_cast %485 : vector<8xf32> to vector<8x1xf32>
    %487 = tpu.reciprocal %486 {approx = true} : vector<8x1xf32> -> vector<8x1xf32>
    %488 = vector.broadcast %487 : vector<8x1xf32> to vector<8x8xf32>
    %489 = arith.mulf %484, %488 : vector<8x8xf32>
    %cst_185 = arith.constant dense<0.000000e+00> : vector<8x8xf32>
    %490 = tpu.matmul %489, %476, %cst_185 {dimension_numbers = #tpu.dot_dimension_numbers<[1], [0], [0], [1], [0, 0, 1, 1], [], []>} : vector<8x8xf32>, vector<8x8xf32>, vector<8x8xf32> -> vector<8x8xf32>
    %491 = vector.extract_strided_slice %454 {offsets = [0, 16], sizes = [8, 8], strides = [1, 1]} : vector<8x32xf32> to vector<8x8xf32>
    %492 = vector.extract_strided_slice %455 {offsets = [0, 16], sizes = [8, 8], strides = [1, 1]} : vector<8x32xf32> to vector<8x8xf32>
    %493 = vector.extract_strided_slice %456 {offsets = [0, 16], sizes = [8, 8], strides = [1, 1]} : vector<8x32xf32> to vector<8x8xf32>
    %cst_186 = arith.constant dense<0.000000e+00> : vector<8x8xf32>
    %494 = tpu.matmul %491, %492, %cst_186 {dimension_numbers = #tpu.dot_dimension_numbers<[1], [1], [0], [0], [0, 0, 1, 0], [], []>} : vector<8x8xf32>, vector<8x8xf32>, vector<8x8xf32> -> vector<8x8xf32>
    %cst_187 = arith.constant 0.353553385 : f32
    %495 = vector.broadcast %cst_187 : f32 to vector<8x8xf32>
    %496 = arith.mulf %494, %495 : vector<8x8xf32>
    %cst_188 = arith.constant dense<0xFF800000> : vector<8xf32>
    %497 = vector.multi_reduction <maximumf>, %496, %cst_188 [1] : vector<8x8xf32> to vector<8xf32>
    %498 = vector.shape_cast %497 : vector<8xf32> to vector<8x1xf32>
    %499 = vector.broadcast %498 : vector<8x1xf32> to vector<8x8xf32>
    %500 = arith.subf %496, %499 : vector<8x8xf32>
    %501 = math.exp %500 : vector<8x8xf32>
    %cst_189 = arith.constant dense<0.000000e+00> : vector<8xf32>
    %502 = vector.multi_reduction <add>, %501, %cst_189 [1] : vector<8x8xf32> to vector<8xf32>
    %503 = vector.shape_cast %502 : vector<8xf32> to vector<8x1xf32>
    %504 = tpu.reciprocal %503 {approx = true} : vector<8x1xf32> -> vector<8x1xf32>
    %505 = vector.broadcast %504 : vector<8x1xf32> to vector<8x8xf32>
    %506 = arith.mulf %501, %505 : vector<8x8xf32>
    %cst_190 = arith.constant dense<0.000000e+00> : vector<8x8xf32>
    %507 = tpu.matmul %506, %493, %cst_190 {dimension_numbers = #tpu.dot_dimension_numbers<[1], [0], [0], [1], [0, 0, 1, 1], [], []>} : vector<8x8xf32>, vector<8x8xf32>, vector<8x8xf32> -> vector<8x8xf32>
    %508 = vector.extract_strided_slice %454 {offsets = [0, 24], sizes = [8, 8], strides = [1, 1]} : vector<8x32xf32> to vector<8x8xf32>
    %509 = vector.extract_strided_slice %455 {offsets = [0, 24], sizes = [8, 8], strides = [1, 1]} : vector<8x32xf32> to vector<8x8xf32>
    %510 = vector.extract_strided_slice %456 {offsets = [0, 24], sizes = [8, 8], strides = [1, 1]} : vector<8x32xf32> to vector<8x8xf32>
    %cst_191 = arith.constant dense<0.000000e+00> : vector<8x8xf32>
    %511 = tpu.matmul %508, %509, %cst_191 {dimension_numbers = #tpu.dot_dimension_numbers<[1], [1], [0], [0], [0, 0, 1, 0], [], []>} : vector<8x8xf32>, vector<8x8xf32>, vector<8x8xf32> -> vector<8x8xf32>
    %cst_192 = arith.constant 0.353553385 : f32
    %512 = vector.broadcast %cst_192 : f32 to vector<8x8xf32>
    %513 = arith.mulf %511, %512 : vector<8x8xf32>
    %cst_193 = arith.constant dense<0xFF800000> : vector<8xf32>
    %514 = vector.multi_reduction <maximumf>, %513, %cst_193 [1] : vector<8x8xf32> to vector<8xf32>
    %515 = vector.shape_cast %514 : vector<8xf32> to vector<8x1xf32>
    %516 = vector.broadcast %515 : vector<8x1xf32> to vector<8x8xf32>
    %517 = arith.subf %513, %516 : vector<8x8xf32>
    %518 = math.exp %517 : vector<8x8xf32>
    %cst_194 = arith.constant dense<0.000000e+00> : vector<8xf32>
    %519 = vector.multi_reduction <add>, %518, %cst_194 [1] : vector<8x8xf32> to vector<8xf32>
    %520 = vector.shape_cast %519 : vector<8xf32> to vector<8x1xf32>
    %521 = tpu.reciprocal %520 {approx = true} : vector<8x1xf32> -> vector<8x1xf32>
    %522 = vector.broadcast %521 : vector<8x1xf32> to vector<8x8xf32>
    %523 = arith.mulf %518, %522 : vector<8x8xf32>
    %cst_195 = arith.constant dense<0.000000e+00> : vector<8x8xf32>
    %524 = tpu.matmul %523, %510, %cst_195 {dimension_numbers = #tpu.dot_dimension_numbers<[1], [0], [0], [1], [0, 0, 1, 1], [], []>} : vector<8x8xf32>, vector<8x8xf32>, vector<8x8xf32> -> vector<8x8xf32>
    %525 = tpu.concatenate %473, %490, %507, %524 in 1 : vector<8x8xf32>, vector<8x8xf32>, vector<8x8xf32>, vector<8x8xf32> -> vector<8x32xf32>
    %526 = vector.extract_strided_slice %451 {offsets = [8, 0], sizes = [8, 32], strides = [1, 1]} : vector<16x32xf32> to vector<8x32xf32>
    %527 = vector.extract_strided_slice %452 {offsets = [8, 0], sizes = [8, 32], strides = [1, 1]} : vector<16x32xf32> to vector<8x32xf32>
    %528 = vector.extract_strided_slice %453 {offsets = [8, 0], sizes = [8, 32], strides = [1, 1]} : vector<16x32xf32> to vector<8x32xf32>
    %529 = vector.extract_strided_slice %526 {offsets = [0, 0], sizes = [8, 8], strides = [1, 1]} : vector<8x32xf32> to vector<8x8xf32>
    %530 = vector.extract_strided_slice %527 {offsets = [0, 0], sizes = [8, 8], strides = [1, 1]} : vector<8x32xf32> to vector<8x8xf32>
    %531 = vector.extract_strided_slice %528 {offsets = [0, 0], sizes = [8, 8], strides = [1, 1]} : vector<8x32xf32> to vector<8x8xf32>
    %cst_196 = arith.constant dense<0.000000e+00> : vector<8x8xf32>
    %532 = tpu.matmul %529, %530, %cst_196 {dimension_numbers = #tpu.dot_dimension_numbers<[1], [1], [0], [0], [0, 0, 1, 0], [], []>} : vector<8x8xf32>, vector<8x8xf32>, vector<8x8xf32> -> vector<8x8xf32>
    %cst_197 = arith.constant 0.353553385 : f32
    %533 = vector.broadcast %cst_197 : f32 to vector<8x8xf32>
    %534 = arith.mulf %532, %533 : vector<8x8xf32>
    %cst_198 = arith.constant dense<0xFF800000> : vector<8xf32>
    %535 = vector.multi_reduction <maximumf>, %534, %cst_198 [1] : vector<8x8xf32> to vector<8xf32>
    %536 = vector.shape_cast %535 : vector<8xf32> to vector<8x1xf32>
    %537 = vector.broadcast %536 : vector<8x1xf32> to vector<8x8xf32>
    %538 = arith.subf %534, %537 : vector<8x8xf32>
    %539 = math.exp %538 : vector<8x8xf32>
    %cst_199 = arith.constant dense<0.000000e+00> : vector<8xf32>
    %540 = vector.multi_reduction <add>, %539, %cst_199 [1] : vector<8x8xf32> to vector<8xf32>
    %541 = vector.shape_cast %540 : vector<8xf32> to vector<8x1xf32>
    %542 = tpu.reciprocal %541 {approx = true} : vector<8x1xf32> -> vector<8x1xf32>
    %543 = vector.broadcast %542 : vector<8x1xf32> to vector<8x8xf32>
    %544 = arith.mulf %539, %543 : vector<8x8xf32>
    %cst_200 = arith.constant dense<0.000000e+00> : vector<8x8xf32>
    %545 = tpu.matmul %544, %531, %cst_200 {dimension_numbers = #tpu.dot_dimension_numbers<[1], [0], [0], [1], [0, 0, 1, 1], [], []>} : vector<8x8xf32>, vector<8x8xf32>, vector<8x8xf32> -> vector<8x8xf32>
    %546 = vector.extract_strided_slice %526 {offsets = [0, 8], sizes = [8, 8], strides = [1, 1]} : vector<8x32xf32> to vector<8x8xf32>
    %547 = vector.extract_strided_slice %527 {offsets = [0, 8], sizes = [8, 8], strides = [1, 1]} : vector<8x32xf32> to vector<8x8xf32>
    %548 = vector.extract_strided_slice %528 {offsets = [0, 8], sizes = [8, 8], strides = [1, 1]} : vector<8x32xf32> to vector<8x8xf32>
    %cst_201 = arith.constant dense<0.000000e+00> : vector<8x8xf32>
    %549 = tpu.matmul %546, %547, %cst_201 {dimension_numbers = #tpu.dot_dimension_numbers<[1], [1], [0], [0], [0, 0, 1, 0], [], []>} : vector<8x8xf32>, vector<8x8xf32>, vector<8x8xf32> -> vector<8x8xf32>
    %cst_202 = arith.constant 0.353553385 : f32
    %550 = vector.broadcast %cst_202 : f32 to vector<8x8xf32>
    %551 = arith.mulf %549, %550 : vector<8x8xf32>
    %cst_203 = arith.constant dense<0xFF800000> : vector<8xf32>
    %552 = vector.multi_reduction <maximumf>, %551, %cst_203 [1] : vector<8x8xf32> to vector<8xf32>
    %553 = vector.shape_cast %552 : vector<8xf32> to vector<8x1xf32>
    %554 = vector.broadcast %553 : vector<8x1xf32> to vector<8x8xf32>
    %555 = arith.subf %551, %554 : vector<8x8xf32>
    %556 = math.exp %555 : vector<8x8xf32>
    %cst_204 = arith.constant dense<0.000000e+00> : vector<8xf32>
    %557 = vector.multi_reduction <add>, %556, %cst_204 [1] : vector<8x8xf32> to vector<8xf32>
    %558 = vector.shape_cast %557 : vector<8xf32> to vector<8x1xf32>
    %559 = tpu.reciprocal %558 {approx = true} : vector<8x1xf32> -> vector<8x1xf32>
    %560 = vector.broadcast %559 : vector<8x1xf32> to vector<8x8xf32>
    %561 = arith.mulf %556, %560 : vector<8x8xf32>
    %cst_205 = arith.constant dense<0.000000e+00> : vector<8x8xf32>
    %562 = tpu.matmul %561, %548, %cst_205 {dimension_numbers = #tpu.dot_dimension_numbers<[1], [0], [0], [1], [0, 0, 1, 1], [], []>} : vector<8x8xf32>, vector<8x8xf32>, vector<8x8xf32> -> vector<8x8xf32>
    %563 = vector.extract_strided_slice %526 {offsets = [0, 16], sizes = [8, 8], strides = [1, 1]} : vector<8x32xf32> to vector<8x8xf32>
    %564 = vector.extract_strided_slice %527 {offsets = [0, 16], sizes = [8, 8], strides = [1, 1]} : vector<8x32xf32> to vector<8x8xf32>
    %565 = vector.extract_strided_slice %528 {offsets = [0, 16], sizes = [8, 8], strides = [1, 1]} : vector<8x32xf32> to vector<8x8xf32>
    %cst_206 = arith.constant dense<0.000000e+00> : vector<8x8xf32>
    %566 = tpu.matmul %563, %564, %cst_206 {dimension_numbers = #tpu.dot_dimension_numbers<[1], [1], [0], [0], [0, 0, 1, 0], [], []>} : vector<8x8xf32>, vector<8x8xf32>, vector<8x8xf32> -> vector<8x8xf32>
    %cst_207 = arith.constant 0.353553385 : f32
    %567 = vector.broadcast %cst_207 : f32 to vector<8x8xf32>
    %568 = arith.mulf %566, %567 : vector<8x8xf32>
    %cst_208 = arith.constant dense<0xFF800000> : vector<8xf32>
    %569 = vector.multi_reduction <maximumf>, %568, %cst_208 [1] : vector<8x8xf32> to vector<8xf32>
    %570 = vector.shape_cast %569 : vector<8xf32> to vector<8x1xf32>
    %571 = vector.broadcast %570 : vector<8x1xf32> to vector<8x8xf32>
    %572 = arith.subf %568, %571 : vector<8x8xf32>
    %573 = math.exp %572 : vector<8x8xf32>
    %cst_209 = arith.constant dense<0.000000e+00> : vector<8xf32>
    %574 = vector.multi_reduction <add>, %573, %cst_209 [1] : vector<8x8xf32> to vector<8xf32>
    %575 = vector.shape_cast %574 : vector<8xf32> to vector<8x1xf32>
    %576 = tpu.reciprocal %575 {approx = true} : vector<8x1xf32> -> vector<8x1xf32>
    %577 = vector.broadcast %576 : vector<8x1xf32> to vector<8x8xf32>
    %578 = arith.mulf %573, %577 : vector<8x8xf32>
    %cst_210 = arith.constant dense<0.000000e+00> : vector<8x8xf32>
    %579 = tpu.matmul %578, %565, %cst_210 {dimension_numbers = #tpu.dot_dimension_numbers<[1], [0], [0], [1], [0, 0, 1, 1], [], []>} : vector<8x8xf32>, vector<8x8xf32>, vector<8x8xf32> -> vector<8x8xf32>
    %580 = vector.extract_strided_slice %526 {offsets = [0, 24], sizes = [8, 8], strides = [1, 1]} : vector<8x32xf32> to vector<8x8xf32>
    %581 = vector.extract_strided_slice %527 {offsets = [0, 24], sizes = [8, 8], strides = [1, 1]} : vector<8x32xf32> to vector<8x8xf32>
    %582 = vector.extract_strided_slice %528 {offsets = [0, 24], sizes = [8, 8], strides = [1, 1]} : vector<8x32xf32> to vector<8x8xf32>
    %cst_211 = arith.constant dense<0.000000e+00> : vector<8x8xf32>
    %583 = tpu.matmul %580, %581, %cst_211 {dimension_numbers = #tpu.dot_dimension_numbers<[1], [1], [0], [0], [0, 0, 1, 0], [], []>} : vector<8x8xf32>, vector<8x8xf32>, vector<8x8xf32> -> vector<8x8xf32>
    %cst_212 = arith.constant 0.353553385 : f32
    %584 = vector.broadcast %cst_212 : f32 to vector<8x8xf32>
    %585 = arith.mulf %583, %584 : vector<8x8xf32>
    %cst_213 = arith.constant dense<0xFF800000> : vector<8xf32>
    %586 = vector.multi_reduction <maximumf>, %585, %cst_213 [1] : vector<8x8xf32> to vector<8xf32>
    %587 = vector.shape_cast %586 : vector<8xf32> to vector<8x1xf32>
    %588 = vector.broadcast %587 : vector<8x1xf32> to vector<8x8xf32>
    %589 = arith.subf %585, %588 : vector<8x8xf32>
    %590 = math.exp %589 : vector<8x8xf32>
    %cst_214 = arith.constant dense<0.000000e+00> : vector<8xf32>
    %591 = vector.multi_reduction <add>, %590, %cst_214 [1] : vector<8x8xf32> to vector<8xf32>
    %592 = vector.shape_cast %591 : vector<8xf32> to vector<8x1xf32>
    %593 = tpu.reciprocal %592 {approx = true} : vector<8x1xf32> -> vector<8x1xf32>
    %594 = vector.broadcast %593 : vector<8x1xf32> to vector<8x8xf32>
    %595 = arith.mulf %590, %594 : vector<8x8xf32>
    %cst_215 = arith.constant dense<0.000000e+00> : vector<8x8xf32>
    %596 = tpu.matmul %595, %582, %cst_215 {dimension_numbers = #tpu.dot_dimension_numbers<[1], [0], [0], [1], [0, 0, 1, 1], [], []>} : vector<8x8xf32>, vector<8x8xf32>, vector<8x8xf32> -> vector<8x8xf32>
    %597 = tpu.concatenate %545, %562, %579, %596 in 1 : vector<8x8xf32>, vector<8x8xf32>, vector<8x8xf32>, vector<8x8xf32> -> vector<8x32xf32>
    %598 = tpu.concatenate %525, %597 in 0 : vector<8x32xf32>, vector<8x32xf32> -> vector<16x32xf32>
    %cst_216 = arith.constant dense<0.000000e+00> : vector<16x32xf32>
    %599 = tpu.matmul %598, %445, %cst_216 {dimension_numbers = #tpu.dot_dimension_numbers<[1], [0], [0], [1], [0, 0, 1, 1], [], []>} : vector<16x32xf32>, vector<32x32xf32>, vector<16x32xf32> -> vector<16x32xf32>
    %600 = vector.broadcast %447 : vector<1x32xf32> to vector<16x32xf32>
    %601 = arith.addf %599, %600 : vector<16x32xf32>
    %c1_217 = arith.constant 1 : index
    %c0_218 = arith.constant 0 : index
    %c0_219 = arith.constant 0 : index
    %602 = vector.load %arg17[%c1_217, %c0_218, %c0_219] : memref<2x1x32xf32, #tpu.memory_space<vmem>>, vector<1x1x32xf32>
    %603 = vector.shape_cast %602 : vector<1x1x32xf32> to vector<1x32xf32>
    %c1_220 = arith.constant 1 : index
    %c0_221 = arith.constant 0 : index
    %c0_222 = arith.constant 0 : index
    %604 = vector.load %arg18[%c1_220, %c0_221, %c0_222] : memref<2x1x32xf32, #tpu.memory_space<vmem>>, vector<1x1x32xf32>
    %605 = vector.shape_cast %604 : vector<1x1x32xf32> to vector<1x32xf32>
    %606 = arith.addf %439, %601 : vector<16x32xf32>
    %cst_223 = arith.constant dense<0.000000e+00> : vector<16xf32>
    %607 = vector.multi_reduction <add>, %606, %cst_223 [1] : vector<16x32xf32> to vector<16xf32>
    %608 = vector.shape_cast %607 : vector<16xf32> to vector<16x1xf32>
    %cst_224 = arith.constant 3.200000e+01 : f32
    %609 = vector.broadcast %cst_224 : f32 to vector<16x1xf32>
    %610 = arith.divf %608, %609 : vector<16x1xf32>
    %611 = vector.broadcast %610 : vector<16x1xf32> to vector<16x32xf32>
    %612 = arith.subf %606, %611 : vector<16x32xf32>
    %613 = vector.broadcast %610 : vector<16x1xf32> to vector<16x32xf32>
    %614 = arith.subf %606, %613 : vector<16x32xf32>
    %615 = arith.mulf %612, %614 : vector<16x32xf32>
    %cst_225 = arith.constant dense<0.000000e+00> : vector<16xf32>
    %616 = vector.multi_reduction <add>, %615, %cst_225 [1] : vector<16x32xf32> to vector<16xf32>
    %617 = vector.shape_cast %616 : vector<16xf32> to vector<16x1xf32>
    %cst_226 = arith.constant 3.200000e+01 : f32
    %618 = vector.broadcast %cst_226 : f32 to vector<16x1xf32>
    %619 = arith.divf %617, %618 : vector<16x1xf32>
    %620 = vector.broadcast %610 : vector<16x1xf32> to vector<16x32xf32>
    %621 = arith.subf %606, %620 : vector<16x32xf32>
    %cst_227 = arith.constant 9.99999974E-6 : f32
    %622 = vector.broadcast %cst_227 : f32 to vector<16x1xf32>
    %623 = arith.addf %619, %622 : vector<16x1xf32>
    %624 = math.rsqrt %623 : vector<16x1xf32>
    %625 = vector.broadcast %624 : vector<16x1xf32> to vector<16x32xf32>
    %626 = arith.mulf %621, %625 : vector<16x32xf32>
    %627 = vector.broadcast %603 : vector<1x32xf32> to vector<16x32xf32>
    %628 = arith.mulf %626, %627 : vector<16x32xf32>
    %629 = vector.broadcast %605 : vector<1x32xf32> to vector<16x32xf32>
    %630 = arith.addf %628, %629 : vector<16x32xf32>
    %c1_228 = arith.constant 1 : index
    %c0_229 = arith.constant 0 : index
    %c0_230 = arith.constant 0 : index
    %631 = vector.load %arg9[%c1_228, %c0_229, %c0_230] : memref<2x32x96xf32, #tpu.memory_space<vmem>>, vector<1x32x96xf32>
    %632 = vector.shape_cast %631 : vector<1x32x96xf32> to vector<32x96xf32>
    %c1_231 = arith.constant 1 : index
    %c0_232 = arith.constant 0 : index
    %c0_233 = arith.constant 0 : index
    %633 = vector.load %arg10[%c1_231, %c0_232, %c0_233] : memref<2x1x96xf32, #tpu.memory_space<vmem>>, vector<1x1x96xf32>
    %634 = vector.shape_cast %633 : vector<1x1x96xf32> to vector<1x96xf32>
    %c1_234 = arith.constant 1 : index
    %c0_235 = arith.constant 0 : index
    %c0_236 = arith.constant 0 : index
    %635 = vector.load %arg11[%c1_234, %c0_235, %c0_236] : memref<2x32x32xf32, #tpu.memory_space<vmem>>, vector<1x32x32xf32>
    %636 = vector.shape_cast %635 : vector<1x32x32xf32> to vector<32x32xf32>
    %c1_237 = arith.constant 1 : index
    %c0_238 = arith.constant 0 : index
    %c0_239 = arith.constant 0 : index
    %637 = vector.load %arg12[%c1_237, %c0_238, %c0_239] : memref<2x1x32xf32, #tpu.memory_space<vmem>>, vector<1x1x32xf32>
    %638 = vector.shape_cast %637 : vector<1x1x32xf32> to vector<1x32xf32>
    %639 = vector.extract_strided_slice %632 {offsets = [0, 0], sizes = [32, 32], strides = [1, 1]} : vector<32x96xf32> to vector<32x32xf32>
    %cst_240 = arith.constant dense<0.000000e+00> : vector<16x32xf32>
    %640 = tpu.matmul %630, %639, %cst_240 {dimension_numbers = #tpu.dot_dimension_numbers<[1], [0], [0], [1], [0, 0, 1, 1], [], []>} : vector<16x32xf32>, vector<32x32xf32>, vector<16x32xf32> -> vector<16x32xf32>
    %641 = vector.extract_strided_slice %634 {offsets = [0, 0], sizes = [1, 32], strides = [1, 1]} : vector<1x96xf32> to vector<1x32xf32>
    %642 = vector.broadcast %641 : vector<1x32xf32> to vector<16x32xf32>
    %643 = arith.addf %640, %642 : vector<16x32xf32>
    %644 = vector.extract_strided_slice %632 {offsets = [0, 32], sizes = [32, 64], strides = [1, 1]} : vector<32x96xf32> to vector<32x64xf32>
    %cst_241 = arith.constant dense<0.000000e+00> : vector<16x64xf32>
    %645 = tpu.matmul %6, %644, %cst_241 {dimension_numbers = #tpu.dot_dimension_numbers<[1], [0], [0], [1], [0, 0, 1, 1], [], []>} : vector<16x32xf32>, vector<32x64xf32>, vector<16x64xf32> -> vector<16x64xf32>
    %646 = vector.extract_strided_slice %634 {offsets = [0, 32], sizes = [1, 64], strides = [1, 1]} : vector<1x96xf32> to vector<1x64xf32>
    %647 = vector.broadcast %646 : vector<1x64xf32> to vector<16x64xf32>
    %648 = arith.addf %645, %647 : vector<16x64xf32>
    %649 = vector.extract_strided_slice %648 {offsets = [0, 0], sizes = [16, 32], strides = [1, 1]} : vector<16x64xf32> to vector<16x32xf32>
    %650 = vector.extract_strided_slice %648 {offsets = [0, 32], sizes = [16, 32], strides = [1, 1]} : vector<16x64xf32> to vector<16x32xf32>
    %651 = vector.extract_strided_slice %643 {offsets = [0, 0], sizes = [8, 32], strides = [1, 1]} : vector<16x32xf32> to vector<8x32xf32>
    %652 = vector.extract_strided_slice %649 {offsets = [0, 0], sizes = [8, 32], strides = [1, 1]} : vector<16x32xf32> to vector<8x32xf32>
    %653 = vector.extract_strided_slice %650 {offsets = [0, 0], sizes = [8, 32], strides = [1, 1]} : vector<16x32xf32> to vector<8x32xf32>
    %654 = vector.extract_strided_slice %651 {offsets = [0, 0], sizes = [8, 8], strides = [1, 1]} : vector<8x32xf32> to vector<8x8xf32>
    %655 = vector.extract_strided_slice %652 {offsets = [0, 0], sizes = [8, 8], strides = [1, 1]} : vector<8x32xf32> to vector<8x8xf32>
    %656 = vector.extract_strided_slice %653 {offsets = [0, 0], sizes = [8, 8], strides = [1, 1]} : vector<8x32xf32> to vector<8x8xf32>
    %cst_242 = arith.constant dense<0.000000e+00> : vector<8x8xf32>
    %657 = tpu.matmul %654, %655, %cst_242 {dimension_numbers = #tpu.dot_dimension_numbers<[1], [1], [0], [0], [0, 0, 1, 0], [], []>} : vector<8x8xf32>, vector<8x8xf32>, vector<8x8xf32> -> vector<8x8xf32>
    %cst_243 = arith.constant 0.353553385 : f32
    %658 = vector.broadcast %cst_243 : f32 to vector<8x8xf32>
    %659 = arith.mulf %657, %658 : vector<8x8xf32>
    %cst_244 = arith.constant dense<0xFF800000> : vector<8xf32>
    %660 = vector.multi_reduction <maximumf>, %659, %cst_244 [1] : vector<8x8xf32> to vector<8xf32>
    %661 = vector.shape_cast %660 : vector<8xf32> to vector<8x1xf32>
    %662 = vector.broadcast %661 : vector<8x1xf32> to vector<8x8xf32>
    %663 = arith.subf %659, %662 : vector<8x8xf32>
    %664 = math.exp %663 : vector<8x8xf32>
    %cst_245 = arith.constant dense<0.000000e+00> : vector<8xf32>
    %665 = vector.multi_reduction <add>, %664, %cst_245 [1] : vector<8x8xf32> to vector<8xf32>
    %666 = vector.shape_cast %665 : vector<8xf32> to vector<8x1xf32>
    %667 = tpu.reciprocal %666 {approx = true} : vector<8x1xf32> -> vector<8x1xf32>
    %668 = vector.broadcast %667 : vector<8x1xf32> to vector<8x8xf32>
    %669 = arith.mulf %664, %668 : vector<8x8xf32>
    %cst_246 = arith.constant dense<0.000000e+00> : vector<8x8xf32>
    %670 = tpu.matmul %669, %656, %cst_246 {dimension_numbers = #tpu.dot_dimension_numbers<[1], [0], [0], [1], [0, 0, 1, 1], [], []>} : vector<8x8xf32>, vector<8x8xf32>, vector<8x8xf32> -> vector<8x8xf32>
    %671 = vector.extract_strided_slice %651 {offsets = [0, 8], sizes = [8, 8], strides = [1, 1]} : vector<8x32xf32> to vector<8x8xf32>
    %672 = vector.extract_strided_slice %652 {offsets = [0, 8], sizes = [8, 8], strides = [1, 1]} : vector<8x32xf32> to vector<8x8xf32>
    %673 = vector.extract_strided_slice %653 {offsets = [0, 8], sizes = [8, 8], strides = [1, 1]} : vector<8x32xf32> to vector<8x8xf32>
    %cst_247 = arith.constant dense<0.000000e+00> : vector<8x8xf32>
    %674 = tpu.matmul %671, %672, %cst_247 {dimension_numbers = #tpu.dot_dimension_numbers<[1], [1], [0], [0], [0, 0, 1, 0], [], []>} : vector<8x8xf32>, vector<8x8xf32>, vector<8x8xf32> -> vector<8x8xf32>
    %cst_248 = arith.constant 0.353553385 : f32
    %675 = vector.broadcast %cst_248 : f32 to vector<8x8xf32>
    %676 = arith.mulf %674, %675 : vector<8x8xf32>
    %cst_249 = arith.constant dense<0xFF800000> : vector<8xf32>
    %677 = vector.multi_reduction <maximumf>, %676, %cst_249 [1] : vector<8x8xf32> to vector<8xf32>
    %678 = vector.shape_cast %677 : vector<8xf32> to vector<8x1xf32>
    %679 = vector.broadcast %678 : vector<8x1xf32> to vector<8x8xf32>
    %680 = arith.subf %676, %679 : vector<8x8xf32>
    %681 = math.exp %680 : vector<8x8xf32>
    %cst_250 = arith.constant dense<0.000000e+00> : vector<8xf32>
    %682 = vector.multi_reduction <add>, %681, %cst_250 [1] : vector<8x8xf32> to vector<8xf32>
    %683 = vector.shape_cast %682 : vector<8xf32> to vector<8x1xf32>
    %684 = tpu.reciprocal %683 {approx = true} : vector<8x1xf32> -> vector<8x1xf32>
    %685 = vector.broadcast %684 : vector<8x1xf32> to vector<8x8xf32>
    %686 = arith.mulf %681, %685 : vector<8x8xf32>
    %cst_251 = arith.constant dense<0.000000e+00> : vector<8x8xf32>
    %687 = tpu.matmul %686, %673, %cst_251 {dimension_numbers = #tpu.dot_dimension_numbers<[1], [0], [0], [1], [0, 0, 1, 1], [], []>} : vector<8x8xf32>, vector<8x8xf32>, vector<8x8xf32> -> vector<8x8xf32>
    %688 = vector.extract_strided_slice %651 {offsets = [0, 16], sizes = [8, 8], strides = [1, 1]} : vector<8x32xf32> to vector<8x8xf32>
    %689 = vector.extract_strided_slice %652 {offsets = [0, 16], sizes = [8, 8], strides = [1, 1]} : vector<8x32xf32> to vector<8x8xf32>
    %690 = vector.extract_strided_slice %653 {offsets = [0, 16], sizes = [8, 8], strides = [1, 1]} : vector<8x32xf32> to vector<8x8xf32>
    %cst_252 = arith.constant dense<0.000000e+00> : vector<8x8xf32>
    %691 = tpu.matmul %688, %689, %cst_252 {dimension_numbers = #tpu.dot_dimension_numbers<[1], [1], [0], [0], [0, 0, 1, 0], [], []>} : vector<8x8xf32>, vector<8x8xf32>, vector<8x8xf32> -> vector<8x8xf32>
    %cst_253 = arith.constant 0.353553385 : f32
    %692 = vector.broadcast %cst_253 : f32 to vector<8x8xf32>
    %693 = arith.mulf %691, %692 : vector<8x8xf32>
    %cst_254 = arith.constant dense<0xFF800000> : vector<8xf32>
    %694 = vector.multi_reduction <maximumf>, %693, %cst_254 [1] : vector<8x8xf32> to vector<8xf32>
    %695 = vector.shape_cast %694 : vector<8xf32> to vector<8x1xf32>
    %696 = vector.broadcast %695 : vector<8x1xf32> to vector<8x8xf32>
    %697 = arith.subf %693, %696 : vector<8x8xf32>
    %698 = math.exp %697 : vector<8x8xf32>
    %cst_255 = arith.constant dense<0.000000e+00> : vector<8xf32>
    %699 = vector.multi_reduction <add>, %698, %cst_255 [1] : vector<8x8xf32> to vector<8xf32>
    %700 = vector.shape_cast %699 : vector<8xf32> to vector<8x1xf32>
    %701 = tpu.reciprocal %700 {approx = true} : vector<8x1xf32> -> vector<8x1xf32>
    %702 = vector.broadcast %701 : vector<8x1xf32> to vector<8x8xf32>
    %703 = arith.mulf %698, %702 : vector<8x8xf32>
    %cst_256 = arith.constant dense<0.000000e+00> : vector<8x8xf32>
    %704 = tpu.matmul %703, %690, %cst_256 {dimension_numbers = #tpu.dot_dimension_numbers<[1], [0], [0], [1], [0, 0, 1, 1], [], []>} : vector<8x8xf32>, vector<8x8xf32>, vector<8x8xf32> -> vector<8x8xf32>
    %705 = vector.extract_strided_slice %651 {offsets = [0, 24], sizes = [8, 8], strides = [1, 1]} : vector<8x32xf32> to vector<8x8xf32>
    %706 = vector.extract_strided_slice %652 {offsets = [0, 24], sizes = [8, 8], strides = [1, 1]} : vector<8x32xf32> to vector<8x8xf32>
    %707 = vector.extract_strided_slice %653 {offsets = [0, 24], sizes = [8, 8], strides = [1, 1]} : vector<8x32xf32> to vector<8x8xf32>
    %cst_257 = arith.constant dense<0.000000e+00> : vector<8x8xf32>
    %708 = tpu.matmul %705, %706, %cst_257 {dimension_numbers = #tpu.dot_dimension_numbers<[1], [1], [0], [0], [0, 0, 1, 0], [], []>} : vector<8x8xf32>, vector<8x8xf32>, vector<8x8xf32> -> vector<8x8xf32>
    %cst_258 = arith.constant 0.353553385 : f32
    %709 = vector.broadcast %cst_258 : f32 to vector<8x8xf32>
    %710 = arith.mulf %708, %709 : vector<8x8xf32>
    %cst_259 = arith.constant dense<0xFF800000> : vector<8xf32>
    %711 = vector.multi_reduction <maximumf>, %710, %cst_259 [1] : vector<8x8xf32> to vector<8xf32>
    %712 = vector.shape_cast %711 : vector<8xf32> to vector<8x1xf32>
    %713 = vector.broadcast %712 : vector<8x1xf32> to vector<8x8xf32>
    %714 = arith.subf %710, %713 : vector<8x8xf32>
    %715 = math.exp %714 : vector<8x8xf32>
    %cst_260 = arith.constant dense<0.000000e+00> : vector<8xf32>
    %716 = vector.multi_reduction <add>, %715, %cst_260 [1] : vector<8x8xf32> to vector<8xf32>
    %717 = vector.shape_cast %716 : vector<8xf32> to vector<8x1xf32>
    %718 = tpu.reciprocal %717 {approx = true} : vector<8x1xf32> -> vector<8x1xf32>
    %719 = vector.broadcast %718 : vector<8x1xf32> to vector<8x8xf32>
    %720 = arith.mulf %715, %719 : vector<8x8xf32>
    %cst_261 = arith.constant dense<0.000000e+00> : vector<8x8xf32>
    %721 = tpu.matmul %720, %707, %cst_261 {dimension_numbers = #tpu.dot_dimension_numbers<[1], [0], [0], [1], [0, 0, 1, 1], [], []>} : vector<8x8xf32>, vector<8x8xf32>, vector<8x8xf32> -> vector<8x8xf32>
    %722 = tpu.concatenate %670, %687, %704, %721 in 1 : vector<8x8xf32>, vector<8x8xf32>, vector<8x8xf32>, vector<8x8xf32> -> vector<8x32xf32>
    %723 = vector.extract_strided_slice %643 {offsets = [8, 0], sizes = [8, 32], strides = [1, 1]} : vector<16x32xf32> to vector<8x32xf32>
    %724 = vector.extract_strided_slice %649 {offsets = [8, 0], sizes = [8, 32], strides = [1, 1]} : vector<16x32xf32> to vector<8x32xf32>
    %725 = vector.extract_strided_slice %650 {offsets = [8, 0], sizes = [8, 32], strides = [1, 1]} : vector<16x32xf32> to vector<8x32xf32>
    %726 = vector.extract_strided_slice %723 {offsets = [0, 0], sizes = [8, 8], strides = [1, 1]} : vector<8x32xf32> to vector<8x8xf32>
    %727 = vector.extract_strided_slice %724 {offsets = [0, 0], sizes = [8, 8], strides = [1, 1]} : vector<8x32xf32> to vector<8x8xf32>
    %728 = vector.extract_strided_slice %725 {offsets = [0, 0], sizes = [8, 8], strides = [1, 1]} : vector<8x32xf32> to vector<8x8xf32>
    %cst_262 = arith.constant dense<0.000000e+00> : vector<8x8xf32>
    %729 = tpu.matmul %726, %727, %cst_262 {dimension_numbers = #tpu.dot_dimension_numbers<[1], [1], [0], [0], [0, 0, 1, 0], [], []>} : vector<8x8xf32>, vector<8x8xf32>, vector<8x8xf32> -> vector<8x8xf32>
    %cst_263 = arith.constant 0.353553385 : f32
    %730 = vector.broadcast %cst_263 : f32 to vector<8x8xf32>
    %731 = arith.mulf %729, %730 : vector<8x8xf32>
    %cst_264 = arith.constant dense<0xFF800000> : vector<8xf32>
    %732 = vector.multi_reduction <maximumf>, %731, %cst_264 [1] : vector<8x8xf32> to vector<8xf32>
    %733 = vector.shape_cast %732 : vector<8xf32> to vector<8x1xf32>
    %734 = vector.broadcast %733 : vector<8x1xf32> to vector<8x8xf32>
    %735 = arith.subf %731, %734 : vector<8x8xf32>
    %736 = math.exp %735 : vector<8x8xf32>
    %cst_265 = arith.constant dense<0.000000e+00> : vector<8xf32>
    %737 = vector.multi_reduction <add>, %736, %cst_265 [1] : vector<8x8xf32> to vector<8xf32>
    %738 = vector.shape_cast %737 : vector<8xf32> to vector<8x1xf32>
    %739 = tpu.reciprocal %738 {approx = true} : vector<8x1xf32> -> vector<8x1xf32>
    %740 = vector.broadcast %739 : vector<8x1xf32> to vector<8x8xf32>
    %741 = arith.mulf %736, %740 : vector<8x8xf32>
    %cst_266 = arith.constant dense<0.000000e+00> : vector<8x8xf32>
    %742 = tpu.matmul %741, %728, %cst_266 {dimension_numbers = #tpu.dot_dimension_numbers<[1], [0], [0], [1], [0, 0, 1, 1], [], []>} : vector<8x8xf32>, vector<8x8xf32>, vector<8x8xf32> -> vector<8x8xf32>
    %743 = vector.extract_strided_slice %723 {offsets = [0, 8], sizes = [8, 8], strides = [1, 1]} : vector<8x32xf32> to vector<8x8xf32>
    %744 = vector.extract_strided_slice %724 {offsets = [0, 8], sizes = [8, 8], strides = [1, 1]} : vector<8x32xf32> to vector<8x8xf32>
    %745 = vector.extract_strided_slice %725 {offsets = [0, 8], sizes = [8, 8], strides = [1, 1]} : vector<8x32xf32> to vector<8x8xf32>
    %cst_267 = arith.constant dense<0.000000e+00> : vector<8x8xf32>
    %746 = tpu.matmul %743, %744, %cst_267 {dimension_numbers = #tpu.dot_dimension_numbers<[1], [1], [0], [0], [0, 0, 1, 0], [], []>} : vector<8x8xf32>, vector<8x8xf32>, vector<8x8xf32> -> vector<8x8xf32>
    %cst_268 = arith.constant 0.353553385 : f32
    %747 = vector.broadcast %cst_268 : f32 to vector<8x8xf32>
    %748 = arith.mulf %746, %747 : vector<8x8xf32>
    %cst_269 = arith.constant dense<0xFF800000> : vector<8xf32>
    %749 = vector.multi_reduction <maximumf>, %748, %cst_269 [1] : vector<8x8xf32> to vector<8xf32>
    %750 = vector.shape_cast %749 : vector<8xf32> to vector<8x1xf32>
    %751 = vector.broadcast %750 : vector<8x1xf32> to vector<8x8xf32>
    %752 = arith.subf %748, %751 : vector<8x8xf32>
    %753 = math.exp %752 : vector<8x8xf32>
    %cst_270 = arith.constant dense<0.000000e+00> : vector<8xf32>
    %754 = vector.multi_reduction <add>, %753, %cst_270 [1] : vector<8x8xf32> to vector<8xf32>
    %755 = vector.shape_cast %754 : vector<8xf32> to vector<8x1xf32>
    %756 = tpu.reciprocal %755 {approx = true} : vector<8x1xf32> -> vector<8x1xf32>
    %757 = vector.broadcast %756 : vector<8x1xf32> to vector<8x8xf32>
    %758 = arith.mulf %753, %757 : vector<8x8xf32>
    %cst_271 = arith.constant dense<0.000000e+00> : vector<8x8xf32>
    %759 = tpu.matmul %758, %745, %cst_271 {dimension_numbers = #tpu.dot_dimension_numbers<[1], [0], [0], [1], [0, 0, 1, 1], [], []>} : vector<8x8xf32>, vector<8x8xf32>, vector<8x8xf32> -> vector<8x8xf32>
    %760 = vector.extract_strided_slice %723 {offsets = [0, 16], sizes = [8, 8], strides = [1, 1]} : vector<8x32xf32> to vector<8x8xf32>
    %761 = vector.extract_strided_slice %724 {offsets = [0, 16], sizes = [8, 8], strides = [1, 1]} : vector<8x32xf32> to vector<8x8xf32>
    %762 = vector.extract_strided_slice %725 {offsets = [0, 16], sizes = [8, 8], strides = [1, 1]} : vector<8x32xf32> to vector<8x8xf32>
    %cst_272 = arith.constant dense<0.000000e+00> : vector<8x8xf32>
    %763 = tpu.matmul %760, %761, %cst_272 {dimension_numbers = #tpu.dot_dimension_numbers<[1], [1], [0], [0], [0, 0, 1, 0], [], []>} : vector<8x8xf32>, vector<8x8xf32>, vector<8x8xf32> -> vector<8x8xf32>
    %cst_273 = arith.constant 0.353553385 : f32
    %764 = vector.broadcast %cst_273 : f32 to vector<8x8xf32>
    %765 = arith.mulf %763, %764 : vector<8x8xf32>
    %cst_274 = arith.constant dense<0xFF800000> : vector<8xf32>
    %766 = vector.multi_reduction <maximumf>, %765, %cst_274 [1] : vector<8x8xf32> to vector<8xf32>
    %767 = vector.shape_cast %766 : vector<8xf32> to vector<8x1xf32>
    %768 = vector.broadcast %767 : vector<8x1xf32> to vector<8x8xf32>
    %769 = arith.subf %765, %768 : vector<8x8xf32>
    %770 = math.exp %769 : vector<8x8xf32>
    %cst_275 = arith.constant dense<0.000000e+00> : vector<8xf32>
    %771 = vector.multi_reduction <add>, %770, %cst_275 [1] : vector<8x8xf32> to vector<8xf32>
    %772 = vector.shape_cast %771 : vector<8xf32> to vector<8x1xf32>
    %773 = tpu.reciprocal %772 {approx = true} : vector<8x1xf32> -> vector<8x1xf32>
    %774 = vector.broadcast %773 : vector<8x1xf32> to vector<8x8xf32>
    %775 = arith.mulf %770, %774 : vector<8x8xf32>
    %cst_276 = arith.constant dense<0.000000e+00> : vector<8x8xf32>
    %776 = tpu.matmul %775, %762, %cst_276 {dimension_numbers = #tpu.dot_dimension_numbers<[1], [0], [0], [1], [0, 0, 1, 1], [], []>} : vector<8x8xf32>, vector<8x8xf32>, vector<8x8xf32> -> vector<8x8xf32>
    %777 = vector.extract_strided_slice %723 {offsets = [0, 24], sizes = [8, 8], strides = [1, 1]} : vector<8x32xf32> to vector<8x8xf32>
    %778 = vector.extract_strided_slice %724 {offsets = [0, 24], sizes = [8, 8], strides = [1, 1]} : vector<8x32xf32> to vector<8x8xf32>
    %779 = vector.extract_strided_slice %725 {offsets = [0, 24], sizes = [8, 8], strides = [1, 1]} : vector<8x32xf32> to vector<8x8xf32>
    %cst_277 = arith.constant dense<0.000000e+00> : vector<8x8xf32>
    %780 = tpu.matmul %777, %778, %cst_277 {dimension_numbers = #tpu.dot_dimension_numbers<[1], [1], [0], [0], [0, 0, 1, 0], [], []>} : vector<8x8xf32>, vector<8x8xf32>, vector<8x8xf32> -> vector<8x8xf32>
    %cst_278 = arith.constant 0.353553385 : f32
    %781 = vector.broadcast %cst_278 : f32 to vector<8x8xf32>
    %782 = arith.mulf %780, %781 : vector<8x8xf32>
    %cst_279 = arith.constant dense<0xFF800000> : vector<8xf32>
    %783 = vector.multi_reduction <maximumf>, %782, %cst_279 [1] : vector<8x8xf32> to vector<8xf32>
    %784 = vector.shape_cast %783 : vector<8xf32> to vector<8x1xf32>
    %785 = vector.broadcast %784 : vector<8x1xf32> to vector<8x8xf32>
    %786 = arith.subf %782, %785 : vector<8x8xf32>
    %787 = math.exp %786 : vector<8x8xf32>
    %cst_280 = arith.constant dense<0.000000e+00> : vector<8xf32>
    %788 = vector.multi_reduction <add>, %787, %cst_280 [1] : vector<8x8xf32> to vector<8xf32>
    %789 = vector.shape_cast %788 : vector<8xf32> to vector<8x1xf32>
    %790 = tpu.reciprocal %789 {approx = true} : vector<8x1xf32> -> vector<8x1xf32>
    %791 = vector.broadcast %790 : vector<8x1xf32> to vector<8x8xf32>
    %792 = arith.mulf %787, %791 : vector<8x8xf32>
    %cst_281 = arith.constant dense<0.000000e+00> : vector<8x8xf32>
    %793 = tpu.matmul %792, %779, %cst_281 {dimension_numbers = #tpu.dot_dimension_numbers<[1], [0], [0], [1], [0, 0, 1, 1], [], []>} : vector<8x8xf32>, vector<8x8xf32>, vector<8x8xf32> -> vector<8x8xf32>
    %794 = tpu.concatenate %742, %759, %776, %793 in 1 : vector<8x8xf32>, vector<8x8xf32>, vector<8x8xf32>, vector<8x8xf32> -> vector<8x32xf32>
    %795 = tpu.concatenate %722, %794 in 0 : vector<8x32xf32>, vector<8x32xf32> -> vector<16x32xf32>
    %cst_282 = arith.constant dense<0.000000e+00> : vector<16x32xf32>
    %796 = tpu.matmul %795, %636, %cst_282 {dimension_numbers = #tpu.dot_dimension_numbers<[1], [0], [0], [1], [0, 0, 1, 1], [], []>} : vector<16x32xf32>, vector<32x32xf32>, vector<16x32xf32> -> vector<16x32xf32>
    %797 = vector.broadcast %638 : vector<1x32xf32> to vector<16x32xf32>
    %798 = arith.addf %796, %797 : vector<16x32xf32>
    %c1_283 = arith.constant 1 : index
    %c0_284 = arith.constant 0 : index
    %c0_285 = arith.constant 0 : index
    %799 = vector.load %arg19[%c1_283, %c0_284, %c0_285] : memref<2x1x32xf32, #tpu.memory_space<vmem>>, vector<1x1x32xf32>
    %800 = vector.shape_cast %799 : vector<1x1x32xf32> to vector<1x32xf32>
    %c1_286 = arith.constant 1 : index
    %c0_287 = arith.constant 0 : index
    %c0_288 = arith.constant 0 : index
    %801 = vector.load %arg20[%c1_286, %c0_287, %c0_288] : memref<2x1x32xf32, #tpu.memory_space<vmem>>, vector<1x1x32xf32>
    %802 = vector.shape_cast %801 : vector<1x1x32xf32> to vector<1x32xf32>
    %803 = arith.addf %630, %798 : vector<16x32xf32>
    %cst_289 = arith.constant dense<0.000000e+00> : vector<16xf32>
    %804 = vector.multi_reduction <add>, %803, %cst_289 [1] : vector<16x32xf32> to vector<16xf32>
    %805 = vector.shape_cast %804 : vector<16xf32> to vector<16x1xf32>
    %cst_290 = arith.constant 3.200000e+01 : f32
    %806 = vector.broadcast %cst_290 : f32 to vector<16x1xf32>
    %807 = arith.divf %805, %806 : vector<16x1xf32>
    %808 = vector.broadcast %807 : vector<16x1xf32> to vector<16x32xf32>
    %809 = arith.subf %803, %808 : vector<16x32xf32>
    %810 = vector.broadcast %807 : vector<16x1xf32> to vector<16x32xf32>
    %811 = arith.subf %803, %810 : vector<16x32xf32>
    %812 = arith.mulf %809, %811 : vector<16x32xf32>
    %cst_291 = arith.constant dense<0.000000e+00> : vector<16xf32>
    %813 = vector.multi_reduction <add>, %812, %cst_291 [1] : vector<16x32xf32> to vector<16xf32>
    %814 = vector.shape_cast %813 : vector<16xf32> to vector<16x1xf32>
    %cst_292 = arith.constant 3.200000e+01 : f32
    %815 = vector.broadcast %cst_292 : f32 to vector<16x1xf32>
    %816 = arith.divf %814, %815 : vector<16x1xf32>
    %817 = vector.broadcast %807 : vector<16x1xf32> to vector<16x32xf32>
    %818 = arith.subf %803, %817 : vector<16x32xf32>
    %cst_293 = arith.constant 9.99999974E-6 : f32
    %819 = vector.broadcast %cst_293 : f32 to vector<16x1xf32>
    %820 = arith.addf %816, %819 : vector<16x1xf32>
    %821 = math.rsqrt %820 : vector<16x1xf32>
    %822 = vector.broadcast %821 : vector<16x1xf32> to vector<16x32xf32>
    %823 = arith.mulf %818, %822 : vector<16x32xf32>
    %824 = vector.broadcast %800 : vector<1x32xf32> to vector<16x32xf32>
    %825 = arith.mulf %823, %824 : vector<16x32xf32>
    %826 = vector.broadcast %802 : vector<1x32xf32> to vector<16x32xf32>
    %827 = arith.addf %825, %826 : vector<16x32xf32>
    %c1_294 = arith.constant 1 : index
    %c0_295 = arith.constant 0 : index
    %c0_296 = arith.constant 0 : index
    %828 = vector.load %arg13[%c1_294, %c0_295, %c0_296] : memref<2x32x64xf32, #tpu.memory_space<vmem>>, vector<1x32x64xf32>
    %829 = vector.shape_cast %828 : vector<1x32x64xf32> to vector<32x64xf32>
    %cst_297 = arith.constant dense<0.000000e+00> : vector<16x64xf32>
    %830 = tpu.matmul %827, %829, %cst_297 {dimension_numbers = #tpu.dot_dimension_numbers<[1], [0], [0], [1], [0, 0, 1, 1], [], []>} : vector<16x32xf32>, vector<32x64xf32>, vector<16x64xf32> -> vector<16x64xf32>
    %c1_298 = arith.constant 1 : index
    %c0_299 = arith.constant 0 : index
    %c0_300 = arith.constant 0 : index
    %831 = vector.load %arg14[%c1_298, %c0_299, %c0_300] : memref<2x1x64xf32, #tpu.memory_space<vmem>>, vector<1x1x64xf32>
    %832 = vector.shape_cast %831 : vector<1x1x64xf32> to vector<1x64xf32>
    %833 = vector.broadcast %832 : vector<1x64xf32> to vector<16x64xf32>
    %834 = arith.addf %830, %833 : vector<16x64xf32>
    %cst_301 = arith.constant 0.000000e+00 : f32
    %835 = vector.broadcast %cst_301 : f32 to vector<16x64xf32>
    %836 = arith.maximumf %834, %835 : vector<16x64xf32>
    %c1_302 = arith.constant 1 : index
    %c0_303 = arith.constant 0 : index
    %c0_304 = arith.constant 0 : index
    %837 = vector.load %arg15[%c1_302, %c0_303, %c0_304] : memref<2x64x32xf32, #tpu.memory_space<vmem>>, vector<1x64x32xf32>
    %838 = vector.shape_cast %837 : vector<1x64x32xf32> to vector<64x32xf32>
    %cst_305 = arith.constant dense<0.000000e+00> : vector<16x32xf32>
    %839 = tpu.matmul %836, %838, %cst_305 {dimension_numbers = #tpu.dot_dimension_numbers<[1], [0], [0], [1], [0, 0, 1, 1], [], []>} : vector<16x64xf32>, vector<64x32xf32>, vector<16x32xf32> -> vector<16x32xf32>
    %c1_306 = arith.constant 1 : index
    %c0_307 = arith.constant 0 : index
    %c0_308 = arith.constant 0 : index
    %840 = vector.load %arg16[%c1_306, %c0_307, %c0_308] : memref<2x1x32xf32, #tpu.memory_space<vmem>>, vector<1x1x32xf32>
    %841 = vector.shape_cast %840 : vector<1x1x32xf32> to vector<1x32xf32>
    %842 = vector.broadcast %841 : vector<1x32xf32> to vector<16x32xf32>
    %843 = arith.addf %839, %842 : vector<16x32xf32>
    %c1_309 = arith.constant 1 : index
    %c0_310 = arith.constant 0 : index
    %c0_311 = arith.constant 0 : index
    %844 = vector.load %arg21[%c1_309, %c0_310, %c0_311] : memref<2x1x32xf32, #tpu.memory_space<vmem>>, vector<1x1x32xf32>
    %845 = vector.shape_cast %844 : vector<1x1x32xf32> to vector<1x32xf32>
    %c1_312 = arith.constant 1 : index
    %c0_313 = arith.constant 0 : index
    %c0_314 = arith.constant 0 : index
    %846 = vector.load %arg22[%c1_312, %c0_313, %c0_314] : memref<2x1x32xf32, #tpu.memory_space<vmem>>, vector<1x1x32xf32>
    %847 = vector.shape_cast %846 : vector<1x1x32xf32> to vector<1x32xf32>
    %848 = arith.addf %827, %843 : vector<16x32xf32>
    %cst_315 = arith.constant dense<0.000000e+00> : vector<16xf32>
    %849 = vector.multi_reduction <add>, %848, %cst_315 [1] : vector<16x32xf32> to vector<16xf32>
    %850 = vector.shape_cast %849 : vector<16xf32> to vector<16x1xf32>
    %cst_316 = arith.constant 3.200000e+01 : f32
    %851 = vector.broadcast %cst_316 : f32 to vector<16x1xf32>
    %852 = arith.divf %850, %851 : vector<16x1xf32>
    %853 = vector.broadcast %852 : vector<16x1xf32> to vector<16x32xf32>
    %854 = arith.subf %848, %853 : vector<16x32xf32>
    %855 = vector.broadcast %852 : vector<16x1xf32> to vector<16x32xf32>
    %856 = arith.subf %848, %855 : vector<16x32xf32>
    %857 = arith.mulf %854, %856 : vector<16x32xf32>
    %cst_317 = arith.constant dense<0.000000e+00> : vector<16xf32>
    %858 = vector.multi_reduction <add>, %857, %cst_317 [1] : vector<16x32xf32> to vector<16xf32>
    %859 = vector.shape_cast %858 : vector<16xf32> to vector<16x1xf32>
    %cst_318 = arith.constant 3.200000e+01 : f32
    %860 = vector.broadcast %cst_318 : f32 to vector<16x1xf32>
    %861 = arith.divf %859, %860 : vector<16x1xf32>
    %862 = vector.broadcast %852 : vector<16x1xf32> to vector<16x32xf32>
    %863 = arith.subf %848, %862 : vector<16x32xf32>
    %cst_319 = arith.constant 9.99999974E-6 : f32
    %864 = vector.broadcast %cst_319 : f32 to vector<16x1xf32>
    %865 = arith.addf %861, %864 : vector<16x1xf32>
    %866 = math.rsqrt %865 : vector<16x1xf32>
    %867 = vector.broadcast %866 : vector<16x1xf32> to vector<16x32xf32>
    %868 = arith.mulf %863, %867 : vector<16x32xf32>
    %869 = vector.broadcast %845 : vector<1x32xf32> to vector<16x32xf32>
    %870 = arith.mulf %868, %869 : vector<16x32xf32>
    %871 = vector.broadcast %847 : vector<1x32xf32> to vector<16x32xf32>
    %872 = arith.addf %870, %871 : vector<16x32xf32>
    %c0_320 = arith.constant 0 : index
    %c0_321 = arith.constant 0 : index
    %873 = vector.load %arg23[%c0_320, %c0_321] : memref<32x24xf32, #tpu.memory_space<vmem>>, vector<32x24xf32>
    %cst_322 = arith.constant dense<0.000000e+00> : vector<16x24xf32>
    %874 = tpu.matmul %872, %873, %cst_322 {dimension_numbers = #tpu.dot_dimension_numbers<[1], [0], [0], [1], [0, 0, 1, 1], [], []>} : vector<16x32xf32>, vector<32x24xf32>, vector<16x24xf32> -> vector<16x24xf32>
    %c0_323 = arith.constant 0 : index
    %c0_324 = arith.constant 0 : index
    %875 = vector.load %arg24[%c0_323, %c0_324] : memref<1x24xf32, #tpu.memory_space<vmem>>, vector<1x24xf32>
    %876 = vector.broadcast %875 : vector<1x24xf32> to vector<16x24xf32>
    %877 = arith.addf %874, %876 : vector<16x24xf32>
    %c0_325 = arith.constant 0 : index
    %c0_326 = arith.constant 0 : index
    %878 = vector.load %arg25[%c0_325, %c0_326] : memref<16x24xf32, #tpu.memory_space<vmem>>, vector<16x24xf32>
    tpu.vector_store %arg25[%c0_325, %c0_326], %877 {strides = array<i32>} : memref<16x24xf32, #tpu.memory_space<vmem>>, vector<16x24xf32>,
    return
  }
  func.func @transform_0(%arg0: i32) -> (i32, i32) {
    %c0_i32 = arith.constant 0 : i32
    %c0_i32_0 = arith.constant 0 : i32
    %c0_i32_1 = arith.constant 0 : i32
    return %c0_i32, %c0_i32_0 : i32, i32
  }
  func.func @transform_1(%arg0: i32) -> (i32, i32) {
    %c0_i32 = arith.constant 0 : i32
    %c0_i32_0 = arith.constant 0 : i32
    %c0_i32_1 = arith.constant 0 : i32
    return %c0_i32, %c0_i32_0 : i32, i32
  }
  func.func @transform_2(%arg0: i32) -> (i32, i32) {
    %c0_i32 = arith.constant 0 : i32
    %c0_i32_0 = arith.constant 0 : i32
    %c0_i32_1 = arith.constant 0 : i32
    return %c0_i32, %c0_i32_0 : i32, i32
  }
  func.func @transform_3(%arg0: i32) -> (i32, i32) {
    %c0_i32 = arith.constant 0 : i32
    %c0_i32_0 = arith.constant 0 : i32
    %c0_i32_1 = arith.constant 0 : i32
    return %c0_i32, %c0_i32_0 : i32, i32
  }
  func.func @transform_4(%arg0: i32) -> (i32, i32, i32) {
    %c0_i32 = arith.constant 0 : i32
    %c0_i32_0 = arith.constant 0 : i32
    %c0_i32_1 = arith.constant 0 : i32
    %c0_i32_2 = arith.constant 0 : i32
    return %c0_i32, %c0_i32_0, %c0_i32_1 : i32, i32, i32
  }
  func.func @transform_5(%arg0: i32) -> (i32, i32, i32) {
    %c0_i32 = arith.constant 0 : i32
    %c0_i32_0 = arith.constant 0 : i32
    %c0_i32_1 = arith.constant 0 : i32
    %c0_i32_2 = arith.constant 0 : i32
    return %c0_i32, %c0_i32_0, %c0_i32_1 : i32, i32, i32
  }
  func.func @transform_6(%arg0: i32) -> (i32, i32, i32) {
    %c0_i32 = arith.constant 0 : i32
    %c0_i32_0 = arith.constant 0 : i32
    %c0_i32_1 = arith.constant 0 : i32
    %c0_i32_2 = arith.constant 0 : i32
    return %c0_i32, %c0_i32_0, %c0_i32_1 : i32, i32, i32
  }
  func.func @transform_7(%arg0: i32) -> (i32, i32, i32) {
    %c0_i32 = arith.constant 0 : i32
    %c0_i32_0 = arith.constant 0 : i32
    %c0_i32_1 = arith.constant 0 : i32
    %c0_i32_2 = arith.constant 0 : i32
    return %c0_i32, %c0_i32_0, %c0_i32_1 : i32, i32, i32
  }
  func.func @transform_8(%arg0: i32) -> (i32, i32, i32) {
    %c0_i32 = arith.constant 0 : i32
    %c0_i32_0 = arith.constant 0 : i32
    %c0_i32_1 = arith.constant 0 : i32
    %c0_i32_2 = arith.constant 0 : i32
    return %c0_i32, %c0_i32_0, %c0_i32_1 : i32, i32, i32
  }
  func.func @transform_9(%arg0: i32) -> (i32, i32, i32) {
    %c0_i32 = arith.constant 0 : i32
    %c0_i32_0 = arith.constant 0 : i32
    %c0_i32_1 = arith.constant 0 : i32
    %c0_i32_2 = arith.constant 0 : i32
    return %c0_i32, %c0_i32_0, %c0_i32_1 : i32, i32, i32
  }
  func.func @transform_10(%arg0: i32) -> (i32, i32, i32) {
    %c0_i32 = arith.constant 0 : i32
    %c0_i32_0 = arith.constant 0 : i32
    %c0_i32_1 = arith.constant 0 : i32
    %c0_i32_2 = arith.constant 0 : i32
    return %c0_i32, %c0_i32_0, %c0_i32_1 : i32, i32, i32
  }
  func.func @transform_11(%arg0: i32) -> (i32, i32, i32) {
    %c0_i32 = arith.constant 0 : i32
    %c0_i32_0 = arith.constant 0 : i32
    %c0_i32_1 = arith.constant 0 : i32
    %c0_i32_2 = arith.constant 0 : i32
    return %c0_i32, %c0_i32_0, %c0_i32_1 : i32, i32, i32
  }
  func.func @transform_12(%arg0: i32) -> (i32, i32, i32) {
    %c0_i32 = arith.constant 0 : i32
    %c0_i32_0 = arith.constant 0 : i32
    %c0_i32_1 = arith.constant 0 : i32
    %c0_i32_2 = arith.constant 0 : i32
    return %c0_i32, %c0_i32_0, %c0_i32_1 : i32, i32, i32
  }
  func.func @transform_13(%arg0: i32) -> (i32, i32, i32) {
    %c0_i32 = arith.constant 0 : i32
    %c0_i32_0 = arith.constant 0 : i32
    %c0_i32_1 = arith.constant 0 : i32
    %c0_i32_2 = arith.constant 0 : i32
    return %c0_i32, %c0_i32_0, %c0_i32_1 : i32, i32, i32
  }
  func.func @transform_14(%arg0: i32) -> (i32, i32, i32) {
    %c0_i32 = arith.constant 0 : i32
    %c0_i32_0 = arith.constant 0 : i32
    %c0_i32_1 = arith.constant 0 : i32
    %c0_i32_2 = arith.constant 0 : i32
    return %c0_i32, %c0_i32_0, %c0_i32_1 : i32, i32, i32
  }
  func.func @transform_15(%arg0: i32) -> (i32, i32, i32) {
    %c0_i32 = arith.constant 0 : i32
    %c0_i32_0 = arith.constant 0 : i32
    %c0_i32_1 = arith.constant 0 : i32
    %c0_i32_2 = arith.constant 0 : i32
    return %c0_i32, %c0_i32_0, %c0_i32_1 : i32, i32, i32
  }
  func.func @transform_16(%arg0: i32) -> (i32, i32, i32) {
    %c0_i32 = arith.constant 0 : i32
    %c0_i32_0 = arith.constant 0 : i32
    %c0_i32_1 = arith.constant 0 : i32
    %c0_i32_2 = arith.constant 0 : i32
    return %c0_i32, %c0_i32_0, %c0_i32_1 : i32, i32, i32
  }
  func.func @transform_17(%arg0: i32) -> (i32, i32, i32) {
    %c0_i32 = arith.constant 0 : i32
    %c0_i32_0 = arith.constant 0 : i32
    %c0_i32_1 = arith.constant 0 : i32
    %c0_i32_2 = arith.constant 0 : i32
    return %c0_i32, %c0_i32_0, %c0_i32_1 : i32, i32, i32
  }
  func.func @transform_18(%arg0: i32) -> (i32, i32, i32) {
    %c0_i32 = arith.constant 0 : i32
    %c0_i32_0 = arith.constant 0 : i32
    %c0_i32_1 = arith.constant 0 : i32
    %c0_i32_2 = arith.constant 0 : i32
    return %c0_i32, %c0_i32_0, %c0_i32_1 : i32, i32, i32
  }
  func.func @transform_19(%arg0: i32) -> (i32, i32, i32) {
    %c0_i32 = arith.constant 0 : i32
    %c0_i32_0 = arith.constant 0 : i32
    %c0_i32_1 = arith.constant 0 : i32
    %c0_i32_2 = arith.constant 0 : i32
    return %c0_i32, %c0_i32_0, %c0_i32_1 : i32, i32, i32
  }
  func.func @transform_20(%arg0: i32) -> (i32, i32, i32) {
    %c0_i32 = arith.constant 0 : i32
    %c0_i32_0 = arith.constant 0 : i32
    %c0_i32_1 = arith.constant 0 : i32
    %c0_i32_2 = arith.constant 0 : i32
    return %c0_i32, %c0_i32_0, %c0_i32_1 : i32, i32, i32
  }
  func.func @transform_21(%arg0: i32) -> (i32, i32, i32) {
    %c0_i32 = arith.constant 0 : i32
    %c0_i32_0 = arith.constant 0 : i32
    %c0_i32_1 = arith.constant 0 : i32
    %c0_i32_2 = arith.constant 0 : i32
    return %c0_i32, %c0_i32_0, %c0_i32_1 : i32, i32, i32
  }
  func.func @transform_22(%arg0: i32) -> (i32, i32) {
    %c0_i32 = arith.constant 0 : i32
    %c0_i32_0 = arith.constant 0 : i32
    %c0_i32_1 = arith.constant 0 : i32
    return %c0_i32, %c0_i32_0 : i32, i32
  }
  func.func @transform_23(%arg0: i32) -> (i32, i32) {
    %c0_i32 = arith.constant 0 : i32
    %c0_i32_0 = arith.constant 0 : i32
    %c0_i32_1 = arith.constant 0 : i32
    return %c0_i32, %c0_i32_0 : i32, i32
  }
  func.func @transform_24(%arg0: i32) -> (i32, i32) {
    %c0_i32 = arith.constant 0 : i32
    %c0_i32_0 = arith.constant 0 : i32
    %c0_i32_1 = arith.constant 0 : i32
    return %c0_i32, %c0_i32_0 : i32, i32
  }
}

</mosaic_0001>

<bundles_post_ra>
// kernel: decoder_t_forward.1
= control target key start
LH: loop header
LB: loop body
LE: loop exit
PB: predicated region body
PF: predicated region fallthrough
CT: control target
= control target key end

     0   :  { %s10404_s0 = inlined_call_operand.vmem [shape: f32[16,16], index: 0, kind: input, shape index: {}]   ;;  %s10405_s1 = inlined_call_operand.vmem [shape: f32[16,32], index: 1, kind: input, shape index: {}]   ;;  %s10406_s2 = inlined_call_operand.hbm [shape: f32[16,32], index: 2, kind: input, shape index: {}]   ;;  %s10407_s3 = inlined_call_operand.hbm [shape: f32[1,32], index: 3, kind: input, shape index: {}]   ;;  %s10408_s4 = inlined_call_operand.vmem [shape: f32[2,32,96], index: 4, kind: input, shape index: {}]   ;;  %s10409_s5 = inlined_call_operand.vmem [shape: f32[2,1,96], index: 5, kind: input, shape index: {}]   ;;  %s10410_s6 = inlined_call_operand.vmem [shape: f32[2,32,32], index: 6, kind: input, shape index: {}]   ;;  %s10411_s7 = inlined_call_operand.hbm [shape: f32[2,1,32], index: 7, kind: input, shape index: {}]   ;;  %s10412_s8 = inlined_call_operand.vmem [shape: f32[2,32,96], index: 8, kind: input, shape index: {}]   ;;  %s10413_s9 = inlined_call_operand.hbm [shape: f32[2,1,96], index: 9, kind: input, shape index: {}]   ;;  %s10414_s10 = inlined_call_operand.vmem [shape: f32[2,32,32], index: 10, kind: input, shape index: {}]   ;;  %s10415_s11 = inlined_call_operand.hbm [shape: f32[2,1,32], index: 11, kind: input, shape index: {}]   ;;  %s10416_s12 = inlined_call_operand.vmem [shape: f32[2,32,64], index: 12, kind: input, shape index: {}]   ;;  %s10417_s13 = inlined_call_operand.hbm [shape: f32[2,1,64], index: 13, kind: input, shape index: {}]   ;;  %s10418_s14 = inlined_call_operand.vmem [shape: f32[2,64,32], index: 14, kind: input, shape index: {}]   ;;  %s10419_s15 = inlined_call_operand.hbm [shape: f32[2,1,32], index: 15, kind: input, shape index: {}]   ;;  %s10420_s16 = inlined_call_operand.hbm [shape: f32[2,1,32], index: 16, kind: input, shape index: {}]   ;;  %s10421_s17 = inlined_call_operand.hbm [shape: f32[2,1,32], index: 17, kind: input, shape index: {}]   ;;  %s10422_s18 = inlined_call_operand.hbm [shape: f32[2,1,32], index: 18, kind: input, shape index: {}]   ;;  %s10423_s19 = inlined_call_operand.hbm [shape: f32[2,1,32], index: 19, kind: input, shape index: {}]   ;;  %s10424_s20 = inlined_call_operand.hbm [shape: f32[2,1,32], index: 20, kind: input, shape index: {}]   ;;  %s10425_s21 = inlined_call_operand.hbm [shape: f32[2,1,32], index: 21, kind: input, shape index: {}]   ;;  %s10426_s22 = inlined_call_operand.vmem [shape: f32[32,24], index: 22, kind: input, shape index: {}]   ;;  %s10427_s23 = inlined_call_operand.hbm [shape: f32[1,24], index: 23, kind: input, shape index: {}]   ;;  %s10428_s24 = inlined_call_operand.vmem [shape: f32[16,24], index: 24, kind: output, shape index: {}]  }
   0x1   :  { %10444 = sst [smem:[#allocation32_spill]] %s10404_s0 }
   0x2   :  { %10445 = sst [smem:[#allocation33_spill]] %s10405_s1 }
   0x3   :  { %10446 = sst [smem:[#allocation34_spill]] %s10406_s2 }
   0x4   :  { %10447 = sst [smem:[#allocation35_spill]] %s10407_s3 }
   0x5   :  { %10448 = sst [smem:[#allocation36_spill]] %s10408_s4 }
   0x6   :  { %10449 = sst [smem:[#allocation37_spill]] %s10409_s5 }
   0x7   :  { %10450 = sst [smem:[#allocation38_spill]] %s10410_s6 }
   0x8   :  { %10451 = sst [smem:[#allocation39_spill]] %s10411_s7 }
   0x9   :  { %10452 = sst [smem:[#allocation40_spill]] %s10412_s8 }
   0xa   :  { %29 = vsyncpa [#allocation3], 0 }
   0xb   :  { %30 = vsyncpa [#allocation5], 0 }
   0xc   :  { %31 = vsyncpa [#allocation8], 0 }
   0xd   :  { %32 = vsyncpa [#allocation11], 0 }
   0xe   :  { %33 = vsyncpa [#allocation14], 0 }
   0xf   :  { %34 = vsyncpa [#allocation17], 0 }
  0x10   :  { %35 = vsyncpa [#allocation20], 0 }
  0x11   :  { %36 = vsyncpa [#allocation23], 0  ;;  %s9084_s5 = smov [#allocation4]   ;;  %s10453_s6 = sld [smem:[#allocation35_spill]] }
  0x12   :  { %s59_s26 = sshll.u32 %s9084_s5, 4  ;;  %s60_s26 = int_to_ptr.vmem [resolvable:$true] %s59_s26 }
  0x17   :  { %s8760_s2 = scalar_lea.hbm %s10453_s6, 16 }
  0x18   :  { %p8761_p0 = scmp.ne.s32.totalorder %s10453_s6, %s8760_s2  ;;  %p8764_p1 = scmp.lt.u32.totalorder %s8760_s2, %s10453_s6 }
  0x1a   :  { %p8766_p2 = pnand %p8764_p1, %p8761_p0 }
  0x1c   :  { %8769 = shalt.err (!%p8766_p2)
}
  0x1d   :  { %s8770_s3 = scalar_lea.vmem %s60_s26, 16  ;;  %s8774_s25 = scalar_lea.vmem %s60_s26, 32 }
  0x1e   :  { %p8771_p3 = scmp.ne.s32.totalorder %s60_s26, %s8770_s3  ;;  %p8775_p4 = scmp.lt.s32.totalorder %s60_s26, %s60_s26 }
  0x1f   :  { %p8776_p5 = scmp.lt.s32.totalorder %s8774_s25, %s8770_s3 }
  0x21   :  { %p8777_p6 = por %p8776_p5, %p8775_p4 }
  0x23   :  { %p8778_p7 = pnand %p8777_p6, %p8771_p3 }
  0x25   :  { %8781 = shalt.err (!%p8778_p7)
}
  0x26   :  { %62 = dma.hbm_to_vmem [thread:$0]  %s10453_s6, 16, %s60_s26, [#allocation5]  }
  0x27   :  { %s9085_s1 = smov [#allocation7]   ;;  %s9086_s27 = smov [#allocation10]  }
  0x28   :  { %s88_s5 = sshll.u32 %s9085_s1, 4  ;;  %s116_s28 = sshll.u32 %s9086_s27, 4  ;;  %s89_s5 = int_to_ptr.vmem [resolvable:$true] %s88_s5  ;;  %s117_s28 = int_to_ptr.vmem [resolvable:$true] %s116_s28 }
  0x29   :  { %s8782_s0 = scalar_lea.hbm %s10413_s9, 32 }
  0x2a   :  { %p8783_p8 = scmp.ne.s32.totalorder %s10413_s9, %s8782_s0  ;;  %p8786_p9 = scmp.lt.u32.totalorder %s8782_s0, %s10413_s9 }
  0x2c   :  { %p8788_p10 = pnand %p8786_p9, %p8783_p8 }
  0x2e   :  { %8791 = shalt.err (!%p8788_p10)
}
  0x2f   :  { %s8792_s26 = scalar_lea.vmem %s89_s5, 32  ;;  %p8797_p12 = scmp.lt.s32.totalorder %s89_s5, %s89_s5 }
  0x30   :  { %p8793_p11 = scmp.ne.s32.totalorder %s89_s5, %s8792_s26  ;;  %p8798_p13 = scmp.lt.s32.totalorder %s8792_s26, %s8792_s26 }
  0x32   :  { %p8799_p0 = por %p8798_p13, %p8797_p12 }
  0x34   :  { %p8800_p1 = pnand %p8799_p0, %p8793_p11 }
  0x36   :  { %8803 = shalt.err (!%p8800_p1)
}
  0x37   :  { %s10442_s6 = smov 16   ;;  %s9088_s8 = smov 1  }
  0x38   :  { %94 = dma.hbm_to_vmem [thread:$0]  %s10413_s9, 32, %s89_s5, [#allocation8], %s10442_s6, %s10442_s6, %s9088_s8  }
  0x39   :  { %s8804_s29 = scalar_lea.hbm %s10417_s13, 32 }
  0x3a   :  { %p8805_p2 = scmp.ne.s32.totalorder %s10417_s13, %s8804_s29  ;;  %p8808_p3 = scmp.lt.u32.totalorder %s8804_s29, %s10417_s13 }
  0x3c   :  { %p8810_p4 = pnand %p8808_p3, %p8805_p2 }
  0x3e   :  { %8813 = shalt.err (!%p8810_p4)
}
  0x3f   :  { %s8814_s25 = scalar_lea.vmem %s117_s28, 32  ;;  %p8819_p6 = scmp.lt.s32.totalorder %s117_s28, %s117_s28 }
  0x40   :  { %p8815_p5 = scmp.ne.s32.totalorder %s117_s28, %s8814_s25  ;;  %p8820_p7 = scmp.lt.s32.totalorder %s8814_s25, %s8814_s25 }
  0x42   :  { %p8821_p8 = por %p8820_p7, %p8819_p6 }
  0x44   :  { %p8822_p9 = pnand %p8821_p8, %p8815_p5 }
  0x46   :  { %8825 = shalt.err (!%p8822_p9)
}
  0x47   :  { %122 = dma.hbm_to_vmem [thread:$0]  %s10417_s13, 32, %s117_s28, [#allocation11], %s10442_s6, %s10442_s6, %s9088_s8  }
  0x48   :  { %s9089_s26 = smov [#allocation13]   ;;  %s9090_s1 = smov [#allocation16]  }
  0x49   :  { %s142_s4 = sshll.u32 %s9089_s26, 4  ;;  %s166_s27 = sshll.u32 %s9090_s1, 4  ;;  %s143_s4 = int_to_ptr.vmem [resolvable:$true] %s142_s4  ;;  %s167_s27 = int_to_ptr.vmem [resolvable:$true] %s166_s27 }
  0x4a   :  { %s8826_s0 = scalar_lea.hbm %s10420_s16, 32 }
  0x4b   :  { %p8827_p10 = scmp.ne.s32.totalorder %s10420_s16, %s8826_s0  ;;  %p8830_p11 = scmp.lt.u32.totalorder %s8826_s0, %s10420_s16 }
  0x4d   :  { %p8832_p12 = pnand %p8830_p11, %p8827_p10 }
  0x4f   :  { %8835 = shalt.err (!%p8832_p12)
}
  0x50   :  { %s8836_s13 = scalar_lea.vmem %s143_s4, 32  ;;  %p8841_p0 = scmp.lt.s32.totalorder %s143_s4, %s143_s4 }
  0x51   :  { %p8837_p13 = scmp.ne.s32.totalorder %s143_s4, %s8836_s13  ;;  %p8842_p1 = scmp.lt.s32.totalorder %s8836_s13, %s8836_s13 }
  0x53   :  { %p8843_p2 = por %p8842_p1, %p8841_p0 }
  0x55   :  { %p8844_p3 = pnand %p8843_p2, %p8837_p13 }
  0x57   :  { %8847 = shalt.err (!%p8844_p3)
}
  0x58   :  { %148 = dma.hbm_to_vmem [thread:$0]  %s10420_s16, 32, %s143_s4, [#allocation14], %s10442_s6, %s10442_s6, %s9088_s8  }
  0x59   :  { %s8848_s1 = scalar_lea.hbm %s10422_s18, 32 }
  0x5a   :  { %p8849_p4 = scmp.ne.s32.totalorder %s10422_s18, %s8848_s1  ;;  %p8852_p5 = scmp.lt.u32.totalorder %s8848_s1, %s10422_s18 }
  0x5c   :  { %p8854_p6 = pnand %p8852_p5, %p8849_p4 }
  0x5e   :  { %8857 = shalt.err (!%p8854_p6)
}
  0x5f   :  { %s8858_s30 = scalar_lea.vmem %s167_s27, 32  ;;  %p8863_p8 = scmp.lt.s32.totalorder %s167_s27, %s167_s27 }
  0x60   :  { %p8859_p7 = scmp.ne.s32.totalorder %s167_s27, %s8858_s30  ;;  %p8864_p9 = scmp.lt.s32.totalorder %s8858_s30, %s8858_s30 }
  0x62   :  { %p8865_p10 = por %p8864_p9, %p8863_p8 }
  0x64   :  { %p8866_p11 = pnand %p8865_p10, %p8859_p7 }
  0x66   :  { %8869 = shalt.err (!%p8866_p11)
}
  0x67   :  { %172 = dma.hbm_to_vmem [thread:$0]  %s10422_s18, 32, %s167_s27, [#allocation17], %s10442_s6, %s10442_s6, %s9088_s8  }
  0x68   :  { %s9091_s3 = smov [#allocation19]   ;;  %s9092_s13 = smov [#allocation2]  }
  0x69   :  { %s190_s25 = sshll.u32 %s9091_s3, 4  ;;  %s46_s28 = sshll.u32 %s9092_s13, 4  ;;  %s191_s25 = int_to_ptr.vmem [resolvable:$true] %s190_s25  ;;  %s47_s28 = int_to_ptr.vmem [resolvable:$true] %s46_s28 }
  0x6a   :  { %s8870_s26 = scalar_lea.hbm %s10424_s20, 32 }
  0x6b   :  { %p8871_p12 = scmp.ne.s32.totalorder %s10424_s20, %s8870_s26  ;;  %p8874_p13 = scmp.lt.u32.totalorder %s8870_s26, %s10424_s20 }
  0x6d   :  { %p8876_p0 = pnand %p8874_p13, %p8871_p12 }
  0x6f   :  { %8879 = shalt.err (!%p8876_p0)
}
  0x70   :  { %s8880_s18 = scalar_lea.vmem %s191_s25, 32  ;;  %p8885_p2 = scmp.lt.s32.totalorder %s191_s25, %s191_s25 }
  0x71   :  { %p8881_p1 = scmp.ne.s32.totalorder %s191_s25, %s8880_s18  ;;  %p8886_p3 = scmp.lt.s32.totalorder %s8880_s18, %s8880_s18 }
  0x73   :  { %p8887_p4 = por %p8886_p3, %p8885_p2 }
  0x75   :  { %p8888_p5 = pnand %p8887_p4, %p8881_p1 }
  0x77   :  { %8891 = shalt.err (!%p8888_p5)
}
  0x78   :  { %196 = dma.hbm_to_vmem [thread:$0]  %s10424_s20, 32, %s191_s25, [#allocation20], %s10442_s6, %s10442_s6, %s9088_s8  }
  0x79   :  { %s10454_s4 = sld [smem:[#allocation34_spill]] }
  0x7f   :  { %s8892_s3 = scalar_lea.hbm %s10454_s4, 256 }
  0x80   :  { %p8893_p6 = scmp.ne.s32.totalorder %s10454_s4, %s8892_s3  ;;  %p8896_p7 = scmp.lt.u32.totalorder %s8892_s3, %s10454_s4 }
  0x82   :  { %p8898_p8 = pnand %p8896_p7, %p8893_p6 }
  0x84   :  { %8901 = shalt.err (!%p8898_p8)
}
  0x85   :  { %s8902_s1 = scalar_lea.vmem %s47_s28, 256  ;;  %p8907_p10 = scmp.lt.s32.totalorder %s47_s28, %s47_s28 }
  0x86   :  { %p8903_p9 = scmp.ne.s32.totalorder %s47_s28, %s8902_s1  ;;  %p8908_p11 = scmp.lt.s32.totalorder %s8902_s1, %s8902_s1 }
  0x88   :  { %p8909_p12 = por %p8908_p11, %p8907_p10 }
  0x8a   :  { %p8910_p13 = pnand %p8909_p12, %p8903_p9 }
  0x8c   :  { %8913 = shalt.err (!%p8910_p13)
}
  0x8d   :  { %s9093_s20 = smov 128   ;;  %s9094_s25 = smov 8  }
  0x8e   :  { %52 = dma.hbm_to_vmem [thread:$0]  %s10454_s4, 256, %s47_s28, [#allocation3], %s9093_s20, %s9093_s20, %s9094_s25  }
  0x8f   :  { %s9095_s0 = smov [#allocation6]   ;;  %s9096_s27 = smov [#allocation9]  }
  0x90   :  { %s74_s18 = sshll.u32 %s9095_s0, 4  ;;  %s102_s7 = sshll.u32 %s9096_s27, 4  ;;  %s75_s18 = int_to_ptr.vmem [resolvable:$true] %s74_s18  ;;  %s103_s7 = int_to_ptr.vmem [resolvable:$true] %s102_s7 }
  0x91   :  { %s10455_s3 = sld [smem:[#allocation39_spill]] }
  0x97   :  { %s8914_s13 = scalar_lea.hbm %s10455_s3, 32 }
  0x98   :  { %p8915_p0 = scmp.ne.s32.totalorder %s10455_s3, %s8914_s13  ;;  %p8918_p1 = scmp.lt.u32.totalorder %s8914_s13, %s10455_s3 }
  0x9a   :  { %p8920_p2 = pnand %p8918_p1, %p8915_p0 }
  0x9c   :  { %8923 = shalt.err (!%p8920_p2)
}
  0x9d   :  { %s8924_s28 = scalar_lea.vmem %s75_s18, 32  ;;  %p8929_p4 = scmp.lt.s32.totalorder %s75_s18, %s75_s18 }
  0x9e   :  { %p8925_p3 = scmp.ne.s32.totalorder %s75_s18, %s8924_s28  ;;  %p8930_p5 = scmp.lt.s32.totalorder %s8924_s28, %s8924_s28 }
  0xa0   :  { %p8931_p6 = por %p8930_p5, %p8929_p4 }
  0xa2   :  { %p8932_p7 = pnand %p8931_p6, %p8925_p3 }
  0xa4   :  { %8935 = shalt.err (!%p8932_p7)
}
  0xa5   :  { %80 = dma.hbm_to_vmem [thread:$0]  %s10455_s3, 32, %s75_s18, [#allocation5], %s10442_s6, %s10442_s6, %s9088_s8  }
  0xa6   :  { %s8936_s0 = scalar_lea.hbm %s10415_s11, 32 }
  0xa7   :  { %p8937_p8 = scmp.ne.s32.totalorder %s10415_s11, %s8936_s0  ;;  %p8940_p9 = scmp.lt.u32.totalorder %s8936_s0, %s10415_s11 }
  0xa9   :  { %p8942_p10 = pnand %p8940_p9, %p8937_p8 }
  0xab   :  { %8945 = shalt.err (!%p8942_p10)
}
  0xac   :  { %s8946_s9 = scalar_lea.vmem %s103_s7, 32  ;;  %p8951_p12 = scmp.lt.s32.totalorder %s103_s7, %s103_s7 }
  0xad   :  { %p8947_p11 = scmp.ne.s32.totalorder %s103_s7, %s8946_s9  ;;  %p8952_p13 = scmp.lt.s32.totalorder %s8946_s9, %s8946_s9 }
  0xaf   :  { %p8953_p0 = por %p8952_p13, %p8951_p12 }
  0xb1   :  { %p8954_p1 = pnand %p8953_p0, %p8947_p11 }
  0xb3   :  { %8957 = shalt.err (!%p8954_p1)
}
  0xb4   :  { %108 = dma.hbm_to_vmem [thread:$0]  %s10415_s11, 32, %s103_s7, [#allocation8], %s10442_s6, %s10442_s6, %s9088_s8  }
  0xb5   :  { %s9097_s5 = smov [#allocation12]   ;;  %s9098_s1 = smov [#allocation15]  }
  0xb6   :  { %s130_s26 = sshll.u32 %s9097_s5, 4  ;;  %s154_s28 = sshll.u32 %s9098_s1, 4  ;;  %s131_s26 = int_to_ptr.vmem [resolvable:$true] %s130_s26  ;;  %s155_s28 = int_to_ptr.vmem [resolvable:$true] %s154_s28 }
  0xb7   :  { %s8958_s2 = scalar_lea.hbm %s10419_s15, 32 }
  0xb8   :  { %p8959_p2 = scmp.ne.s32.totalorder %s10419_s15, %s8958_s2  ;;  %p8962_p3 = scmp.lt.u32.totalorder %s8958_s2, %s10419_s15 }
  0xba   :  { %p8964_p4 = pnand %p8962_p3, %p8959_p2 }
  0xbc   :  { %8967 = shalt.err (!%p8964_p4)
}
  0xbd   :  { %s8968_s11 = scalar_lea.vmem %s131_s26, 32  ;;  %p8973_p6 = scmp.lt.s32.totalorder %s131_s26, %s131_s26 }
  0xbe   :  { %p8969_p5 = scmp.ne.s32.totalorder %s131_s26, %s8968_s11  ;;  %p8974_p7 = scmp.lt.s32.totalorder %s8968_s11, %s8968_s11 }
  0xc0   :  { %p8975_p8 = por %p8974_p7, %p8973_p6 }
  0xc2   :  { %p8976_p9 = pnand %p8975_p8, %p8969_p5 }
  0xc4   :  { %8979 = shalt.err (!%p8976_p9)
}
  0xc5   :  { %136 = dma.hbm_to_vmem [thread:$0]  %s10419_s15, 32, %s131_s26, [#allocation11], %s10442_s6, %s10442_s6, %s9088_s8  }
  0xc6   :  { %s8980_s18 = scalar_lea.hbm %s10421_s17, 32 }
  0xc7   :  { %p8981_p10 = scmp.ne.s32.totalorder %s10421_s17, %s8980_s18  ;;  %p8984_p11 = scmp.lt.u32.totalorder %s8980_s18, %s10421_s17 }
  0xc9   :  { %p8986_p12 = pnand %p8984_p11, %p8981_p10 }
  0xcb   :  { %8989 = shalt.err (!%p8986_p12)
}
  0xcc   :  { %s8990_s20 = scalar_lea.vmem %s155_s28, 32  ;;  %p8995_p0 = scmp.lt.s32.totalorder %s155_s28, %s155_s28 }
  0xcd   :  { %p8991_p13 = scmp.ne.s32.totalorder %s155_s28, %s8990_s20  ;;  %p8996_p1 = scmp.lt.s32.totalorder %s8990_s20, %s8990_s20 }
  0xcf   :  { %p8997_p2 = por %p8996_p1, %p8995_p0 }
  0xd1   :  { %p8998_p3 = pnand %p8997_p2, %p8991_p13 }
  0xd3   :  { %9001 = shalt.err (!%p8998_p3)
}
  0xd4   :  { %160 = dma.hbm_to_vmem [thread:$0]  %s10421_s17, 32, %s155_s28, [#allocation14], %s10442_s6, %s10442_s6, %s9088_s8  }
  0xd5   :  { %s9099_s2 = smov [#allocation18]   ;;  %s9100_s0 = smov [#allocation21]  }
  0xd6   :  { %s178_s29 = sshll.u32 %s9099_s2, 4  ;;  %s202_s27 = sshll.u32 %s9100_s0, 4  ;;  %s179_s29 = int_to_ptr.vmem [resolvable:$true] %s178_s29  ;;  %s203_s27 = int_to_ptr.vmem [resolvable:$true] %s202_s27 }
  0xd7   :  { %s9002_s7 = scalar_lea.hbm %s10423_s19, 32 }
  0xd8   :  { %p9003_p4 = scmp.ne.s32.totalorder %s10423_s19, %s9002_s7  ;;  %p9006_p5 = scmp.lt.u32.totalorder %s9002_s7, %s10423_s19 }
  0xda   :  { %p9008_p6 = pnand %p9006_p5, %p9003_p4 }
  0xdc   :  { %9011 = shalt.err (!%p9008_p6)
}
  0xdd   :  { %s9012_s17 = scalar_lea.vmem %s179_s29, 32  ;;  %p9017_p8 = scmp.lt.s32.totalorder %s179_s29, %s179_s29 }
  0xde   :  { %p9013_p7 = scmp.ne.s32.totalorder %s179_s29, %s9012_s17  ;;  %p9018_p9 = scmp.lt.s32.totalorder %s9012_s17, %s9012_s17 }
  0xe0   :  { %p9019_p10 = por %p9018_p9, %p9017_p8 }
  0xe2   :  { %p9020_p11 = pnand %p9019_p10, %p9013_p7 }
  0xe4   :  { %9023 = shalt.err (!%p9020_p11)
}
  0xe5   :  { %184 = dma.hbm_to_vmem [thread:$0]  %s10423_s19, 32, %s179_s29, [#allocation17], %s10442_s6, %s10442_s6, %s9088_s8  }
  0xe6   :  { %s9024_s4 = scalar_lea.hbm %s10425_s21, 32 }
  0xe7   :  { %p9025_p12 = scmp.ne.s32.totalorder %s10425_s21, %s9024_s4  ;;  %p9028_p13 = scmp.lt.u32.totalorder %s9024_s4, %s10425_s21 }
  0xe9   :  { %p9030_p0 = pnand %p9028_p13, %p9025_p12 }
  0xeb   :  { %9033 = shalt.err (!%p9030_p0)
}
  0xec   :  { %s9034_s0 = scalar_lea.vmem %s203_s27, 32  ;;  %p9039_p2 = scmp.lt.s32.totalorder %s203_s27, %s203_s27 }
  0xed   :  { %p9035_p1 = scmp.ne.s32.totalorder %s203_s27, %s9034_s0  ;;  %p9040_p3 = scmp.lt.s32.totalorder %s9034_s0, %s9034_s0 }
  0xef   :  { %p9041_p4 = por %p9040_p3, %p9039_p2 }
  0xf1   :  { %p9042_p5 = pnand %p9041_p4, %p9035_p1 }
  0xf3   :  { %9045 = shalt.err (!%p9042_p5)
}
  0xf4   :  { %208 = dma.hbm_to_vmem [thread:$0]  %s10425_s21, 32, %s203_s27, [#allocation20], %s10442_s6, %s10442_s6, %s9088_s8  }
  0xf5   :  { %s9101_s30 = smov [#allocation22]   ;;  %s9046_s13 = scalar_lea.hbm %s10427_s23, 16 }
  0xf6   :  { %s217_s11 = sshll.u32 %s9101_s30, 4  ;;  %p9047_p6 = scmp.ne.s32.totalorder %s10427_s23, %s9046_s13  ;;  %s218_s11 = int_to_ptr.vmem [resolvable:$true] %s217_s11 }
  0xf7   :  { %p9050_p7 = scmp.lt.u32.totalorder %s9046_s13, %s10427_s23 }
  0xf9   :  { %p9052_p8 = pnand %p9050_p7, %p9047_p6 }
  0xfb   :  { %9055 = shalt.err (!%p9052_p8)
}
  0xfc   :  { %s9056_s3 = scalar_lea.vmem %s218_s11, 16  ;;  %s9060_s21 = scalar_lea.vmem %s218_s11, 32 }
  0xfd   :  { %p9057_p9 = scmp.ne.s32.totalorder %s218_s11, %s9056_s3  ;;  %p9061_p10 = scmp.lt.s32.totalorder %s218_s11, %s218_s11 }
  0xfe   :  { %p9062_p11 = scmp.lt.s32.totalorder %s9060_s21, %s9056_s3 }
 0x100   :  { %p9063_p12 = por %p9062_p11, %p9061_p10 }
 0x102   :  { %p9064_p13 = pnand %p9063_p12, %p9057_p9 }
 0x104   :  { %9067 = shalt.err (!%p9064_p13)
}
 0x105   :  { %220 = dma.hbm_to_vmem [thread:$0]  %s10427_s23, 16, %s218_s11, [#allocation23]  }
 0x106   :  { %9068 = dma.done.wait [#allocation3], 256  }
 0x107   :  { %9069 = vsyncadd [#allocation3], 4294967040 }
 0x108   :  { %9070 = dma.done.wait [#allocation5], 48  }
 0x109   :  { %9071 = vsyncadd [#allocation5], 4294967248 }
 0x10a   :  { %9072 = dma.done.wait [#allocation8], 64  }
 0x10b   :  { %9073 = vsyncadd [#allocation8], 4294967232 }
 0x10c   :  { %9074 = dma.done.wait [#allocation11], 64  }
 0x10d   :  { %9075 = vsyncadd [#allocation11], 4294967232 }
 0x10e   :  { %9076 = dma.done.wait [#allocation14], 64  }
 0x10f   :  { %9077 = vsyncadd [#allocation14], 4294967232 }
 0x110   :  { %9078 = dma.done.wait [#allocation17], 64  }
 0x111   :  { %9079 = vsyncadd [#allocation17], 4294967232 }
 0x112   :  { %9080 = dma.done.wait [#allocation20], 64  }
 0x113   :  { %9081 = vsyncadd [#allocation20], 4294967232 }
 0x114   :  { %9082 = dma.done.wait [#allocation23], 16  }
 0x115   :  { %9083 = vsyncadd [#allocation23], 4294967280  ;;  %vm274_vm0 = vcmask 130048   ;;  %v265_v0 = vld [vmem:[#allocation2] sm:$0xff]  ;;  %v266_v1 = vld [vmem:[#allocation2 + $0x8] sm:$0xff]  ;;  %s10456_s1 = sld [smem:[#allocation32_spill]] }
 0x116   :  { %v8414_v3 = vpack.c.bf16 %v266_v1, %v265_v0  ;;  %s10457_s15 = sld [smem:[#allocation36_spill]]  ;;  %v7493_v11 = vld [vmem:[#allocation4] ss:$0 sm:$0xff]  ;;  %vm374_vm1 = vcmask 261120   ;;  %v9102_v16 = vmov 0.0   ;;  %vm9103_vm2 = vmmov 0  }
 0x117   :  { %s10458_s9 = sld [smem:[#allocation37_spill]]  ;;  %s9104_s18 = smov 120   ;;  %vm459_vm3 = vcmask 64512   ;;  %vm1134_vm4 = vcmask 195584   ;;  %vm3741_vm5 = vcmask 523264  }
 0x118   :  { %8415 = vmatprep.subr.bf16.mxu0 %v8414_v3  ;;  %s9105_s17 = smov 96   ;;  %s9106_s28 = smov 80  }
 0x119   :  { %8417 = vmatpush3.bf16.msra.mxu0 %v8414_v3  ;;  %s9107_s3 = smov 88   ;;  %s9108_s21 = smov 72  }
 0x11a   :  { %7924 = vmatprep.subr.mxu0 %v9102_v16  ;;  %s9109_s8 = smov 112   ;;  %s9110_s27 = smov 104  }
 0x11b   :  { %v263_v2 = vld [vmem:[%s10456_s1] sm:$0xff]  ;;  %v264_v7 = vld [vmem:[%s10456_s1 + $0x8] sm:$0xff]  ;;  %s9111_s23 = smov 56   ;;  %s9112_s5 = smov 64  }
 0x11c   :  { %7910 = vmatprep.mubr.msk.f32.mxu0 %vm274_vm0, %v263_v2  ;;  %v358_v4 = vld [vmem:[%s10457_s15] sm:$0xff]  ;;  %v359_v5 = vld [vmem:[%s10457_s15 + $0x8] sm:$0xff]  ;;  %v360_v8 = vld [vmem:[%s10457_s15 + $0x10] sm:$0xff]  ;;  %s10438_s1 = smov 40   ;;  %s9114_s4 = smov 48  }
 0x11d   :  { %v8418_v6 = vpack.c.bf16 %v359_v5, %v358_v4  ;;  %7911 = vmatmul.mubr.msk.f32.vlgmr.msra.gmra.mrb[0].mxu0 %vm274_vm0, %v264_v7  ;;  %v361_v9 = vld [vmem:[%s10457_s15 + $0x18] sm:$0xff]  ;;  %v7496_v17 = vld [vmem:[%s10458_s9] ss:$0 sm:$0xff]  ;;  %s10440_s20 = smov 24   ;;  %s10459_s0 = sld [smem:[#allocation38_spill]] }
 0x11e   :  { %v8422_v10 = vpack.c.bf16 %v361_v9, %v360_v8  ;;  %7926 = vmatprep.mubr.msk.f32.mxu0 %vm9103_vm2, %v9102_v16  ;;  %s10460_s2 = sld [smem:[#allocation40_spill]]  ;;  %s10461_s19 = sld [smem:[#allocation33_spill]] }
 0x11f   :  { %8419 = vmatprep.subr.bf16.mxu1 %v8418_v6  ;;  %s10464_s11 = smov 24  }
 0x120   :  { %8421 = vmatpush3.bf16.msra.mxu1 %v8418_v6 }
 0x121   :  { %8423 = vmatprep.subr.bf16.mxu1 %v8422_v10 }
 0x124   :  { %8425 = vmatpush3.bf16.msra.mxu1 %v8422_v10 }
 0x125   :  { %7934 = vmatprep.subr.mxu1 %v9102_v16 }
 0x1f0   :  { %v7912_v12 = vpop.f32.mrb[0].mxu0 }
 0x1f1   :  { %v347_v13 = vpop.f32.mrb[1].mxu0  ;;  %v9465_v15 = vadd.f32 %v7912_v12, %v7493_v11 }
 0x1f2   :  { %v9463_v14 = vadd.f32 %v7493_v11, %v347_v13 }
 0x1f4   :  { %7921 = vmatprep.mubr.msk.f32.mxu1 %vm374_vm1, %v9463_v14 }
 0x1f5   :  { %7922 = vmatmul.mubr.msk.f32.vlgmr.msra.gmra.mrb[0].mxu1 %vm374_vm1, %v9465_v15 }
 0x1f6   :  { %7936 = vmatprep.mubr.msk.f32.mxu1 %vm9103_vm2, %v9102_v16 }
 0x2c8   :  { %v7923_v18 = vpop.f32.mrb[0].mxu1 }
 0x2c9   :  { %v447_v19 = vpop.f32.mrb[1].mxu1  ;;  %v9494_v21 = vadd.f32 %v7923_v18, %v7496_v17 }
 0x2ca   :  { %v9480_v20 = vadd.f32 %v7496_v17, %v447_v19 }
 0x2cc   :  { %622 = vrot.lane.b32.xlu1 %v9480_v20, %s9104_s18  ;;  %457 = vrot.lane.b32.xlu0 %v9480_v20, %s9105_s17 }
 0x2d0   :  { %790 = vrot.lane.b32.xlu1 %v9480_v20, %s9106_s28  ;;  %624 = vrot.lane.b32.xlu0 %v9480_v20, %s9107_s3 }
 0x2d4   :  { %956 = vrot.lane.b32.xlu1 %v9480_v20, %s9108_s21  ;;  %788 = vrot.lane.b32.xlu0 %v9480_v20, %s9109_s8 }
 0x2d8   :  { %1137 = vrot.lane.b32.xlu1 %v9494_v21, %s9105_s17  ;;  %954 = vrot.lane.b32.xlu0 %v9480_v20, %s9110_s27 }
 0x2dc   :  { %1301 = vrot.lane.b32.xlu1 %v9494_v21, %s9104_s18  ;;  %1303 = vrot.lane.b32.xlu0 %v9494_v21, %s9107_s3 }
 0x2e0   :  { %1467 = vrot.lane.b32.xlu1 %v9494_v21, %s9109_s8  ;;  %1469 = vrot.lane.b32.xlu0 %v9494_v21, %s9106_s28 }
 0x2e4   :  { %1633 = vrot.lane.b32.xlu1 %v9494_v21, %s9110_s27  ;;  %1635 = vrot.lane.b32.xlu0 %v9494_v21, %s9108_s21 }
 0x2e8   :  { %712 = vrot.lane.b32.xlu1 %v9480_v20, %s9111_s23  ;;  %546 = vrot.lane.b32.xlu0 %v9480_v20, %s9112_s5 }
 0x33e   :  { %v623_v22 = vpop.permute.xlu1 %622  ;;  %v458_v23 = vpop.permute.xlu0 %457 }
 0x33f   :  { %7925 = vmatpush3.xpose.msk.msra.mxu0 %vm459_vm3, %v458_v23 }
 0x340   :  { %7929 = vmatprep.subr.mxu0 %v9102_v16 }
 0x342   :  { %v791_v24 = vpop.permute.xlu1 %790  ;;  %7927 = vmatmul.mubr.msk.f32.vlgmr.msra.gmra.mrb[2].mxu0 %vm459_vm3, %v9480_v20  ;;  %v625_v25 = vpop.permute.xlu0 %624 }
 0x343   :  { %7935 = vmatpush3.xpose.msk.msra.mxu1 %vm459_vm3, %v625_v25  ;;  %7931 = vmatprep.mubr.msk.f32.mxu0 %vm9103_vm2, %v9102_v16 }
 0x344   :  { %7944 = vmatprep.subr.mxu1 %v9102_v16 }
 0x346   :  { %v957_v26 = vpop.permute.xlu1 %956  ;;  %7937 = vmatmul.mubr.msk.f32.vlgmr.msra.gmra.mrb[2].mxu1 %vm459_vm3, %v623_v22  ;;  %v789_v27 = vpop.permute.xlu0 %788 }
 0x347   :  { %7945 = vmatpush3.xpose.msk.msra.mxu1 %vm459_vm3, %v791_v24  ;;  %7946 = vmatprep.mubr.msk.f32.mxu1 %vm9103_vm2, %v9102_v16 }
 0x348   :  { %7954 = vmatprep.subr.mxu1 %v9102_v16 }
 0x34a   :  { %7947 = vmatmul.mubr.msk.f32.vlgmr.msra.gmra.mrb[4].mxu1 %vm459_vm3, %v789_v27  ;;  %v955_v28 = vpop.permute.xlu0 %954  ;;  %v1138_v29 = vpop.permute.xlu1 %1137 }
 0x34b   :  { %7955 = vmatpush3.xpose.msk.msra.mxu1 %vm459_vm3, %v957_v26  ;;  %7956 = vmatprep.mubr.msk.f32.mxu1 %vm9103_vm2, %v9102_v16 }
 0x34c   :  { %7964 = vmatprep.subr.mxu1 %v9102_v16 }
 0x34e   :  { %7957 = vmatmul.mubr.msk.f32.vlgmr.msra.gmra.mrb[6].mxu1 %vm459_vm3, %v955_v28  ;;  %v1304_v30 = vpop.permute.xlu0 %1303  ;;  %v1302_v31 = vpop.permute.xlu1 %1301 }
 0x34f   :  { %7965 = vmatpush3.xpose.msk.msra.mxu1 %vm459_vm3, %v1138_v29  ;;  %7966 = vmatprep.mubr.msk.f32.mxu1 %vm9103_vm2, %v9102_v16 }
 0x350   :  { %7974 = vmatprep.subr.mxu1 %v9102_v16 }
 0x352   :  { %7967 = vmatmul.mubr.msk.f32.vlgmr.msra.gmra.mrb[8].mxu1 %vm459_vm3, %v9494_v21  ;;  %v1470_v32 = vpop.permute.xlu0 %1469  ;;  %v1468_v34 = vpop.permute.xlu1 %1467 }
 0x353   :  { %7975 = vmatpush3.xpose.msk.msra.mxu1 %vm459_vm3, %v1304_v30  ;;  %7976 = vmatprep.mubr.msk.f32.mxu1 %vm9103_vm2, %v9102_v16 }
 0x354   :  { %7984 = vmatprep.subr.mxu1 %v9102_v16 }
 0x356   :  { %7977 = vmatmul.mubr.msk.f32.vlgmr.msra.gmra.mrb[10].mxu1 %vm459_vm3, %v1302_v31  ;;  %v1636_v33 = vpop.permute.xlu0 %1635  ;;  %v1634_v36 = vpop.permute.xlu1 %1633 }
 0x357   :  { %7985 = vmatpush3.xpose.msk.msra.mxu1 %vm459_vm3, %v1470_v32  ;;  %7986 = vmatprep.mubr.msk.f32.mxu1 %vm9103_vm2, %v9102_v16 }
 0x358   :  { %7994 = vmatprep.subr.mxu1 %v9102_v16 }
 0x35a   :  { %7987 = vmatmul.mubr.msk.f32.vlgmr.msra.gmra.mrb[12].mxu1 %vm459_vm3, %v1468_v34  ;;  %v547_v35 = vpop.permute.xlu0 %546  ;;  %v9568_v5 = vpop.permute.xlu1 %712 }
 0x35b   :  { %7930 = vmatpush3.msra.mxu0 %v547_v35  ;;  %7995 = vmatpush3.xpose.msk.msra.mxu1 %vm459_vm3, %v1636_v33 }
 0x35c   :  { %7996 = vmatprep.mubr.msk.f32.mxu1 %vm9103_vm2, %v9102_v16  ;;  %7939 = vmatprep.subr.mxu0 %v9102_v16 }
 0x35e   :  { %7997 = vmatmul.mubr.msk.f32.vlgmr.msra.gmra.mrb[14].mxu1 %vm459_vm3, %v1634_v36 }
 0x415   :  { %v530_v37 = vpop.f32.mrb[2].mxu0 }
 0x416   :  { %v534_v38 = vmul.f32 0.35355338, %v530_v37  ;;  %v7928_v39 = vpop.f32.mrb[3].mxu0 }
 0x418   :  { %v535_v40 = vsel %vm459_vm3, %v534_v38, -inf }
 0x419   :  { %536 = vmax.xlane.f32.xlu0 %v535_v40  ;;  %v696_v41 = vpop.f32.mrb[2].mxu1 }
 0x41a   :  { %v700_v42 = vmul.f32 0.35355338, %v696_v41  ;;  %v7938_v43 = vpop.f32.mrb[3].mxu1 }
 0x41c   :  { %v701_v44 = vsel %vm459_vm3, %v700_v42, -inf }
 0x41d   :  { %702 = vmax.xlane.f32.xlu1 %v701_v44  ;;  %v862_v45 = vpop.f32.mrb[4].mxu1 }
 0x41e   :  { %v866_v46 = vmul.f32 0.35355338, %v862_v45  ;;  %v7948_v47 = vpop.f32.mrb[5].mxu1 }
 0x420   :  { %v867_v48 = vsel %vm459_vm3, %v866_v46, -inf }
 0x421   :  { %868 = vmax.xlane.f32.xlu0 %v867_v48  ;;  %v1028_v49 = vpop.f32.mrb[6].mxu1 }
 0x422   :  { %v1032_v50 = vmul.f32 0.35355338, %v1028_v49  ;;  %v7958_v51 = vpop.f32.mrb[7].mxu1 }
 0x424   :  { %v1033_v52 = vsel %vm459_vm3, %v1032_v50, -inf }
 0x425   :  { %1034 = vmax.xlane.f32.xlu0 %v1033_v52  ;;  %v1209_v53 = vpop.f32.mrb[8].mxu1 }
 0x426   :  { %v1213_v54 = vmul.f32 0.35355338, %v1209_v53  ;;  %v7968_v55 = vpop.f32.mrb[9].mxu1 }
 0x428   :  { %v1214_v56 = vsel %vm459_vm3, %v1213_v54, -inf }
 0x429   :  { %1215 = vmax.xlane.f32.xlu1 %v1214_v56  ;;  %v1375_v57 = vpop.f32.mrb[10].mxu1 }
 0x42a   :  { %v1379_v58 = vmul.f32 0.35355338, %v1375_v57  ;;  %v7978_v59 = vpop.f32.mrb[11].mxu1 }
 0x42c   :  { %v1380_v60 = vsel %vm459_vm3, %v1379_v58, -inf }
 0x42d   :  { %1381 = vmax.xlane.f32.xlu0 %v1380_v60  ;;  %v1541_v61 = vpop.f32.mrb[12].mxu1 }
 0x42e   :  { %v1545_v62 = vmul.f32 0.35355338, %v1541_v61  ;;  %v7988_v63 = vpop.f32.mrb[13].mxu1 }
 0x430   :  { %v1546_v0 = vsel %vm459_vm3, %v1545_v62, -inf }
 0x431   :  { %1547 = vmax.xlane.f32.xlu1 %v1546_v0  ;;  %v1707_v1 = vpop.f32.mrb[14].mxu1 }
 0x432   :  { %v1711_v2 = vmul.f32 0.35355338, %v1707_v1  ;;  %v7998_v3 = vpop.f32.mrb[15].mxu1 }
 0x434   :  { %v1712_v4 = vsel %vm459_vm3, %v1711_v2, -inf }
 0x435   :  { %1713 = vmax.xlane.f32.xlu0 %v1712_v4 }
 0x442   :  { %1044 = vrot.lane.b32.xlu1 %v9480_v20, %s10438_s1 }
 0x44b   :  { %878 = vrot.lane.b32.xlu0 %v9480_v20, %s9114_s4 }
 0x4a6   :  { %v537_v6 = vpop.xlane.xlu0 %536 }
 0x4a7   :  { %v538_v7 = vsub.f32 %v534_v38, %v537_v6 }
 0x4a9   :  { %v539_v8 = vmul.f32 1.442695, %v538_v7 }
 0x4aa   :  { %v703_v9 = vpop.xlane.xlu1 %702 }
 0x4ab   :  { %8606 = vpow2.f32 %v539_v8  ;;  %v704_v10 = vsub.f32 %v700_v42, %v703_v9 }
 0x4ad   :  { %v705_v11 = vmul.f32 1.442695, %v704_v10 }
 0x4ae   :  { %v869_v12 = vpop.xlane.xlu0 %868 }
 0x4af   :  { %8608 = vpow2.f32 %v705_v11  ;;  %v870_v13 = vsub.f32 %v866_v46, %v869_v12 }
 0x4b1   :  { %v871_v17 = vmul.f32 1.442695, %v870_v13 }
 0x4b2   :  { %v1035_v18 = vpop.xlane.xlu0 %1034 }
 0x4b3   :  { %8610 = vpow2.f32 %v871_v17  ;;  %v1036_v19 = vsub.f32 %v1032_v50, %v1035_v18 }
 0x4b5   :  { %v8607_v22 = vpop.eup %8606  ;;  %v1037_v23 = vmul.f32 1.442695, %v1036_v19 }
 0x4b6   :  { %v541_v20 = vsel %vm459_vm3, %v8607_v22, 0.0  ;;  %v1216_v30 = vpop.xlane.xlu1 %1215 }
 0x4b7   :  { %8612 = vpow2.f32 %v1037_v23  ;;  %542 = vadd.xlane.f32.xlu1 %v541_v20  ;;  %v1217_v31 = vsub.f32 %v1213_v54, %v1216_v30  ;;  %v365_v30 = vld [vmem:[%s10459_s0 + $0x10] sm:$0xff] }
 0x4b9   :  { %v8609_v24 = vpop.eup %8608  ;;  %v1218_v35 = vmul.f32 1.442695, %v1217_v31  ;;  %v366_v31 = vld [vmem:[%s10459_s0 + $0x18] sm:$0xff] }
 0x4ba   :  { %v707_v25 = vsel %vm459_vm3, %v8609_v24, 0.0  ;;  %v1382_v32 = vpop.xlane.xlu0 %1381 }
 0x4bb   :  { %708 = vadd.xlane.f32.xlu0 %v707_v25  ;;  %v1383_v34 = vsub.f32 %v1379_v58, %v1382_v32  ;;  %8614 = vpow2.f32 %v1218_v35  ;;  %v8430_v32 = vpack.c.bf16 %v366_v31, %v365_v30 }
 0x4bd   :  { %v8611_v26 = vpop.eup %8610  ;;  %v1384_v38 = vmul.f32 1.442695, %v1383_v34 }
 0x4be   :  { %v873_v27 = vsel %vm459_vm3, %v8611_v26, 0.0  ;;  %v1548_v33 = vpop.xlane.xlu1 %1547 }
 0x4bf   :  { %874 = vadd.xlane.f32.xlu1 %v873_v27  ;;  %v1549_v36 = vsub.f32 %v1545_v62, %v1548_v33  ;;  %8616 = vpow2.f32 %v1384_v38  ;;  %v363_v27 = vld [vmem:[%s10459_s0] sm:$0xff] }
 0x4c1   :  { %v9573_v28 = vpop.eup %8612  ;;  %v1550_v39 = vmul.f32 1.442695, %v1549_v36 }
 0x4c2   :  { %v1039_v29 = vsel %vm459_vm3, %v9573_v28, 0.0  ;;  %v1714_v37 = vpop.xlane.xlu0 %1713  ;;  %v1045_v50 = vpop.permute.xlu1 %1044 }
 0x4c3   :  { %1040 = vadd.xlane.f32.xlu0 %v1039_v29  ;;  %v1715_v40 = vsub.f32 %v1711_v2, %v1714_v37  ;;  %8618 = vpow2.f32 %v1550_v39 }
 0x4c5   :  { %v1716_v41 = vmul.f32 1.442695, %v1715_v40  ;;  %v8615_v42 = vpop.eup %8614 }
 0x4c6   :  { %v1220_v44 = vsel %vm459_vm3, %v8615_v42, 0.0  ;;  %v879_v51 = vpop.permute.xlu0 %878 }
 0x4c7   :  { %8620 = vpow2.f32 %v1716_v41 }
 0x4c9   :  { %v9581_v43 = vpop.eup %8616 }
 0x4ca   :  { %v1386_v47 = vsel %vm459_vm3, %v9581_v43, 0.0 }
 0x4cd   :  { %v9584_v45 = vpop.eup %8618 }
 0x4ce   :  { %v1552_v46 = vsel %vm459_vm3, %v9584_v45, 0.0 }
 0x4d0   :  { %1391 = vrot.lane.b32.xlu1 %v9494_v21, %s9111_s23 }
 0x4d1   :  { %v9590_v48 = vpop.eup %8620 }
 0x4d2   :  { %v1718_v49 = vsel %vm459_vm3, %v9590_v48, 0.0 }
 0x4d9   :  { %1225 = vrot.lane.b32.xlu0 %v9494_v21, %s9112_s5 }
 0x4f4   :  { %1221 = vadd.xlane.f32.xlu1 %v1220_v44 }
 0x4f8   :  { %1553 = vadd.xlane.f32.xlu1 %v1552_v46  ;;  %1387 = vadd.xlane.f32.xlu0 %v1386_v47 }
 0x4fc   :  { %1719 = vadd.xlane.f32.xlu1 %v1718_v49 }
 0x50d   :  { %1723 = vrot.lane.b32.xlu1 %v9494_v21, %s10438_s1 }
 0x50e   :  { %1557 = vrot.lane.b32.xlu0 %v9494_v21, %s9114_s4 }
 0x544   :  { %v543_v52 = vpop.xlane.xlu1 %542 }
 0x545   :  { %8622 = vrcp.f32 %v543_v52 }
 0x548   :  { %v709_v53 = vpop.xlane.xlu0 %708 }
 0x549   :  { %8624 = vrcp.f32 %v709_v53  ;;  %v7523_v53 = vld [vmem:[#allocation6] ss:$0 sm:$0xff] }
 0x54c   :  { %v875_v54 = vpop.xlane.xlu1 %874 }
 0x54d   :  { %8626 = vrcp.f32 %v875_v54 }
 0x54f   :  { %v8623_v55 = vpop.eup %8622 }
 0x550   :  { %v1041_v56 = vpop.xlane.xlu0 %1040  ;;  %v545_v57 = vmul.f32 %v8623_v55, %v8607_v22  ;;  %v1392_v0 = vpop.permute.xlu1 %1391 }
 0x551   :  { %8628 = vrcp.f32 %v1041_v56 }
 0x552   :  { %7932 = vmatmul.mubr.msk.f32.vlgmr.msra.gmra.mrb[4].mxu0 %vm459_vm3, %v545_v57 }
 0x553   :  { %v8625_v58 = vpop.eup %8624  ;;  %7940 = vmatpush3.msra.mxu0 %v9568_v5  ;;  %7941 = vmatprep.mubr.msk.f32.mxu0 %vm9103_vm2, %v9102_v16 }
 0x554   :  { %7949 = vmatprep.subr.mxu0 %v9102_v16  ;;  %v711_v21 = vmul.f32 %v8625_v58, %v8609_v24  ;;  %v1226_v63 = vpop.permute.xlu0 %1225 }
 0x556   :  { %7942 = vmatmul.mubr.msk.f32.vlgmr.msra.gmra.mrb[6].mxu0 %vm459_vm3, %v711_v21 }
 0x557   :  { %v8627_v59 = vpop.eup %8626  ;;  %7950 = vmatpush3.msra.mxu0 %v879_v51  ;;  %7951 = vmatprep.mubr.msk.f32.mxu0 %vm9103_vm2, %v9102_v16 }
 0x558   :  { %7959 = vmatprep.subr.mxu0 %v9102_v16  ;;  %v877_v60 = vmul.f32 %v8627_v59, %v8611_v26 }
 0x55a   :  { %7952 = vmatmul.mubr.msk.f32.vlgmr.msra.gmra.mrb[8].mxu0 %vm459_vm3, %v877_v60 }
 0x55b   :  { %v8629_v61 = vpop.eup %8628  ;;  %7960 = vmatpush3.msra.mxu0 %v1045_v50  ;;  %7961 = vmatprep.mubr.msk.f32.mxu0 %vm9103_vm2, %v9102_v16 }
 0x55c   :  { %7969 = vmatprep.subr.mxu0 %v9102_v16  ;;  %v1043_v62 = vmul.f32 %v8629_v61, %v9573_v28  ;;  %v364_v28 = vld [vmem:[%s10459_s0 + $0x8] sm:$0xff]  ;;  %v1948_v61 = vld [vmem:[%s10460_s2] sm:$0xff] }
 0x55d   :  { %v8426_v29 = vpack.c.bf16 %v364_v28, %v363_v27 }
 0x55e   :  { %7962 = vmatmul.mubr.msk.f32.vlgmr.msra.gmra.mrb[10].mxu0 %vm459_vm3, %v1043_v62  ;;  %v1949_v62 = vld [vmem:[%s10460_s2 + $0x8] sm:$0xff] }
 0x55f   :  { %7970 = vmatpush3.msra.mxu0 %v1226_v63  ;;  %7971 = vmatprep.mubr.msk.f32.mxu0 %vm9103_vm2, %v9102_v16  ;;  %v8586_v63 = vpack.i.bf16 %v1949_v62, %v1948_v61 }
 0x560   :  { %7979 = vmatprep.subr.mxu0 %v9102_v16  ;;  %8427 = vmatprep.subr.bf16.mxu1 %v8426_v29 }
 0x561   :  { %8429 = vmatpush3.bf16.msra.mxu1 %v8426_v29 }
 0x562   :  { %8431 = vmatprep.subr.bf16.mxu1 %v8430_v32 }
 0x565   :  { %8433 = vmatpush3.bf16.msra.mxu1 %v8430_v32 }
 0x581   :  { %v1222_v1 = vpop.xlane.xlu1 %1221 }
 0x582   :  { %8630 = vrcp.f32 %v1222_v1 }
 0x585   :  { %v1554_v2 = vpop.xlane.xlu1 %1553  ;;  %v1388_v3 = vpop.xlane.xlu0 %1387 }
 0x586   :  { %8632 = vrcp.f32 %v1388_v3 }
 0x587   :  { %8634 = vrcp.f32 %v1554_v2 }
 0x589   :  { %v1720_v4 = vpop.xlane.xlu1 %1719  ;;  %v1558_v10 = vpop.permute.xlu0 %1557 }
 0x58a   :  { %8636 = vrcp.f32 %v1720_v4 }
 0x58c   :  { %v8631_v5 = vpop.eup %8630 }
 0x58d   :  { %v1224_v6 = vmul.f32 %v8631_v5, %v8615_v42  ;;  %v1724_v13 = vpop.permute.xlu1 %1723 }
 0x58f   :  { %7972 = vmatmul.mubr.msk.f32.vlgmr.msra.gmra.mrb[12].mxu0 %vm459_vm3, %v1224_v6 }
 0x590   :  { %7980 = vmatpush3.msra.mxu0 %v1392_v0  ;;  %7981 = vmatprep.mubr.msk.f32.mxu0 %vm9103_vm2, %v9102_v16  ;;  %v8633_v7 = vpop.eup %8632 }
 0x591   :  { %7989 = vmatprep.subr.mxu0 %v9102_v16  ;;  %v1390_v8 = vmul.f32 %v8633_v7, %v9581_v43  ;;  %v8635_v9 = vpop.eup %8634 }
 0x592   :  { %v1556_v11 = vmul.f32 %v8635_v9, %v9584_v45  ;;  %v1950_v9 = vld [vmem:[%s10460_s2 + $0x10] sm:$0xff] }
 0x593   :  { %7982 = vmatmul.mubr.msk.f32.vlgmr.msra.gmra.mrb[14].mxu0 %vm459_vm3, %v1390_v8 }
 0x594   :  { %7990 = vmatpush3.msra.mxu0 %v1558_v10  ;;  %7991 = vmatprep.mubr.msk.f32.mxu0 %vm9103_vm2, %v9102_v16  ;;  %v8637_v12 = vpop.eup %8636  ;;  %v1951_v10 = vld [vmem:[%s10460_s2 + $0x18] sm:$0xff] }
 0x595   :  { %7999 = vmatprep.subr.mxu0 %v9102_v16  ;;  %v1722_v17 = vmul.f32 %v8637_v12, %v9590_v48 }
 0x597   :  { %7992 = vmatmul.mubr.msk.f32.vlgmr.msra.gmra.mrb[16].mxu0 %vm459_vm3, %v1556_v11 }
 0x598   :  { %8000 = vmatpush3.msra.mxu0 %v1724_v13  ;;  %8001 = vmatprep.mubr.msk.f32.mxu0 %vm9103_vm2, %v9102_v16 }
 0x59b   :  { %8002 = vmatmul.mubr.msk.f32.vlgmr.msra.gmra.mrb[18].mxu0 %vm459_vm3, %v1722_v17  ;;  %v8591_v17 = vpack.i.bf16 %v1951_v10, %v1950_v9 }
 0x625   :  { %v618_v18 = vpop.f32.mrb[4].mxu0 }
 0x626   :  { %v7933_v19 = vpop.f32.mrb[5].mxu0 }
 0x627   :  { %v8434_v19 = vpack.c.bf16 %v1949_v62, %v1948_v61 }
 0x629   :  { %v784_v22 = vpop.f32.mrb[6].mxu0  ;;  %8435 = vmatprep.subr.bf16.mxu0 %v8434_v19 }
 0x62a   :  { %1121 = vrot.lane.b32.xlu0 %v784_v22, %s9094_s25  ;;  %v7943_v23 = vpop.f32.mrb[7].mxu0  ;;  %v8438_v22 = vpack.c.bf16 %v1951_v10, %v1950_v9  ;;  %8437 = vmatpush3.bf16.msra.mxu0 %v8434_v19 }
 0x62b   :  { %v7528_v23 = vld [vmem:[#allocation7] ss:$0 sm:$0xff] }
 0x62c   :  { %8439 = vmatprep.subr.bf16.mxu0 %v8438_v22 }
 0x62d   :  { %v950_v20 = vpop.f32.mrb[8].mxu0 }
 0x62e   :  { %1125 = vrot.lane.b32.xlu1 %v950_v20, %s10442_s6  ;;  %v7953_v24 = vpop.f32.mrb[9].mxu0  ;;  %8441 = vmatpush3.bf16.msra.mxu0 %v8438_v22 }
 0x62f   :  { %8037 = vmatprep.subr.mxu0 %v9102_v16 }
 0x631   :  { %v1116_v25 = vpop.f32.mrb[10].mxu0 }
 0x632   :  { %1129 = vrot.lane.b32.xlu1 %v1116_v25, %s10440_s20  ;;  %v7963_v26 = vpop.f32.mrb[11].mxu0 }
 0x662   :  { %v1297_v33 = vpop.f32.mrb[12].mxu0 }
 0x663   :  { %v7973_v34 = vpop.f32.mrb[13].mxu0 }
 0x666   :  { %v1463_v35 = vpop.f32.mrb[14].mxu0 }
 0x667   :  { %1800 = vrot.lane.b32.xlu0 %v1463_v35, %s9094_s25  ;;  %v7983_v36 = vpop.f32.mrb[15].mxu0 }
 0x668   :  { %v7526_v36 = vld [vmem:[#allocation13] ss:$0 sm:$0xff] }
 0x66a   :  { %v1629_v37 = vpop.f32.mrb[16].mxu0 }
 0x66b   :  { %1804 = vrot.lane.b32.xlu0 %v1629_v37, %s10442_s6  ;;  %v7993_v38 = vpop.f32.mrb[17].mxu0 }
 0x66e   :  { %v1795_v39 = vpop.f32.mrb[18].mxu0 }
 0x66f   :  { %1808 = vrot.lane.b32.xlu1 %v1795_v39, %s10440_s20  ;;  %v8003_v40 = vpop.f32.mrb[19].mxu0 }
 0x670   :  { %v7527_v40 = vld [vmem:[#allocation15] ss:$0 sm:$0xff] }
 0x69c   :  { %v1122_v41 = vpop.permute.xlu0 %1121 }
 0x69d   :  { %v1132_v43 = vsel %vm459_vm3, %v618_v18, %v1122_v41  ;;  %v356_v18 = vld [vmem:[%s10461_s19] sm:$0xff] }
 0x6a0   :  { %v1126_v42 = vpop.permute.xlu1 %1125 }
 0x6a1   :  { %v1133_v44 = vsel %vm274_vm0, %v1132_v43, %v1126_v42 }
 0x6a4   :  { %v1130_v45 = vpop.permute.xlu1 %1129 }
 0x6a5   :  { %v1135_v46 = vsel %vm1134_vm4, %v1133_v44, %v1130_v45 }
 0x6a6   :  { %8012 = vmatprep.mubr.msk.f32.mxu1 %vm374_vm1, %v1135_v46 }
 0x6d9   :  { %v1801_v47 = vpop.permute.xlu0 %1800 }
 0x6da   :  { %v1811_v49 = vsel %vm459_vm3, %v1297_v33, %v1801_v47  ;;  %v357_v33 = vld [vmem:[%s10461_s19 + $0x8] sm:$0xff] }
 0x6dd   :  { %v1805_v48 = vpop.permute.xlu0 %1804 }
 0x6de   :  { %v1812_v50 = vsel %vm274_vm0, %v1811_v49, %v1805_v48 }
 0x6e1   :  { %v1809_v51 = vpop.permute.xlu1 %1808 }
 0x6e2   :  { %v1813_v52 = vsel %vm1134_vm4, %v1812_v50, %v1809_v51 }
 0x6e3   :  { %8013 = vmatmul.mubr.msk.f32.vlgmr.msra.gmra.mrb[16].mxu1 %vm374_vm1, %v1813_v52 }
 0x6e4   :  { %8034 = vmatprep.mubr.msk.f32.mxu1 %vm374_vm1, %v356_v18 }
 0x7b6   :  { %v8014_v54 = vpop.f32.mrb[16].mxu1 }
 0x7b7   :  { %v1898_v55 = vadd.f32 %v8014_v54, %v7523_v53  ;;  %v1892_v56 = vpop.f32.mrb[17].mxu1 }
 0x7b8   :  { %v1893_v57 = vadd.f32 %v7523_v53, %v1892_v56 }
 0x7b9   :  { %v1904_v58 = vadd.f32 %v1898_v55, %v9465_v15 }
 0x7ba   :  { %v1903_v21 = vadd.f32 %v1893_v57, %v9463_v14 }
 0x7bb   :  { %v1908_v59 = vsel %vm374_vm1, %v1904_v58, 0.0 }
 0x7bc   :  { %1909 = vadd.xlane.f32.xlu1 %v1908_v59  ;;  %v1905_v60 = vsel %vm374_vm1, %v1903_v21, 0.0 }
 0x7bd   :  { %1906 = vadd.xlane.f32.xlu0 %v1905_v60 }
 0x7cd   :  { %8587 = vrot.lane.b32.xlu1 %v8586_v63, %s9105_s17 }
 0x7d1   :  { %2061 = vrot.lane.b32.xlu1 %v7528_v23, %s9105_s17 }
 0x849   :  { %v1910_v15 = vpop.xlane.xlu1 %1909 }
 0x84a   :  { %v1913_v0 = vmul.f32 0.03125, %v1910_v15  ;;  %v1907_v14 = vpop.xlane.xlu0 %1906 }
 0x84b   :  { %v1912_v1 = vmul.f32 0.03125, %v1907_v14 }
 0x84c   :  { %v1915_v2 = vsub.f32 %v1904_v58, %v1913_v0 }
 0x84d   :  { %v1914_v3 = vsub.f32 %v1903_v21, %v1912_v1  ;;  %v8588_v8 = vpop.permute.xlu1 %8587 }
 0x84e   :  { %v1917_v4 = vmul.f32 %v1915_v2, %v1915_v2  ;;  %v8590_v11 = vunpack.i.h.bf16 %v8588_v8  ;;  %v8589_v12 = vunpack.i.l.bf16 %v8588_v8 }
 0x84f   :  { %v1916_v6 = vmul.f32 %v1914_v3, %v1914_v3 }
 0x850   :  { %v1921_v5 = vsel %vm374_vm1, %v1917_v4, 0.0  ;;  %v8442_v13 = vpack.c.bf16 %v8590_v11, %v8589_v12 }
 0x851   :  { %1922 = vadd.xlane.f32.xlu0 %v1921_v5  ;;  %v1918_v7 = vsel %vm374_vm1, %v1916_v6, 0.0  ;;  %v2062_v44 = vpop.permute.xlu1 %2061 }
 0x852   :  { %8443 = vmatprep.subr.bf16.mxu1 %v8442_v13 }
 0x853   :  { %8445 = vmatpush3.bf16.msra.mxu1 %v8442_v13 }
 0x855   :  { %1919 = vadd.xlane.f32.xlu0 %v1918_v7 }
 0x86b   :  { %8592 = vrot.lane.b32.xlu0 %v8591_v17, %s9105_s17 }
 0x8de   :  { %v1923_v20 = vpop.xlane.xlu0 %1922 }
 0x8df   :  { %v1925_v24 = vmul.f32 0.03125, %v1923_v20 }
 0x8e1   :  { %v1927_v25 = vadd.f32 1e-05, %v1925_v24 }
 0x8e2   :  { %v1920_v26 = vpop.xlane.xlu0 %1919 }
 0x8e3   :  { %8638 = vrsqrt.f32 %v1927_v25  ;;  %v1924_v27 = vmul.f32 0.03125, %v1920_v26 }
 0x8e5   :  { %v1926_v28 = vadd.f32 1e-05, %v1924_v27 }
 0x8e6   :  { %v8593_v29 = vpop.permute.xlu0 %8592 }
 0x8e7   :  { %8640 = vrsqrt.f32 %v1926_v28  ;;  %v8595_v30 = vunpack.i.h.bf16 %v8593_v29  ;;  %v8594_v31 = vunpack.i.l.bf16 %v8593_v29 }
 0x8e9   :  { %v8446_v32 = vpack.c.bf16 %v8595_v30, %v8594_v31 }
 0x8eb   :  { %8447 = vmatprep.subr.bf16.mxu1 %v8446_v32 }
 0x8ec   :  { %8449 = vmatpush3.bf16.msra.mxu1 %v8446_v32 }
 0x8ed   :  { %v8639_v34 = vpop.eup %8638  ;;  %8047 = vmatprep.subr.mxu1 %v9102_v16 }
 0x8ee   :  { %v1931_v35 = vmul.f32 %v8639_v34, %v1915_v2 }
 0x8ef   :  { %8035 = vmatmul.mubr.msk.f32.vlgmr.msra.gmra.mrb[18].mxu1 %vm374_vm1, %v357_v33 }
 0x8f0   :  { %8049 = vmatprep.mubr.msk.f32.mxu1 %vm9103_vm2, %v9102_v16  ;;  %v1939_v39 = vmul.f32 %v7526_v36, %v1931_v35 }
 0x8f1   :  { %v8641_v37 = vpop.eup %8640 }
 0x8f2   :  { %v1930_v38 = vmul.f32 %v8641_v37, %v1914_v3  ;;  %v9692_v43 = vadd.f32 %v7527_v40, %v1939_v39 }
 0x8f4   :  { %v1938_v41 = vmul.f32 %v7526_v36, %v1930_v38 }
 0x8f6   :  { %v9690_v42 = vadd.f32 %v7527_v40, %v1938_v41 }
 0x8f8   :  { %8023 = vmatprep.mubr.msk.f32.mxu0 %vm374_vm1, %v9690_v42 }
 0x8f9   :  { %8024 = vmatmul.mubr.msk.f32.vlgmr.msra.gmra.mrb[20].mxu0 %vm374_vm1, %v9692_v43 }
 0x8fa   :  { %8039 = vmatprep.mubr.msk.f32.mxu0 %vm9103_vm2, %v9102_v16 }
 0x9c2   :  { %v8036_v45 = vpop.f32.mrb[18].mxu1 }
 0x9c3   :  { %v2136_v46 = vpop.f32.mrb[19].mxu1  ;;  %v9711_v51 = vadd.f32 %v8036_v45, %v2062_v44 }
 0x9c4   :  { %v9700_v47 = vadd.f32 %v2136_v46, %v2062_v44 }
 0x9c6   :  { %2311 = vrot.lane.b32.xlu1 %v9700_v47, %s9104_s18  ;;  %8038 = vmatpush3.xpose.msk.msra.mxu0 %vm459_vm3, %v9700_v47 }
 0x9c7   :  { %8042 = vmatprep.subr.mxu0 %v9102_v16 }
 0x9ca   :  { %2477 = vrot.lane.b32.xlu1 %v9700_v47, %s9109_s8 }
 0x9cc   :  { %v8025_v48 = vpop.f32.mrb[20].mxu0 }
 0x9cd   :  { %v2036_v49 = vpop.f32.mrb[21].mxu0  ;;  %v2042_v52 = vadd.f32 %v8025_v48, %v7528_v23 }
 0x9ce   :  { %v2037_v50 = vadd.f32 %v7528_v23, %v2036_v49  ;;  %2643 = vrot.lane.b32.xlu1 %v9700_v47, %s9110_s27 }
 0x9d0   :  { %2309 = vrot.lane.b32.xlu0 %v2037_v50, %s9104_s18  ;;  %8040 = vmatmul.mubr.msk.f32.vlgmr.msra.gmra.mrb[22].mxu0 %vm459_vm3, %v2037_v50 }
 0x9d1   :  { %8044 = vmatprep.mubr.msk.f32.mxu0 %vm9103_vm2, %v9102_v16 }
 0x9d2   :  { %2988 = vrot.lane.b32.xlu1 %v9711_v51, %s9104_s18 }
 0x9d4   :  { %2475 = vrot.lane.b32.xlu0 %v2037_v50, %s9109_s8 }
 0x9d6   :  { %3154 = vrot.lane.b32.xlu1 %v9711_v51, %s9109_s8 }
 0x9d8   :  { %2641 = vrot.lane.b32.xlu0 %v2037_v50, %s9110_s27 }
 0x9da   :  { %3320 = vrot.lane.b32.xlu1 %v9711_v51, %s9110_s27 }
 0x9dc   :  { %2986 = vrot.lane.b32.xlu0 %v2042_v52, %s9104_s18 }
 0x9de   :  { %2233 = vrot.lane.b32.xlu1 %v9700_v47, %s9105_s17 }
 0x9e0   :  { %3152 = vrot.lane.b32.xlu0 %v2042_v52, %s9109_s8 }
 0x9e4   :  { %3318 = vrot.lane.b32.xlu0 %v2042_v52, %s9110_s27 }
 0xa38   :  { %v2312_v53 = vpop.permute.xlu1 %2311 }
 0xa39   :  { %8048 = vmatpush3.xpose.msk.msra.mxu1 %vm459_vm3, %v2312_v53 }
 0xa3a   :  { %8057 = vmatprep.subr.mxu1 %v9102_v16 }
 0xa3c   :  { %v2478_v54 = vpop.permute.xlu1 %2477 }
 0xa40   :  { %v2644_v55 = vpop.permute.xlu1 %2643 }
 0xa42   :  { %v2310_v56 = vpop.permute.xlu0 %2309 }
 0xa43   :  { %8050 = vmatmul.mubr.msk.f32.vlgmr.msra.gmra.mrb[20].mxu1 %vm459_vm3, %v2310_v56 }
 0xa44   :  { %8058 = vmatpush3.xpose.msk.msra.mxu1 %vm459_vm3, %v2478_v54  ;;  %v2989_v57 = vpop.permute.xlu1 %2988  ;;  %8059 = vmatprep.mubr.msk.f32.mxu1 %vm9103_vm2, %v9102_v16 }
 0xa45   :  { %8067 = vmatprep.subr.mxu1 %v9102_v16 }
 0xa46   :  { %v2476_v58 = vpop.permute.xlu0 %2475 }
 0xa47   :  { %8060 = vmatmul.mubr.msk.f32.vlgmr.msra.gmra.mrb[22].mxu1 %vm459_vm3, %v2476_v58 }
 0xa48   :  { %8068 = vmatpush3.xpose.msk.msra.mxu1 %vm459_vm3, %v2644_v55  ;;  %v3155_v21 = vpop.permute.xlu1 %3154  ;;  %8069 = vmatprep.mubr.msk.f32.mxu1 %vm9103_vm2, %v9102_v16 }
 0xa49   :  { %8077 = vmatprep.subr.mxu1 %v9102_v16 }
 0xa4a   :  { %v2642_v59 = vpop.permute.xlu0 %2641 }
 0xa4b   :  { %8070 = vmatmul.mubr.msk.f32.vlgmr.msra.gmra.mrb[24].mxu1 %vm459_vm3, %v2642_v59 }
 0xa4c   :  { %8078 = vmatpush3.xpose.msk.msra.mxu1 %vm459_vm3, %v9711_v51  ;;  %v3321_v60 = vpop.permute.xlu1 %3320  ;;  %8079 = vmatprep.mubr.msk.f32.mxu1 %vm9103_vm2, %v9102_v16 }
 0xa4d   :  { %8087 = vmatprep.subr.mxu1 %v9102_v16 }
 0xa4e   :  { %v2987_v61 = vpop.permute.xlu0 %2986 }
 0xa4f   :  { %8080 = vmatmul.mubr.msk.f32.vlgmr.msra.gmra.mrb[26].mxu1 %vm459_vm3, %v2042_v52 }
 0xa50   :  { %8088 = vmatpush3.xpose.msk.msra.mxu1 %vm459_vm3, %v2989_v57  ;;  %v2234_v62 = vpop.permute.xlu1 %2233  ;;  %8089 = vmatprep.mubr.msk.f32.mxu1 %vm9103_vm2, %v9102_v16 }
 0xa51   :  { %8043 = vmatpush3.msra.mxu0 %v2234_v62  ;;  %8097 = vmatprep.subr.mxu1 %v9102_v16 }
 0xa52   :  { %8052 = vmatprep.subr.mxu0 %v9102_v16  ;;  %v3153_v63 = vpop.permute.xlu0 %3152 }
 0xa53   :  { %8090 = vmatmul.mubr.msk.f32.vlgmr.msra.gmra.mrb[28].mxu1 %vm459_vm3, %v2987_v61 }
 0xa54   :  { %8098 = vmatpush3.xpose.msk.msra.mxu1 %vm459_vm3, %v3155_v21  ;;  %8099 = vmatprep.mubr.msk.f32.mxu1 %vm9103_vm2, %v9102_v16 }
 0xa55   :  { %8107 = vmatprep.subr.mxu1 %v9102_v16 }
 0xa56   :  { %v3319_v15 = vpop.permute.xlu0 %3318 }
 0xa57   :  { %8100 = vmatmul.mubr.msk.f32.vlgmr.msra.gmra.mrb[30].mxu1 %vm459_vm3, %v3153_v63 }
 0xa58   :  { %8108 = vmatpush3.xpose.msk.msra.mxu1 %vm459_vm3, %v3321_v60  ;;  %8109 = vmatprep.mubr.msk.f32.mxu1 %vm9103_vm2, %v9102_v16 }
 0xa5b   :  { %8110 = vmatmul.mubr.msk.f32.vlgmr.msra.gmra.mrb[32].mxu1 %vm459_vm3, %v3319_v15 }
 0xaa3   :  { %v2217_v0 = vpop.f32.mrb[22].mxu0 }
 0xaa4   :  { %v2221_v14 = vmul.f32 0.35355338, %v2217_v0  ;;  %v8041_v1 = vpop.f32.mrb[23].mxu0 }
 0xaa6   :  { %v2222_v2 = vsel %vm459_vm3, %v2221_v14, -inf }
 0xaa7   :  { %2223 = vmax.xlane.f32.xlu1 %v2222_v2 }
 0xb16   :  { %v2383_v3 = vpop.f32.mrb[20].mxu1 }
 0xb17   :  { %v2387_v4 = vmul.f32 0.35355338, %v2383_v3  ;;  %v8051_v5 = vpop.f32.mrb[21].mxu1 }
 0xb19   :  { %v2388_v6 = vsel %vm459_vm3, %v2387_v4, -inf }
 0xb1a   :  { %2389 = vmax.xlane.f32.xlu0 %v2388_v6  ;;  %v2549_v7 = vpop.f32.mrb[22].mxu1 }
 0xb1b   :  { %v2553_v8 = vmul.f32 0.35355338, %v2549_v7  ;;  %v8061_v9 = vpop.f32.mrb[23].mxu1 }
 0xb1d   :  { %v2554_v10 = vsel %vm459_vm3, %v2553_v8, -inf }
 0xb1e   :  { %2555 = vmax.xlane.f32.xlu0 %v2554_v10  ;;  %v2715_v11 = vpop.f32.mrb[24].mxu1 }
 0xb1f   :  { %v2719_v12 = vmul.f32 0.35355338, %v2715_v11  ;;  %v8071_v13 = vpop.f32.mrb[25].mxu1 }
 0xb21   :  { %v2720_v17 = vsel %vm459_vm3, %v2719_v12, -inf }
 0xb22   :  { %v2894_v18 = vpop.f32.mrb[26].mxu1  ;;  %2721 = vmax.xlane.f32.xlu1 %v2720_v17 }
 0xb23   :  { %v2898_v19 = vmul.f32 0.35355338, %v2894_v18  ;;  %v8081_v22 = vpop.f32.mrb[27].mxu1 }
 0xb25   :  { %v2899_v23 = vsel %vm459_vm3, %v2898_v19, -inf }
 0xb26   :  { %2900 = vmax.xlane.f32.xlu0 %v2899_v23  ;;  %v3060_v20 = vpop.f32.mrb[28].mxu1 }
 0xb27   :  { %v3064_v24 = vmul.f32 0.35355338, %v3060_v20  ;;  %v8091_v25 = vpop.f32.mrb[29].mxu1 }
 0xb29   :  { %v3065_v26 = vsel %vm459_vm3, %v3064_v24, -inf }
 0xb2a   :  { %v3226_v27 = vpop.f32.mrb[30].mxu1  ;;  %3066 = vmax.xlane.f32.xlu1 %v3065_v26 }
 0xb2b   :  { %v3230_v28 = vmul.f32 0.35355338, %v3226_v27  ;;  %v8101_v29 = vpop.f32.mrb[31].mxu1 }
 0xb2d   :  { %v3231_v30 = vsel %vm459_vm3, %v3230_v28, -inf }
 0xb2e   :  { %3232 = vmax.xlane.f32.xlu0 %v3231_v30  ;;  %v3392_v31 = vpop.f32.mrb[32].mxu1 }
 0xb2f   :  { %v8111_v32 = vpop.f32.mrb[33].mxu1  ;;  %v3396_v36 = vmul.f32 0.35355338, %v3392_v31 }
 0xb31   :  { %v3397_v37 = vsel %vm459_vm3, %v3396_v36, -inf }
 0xb34   :  { %v2224_v33 = vpop.xlane.xlu1 %2223 }
 0xb35   :  { %v2225_v34 = vsub.f32 %v2221_v14, %v2224_v33 }
 0xb37   :  { %v2226_v35 = vmul.f32 1.442695, %v2225_v34 }
 0xb39   :  { %8642 = vpow2.f32 %v2226_v35 }
 0xb3b   :  { %2565 = vrot.lane.b32.xlu1 %v9700_v47, %s9106_s28 }
 0xb43   :  { %v8643_v38 = vpop.eup %8642 }
 0xb44   :  { %2399 = vrot.lane.b32.xlu0 %v9700_v47, %s9107_s3  ;;  %v2228_v39 = vsel %vm459_vm3, %v8643_v38, 0.0 }
 0xb5f   :  { %3398 = vmax.xlane.f32.xlu1 %v3397_v37 }
 0xb63   :  { %2229 = vadd.xlane.f32.xlu0 %v2228_v39 }
 0xb70   :  { %2731 = vrot.lane.b32.xlu1 %v9700_v47, %s9108_s21 }
 0xba7   :  { %v2390_v40 = vpop.xlane.xlu0 %2389 }
 0xba8   :  { %v2391_v41 = vsub.f32 %v2387_v4, %v2390_v40 }
 0xbaa   :  { %v2392_v44 = vmul.f32 1.442695, %v2391_v41 }
 0xbab   :  { %v2556_v45 = vpop.xlane.xlu0 %2555 }
 0xbac   :  { %8644 = vpow2.f32 %v2392_v44  ;;  %v2557_v46 = vsub.f32 %v2553_v8, %v2556_v45 }
 0xbae   :  { %v2558_v48 = vmul.f32 1.442695, %v2557_v46 }
 0xbaf   :  { %v2722_v47 = vpop.xlane.xlu1 %2721 }
 0xbb0   :  { %8646 = vpow2.f32 %v2558_v48  ;;  %v2723_v54 = vsub.f32 %v2719_v12, %v2722_v47 }
 0xbb2   :  { %v2724_v58 = vmul.f32 1.442695, %v2723_v54  ;;  %v1953_v54 = vld [vmem:[%s10414_s10] sm:$0xff] }
 0xbb3   :  { %v2901_v55 = vpop.xlane.xlu0 %2900 }
 0xbb4   :  { %v2902_v57 = vsub.f32 %v2898_v19, %v2901_v55  ;;  %8648 = vpow2.f32 %v2724_v58  ;;  %v1954_v55 = vld [vmem:[%s10414_s10 + $0x8] sm:$0xff]  ;;  %v1955_v58 = vld [vmem:[%s10414_s10 + $0x10] sm:$0xff] }
 0xbb6   :  { %v8645_v49 = vpop.eup %8644  ;;  %v2903_v60 = vmul.f32 1.442695, %v2902_v57 }
 0xbb7   :  { %v2394_v50 = vsel %vm459_vm3, %v8645_v49, 0.0  ;;  %v3067_v56 = vpop.xlane.xlu1 %3066 }
 0xbb8   :  { %2395 = vadd.xlane.f32.xlu1 %v2394_v50  ;;  %v3068_v21 = vsub.f32 %v3064_v24, %v3067_v56  ;;  %8650 = vpow2.f32 %v2903_v60  ;;  %v8450_v56 = vpack.c.bf16 %v1954_v55, %v1953_v54 }
 0xbba   :  { %v9780_v52 = vpop.eup %8646  ;;  %v3069_v61 = vmul.f32 1.442695, %v3068_v21  ;;  %8451 = vmatprep.subr.bf16.mxu1 %v8450_v56  ;;  %v1956_v21 = vld [vmem:[%s10414_s10 + $0x18] sm:$0xff] }
 0xbbb   :  { %v2560_v53 = vsel %vm459_vm3, %v9780_v52, 0.0  ;;  %v3233_v59 = vpop.xlane.xlu0 %3232  ;;  %v2566_v15 = vpop.permute.xlu1 %2565  ;;  %8453 = vmatpush3.bf16.msra.mxu1 %v8450_v56  ;;  %v8454_v60 = vpack.c.bf16 %v1956_v21, %v1955_v58 }
 0xbbc   :  { %2561 = vadd.xlane.f32.xlu0 %v2560_v53  ;;  %v3234_v62 = vsub.f32 %v3230_v28, %v3233_v59  ;;  %8652 = vpow2.f32 %v3069_v61 }
 0xbbd   :  { %8455 = vmatprep.subr.bf16.mxu1 %v8454_v60 }
 0xbbe   :  { %v3235_v63 = vmul.f32 1.442695, %v3234_v62  ;;  %v8649_v0 = vpop.eup %8648 }
 0xbbf   :  { %v2400_v1 = vpop.permute.xlu0 %2399  ;;  %v2726_v3 = vsel %vm459_vm3, %v8649_v0, 0.0  ;;  %8457 = vmatpush3.bf16.msra.mxu1 %v8454_v60 }
 0xbc0   :  { %8654 = vpow2.f32 %v3235_v63 }
 0xbc2   :  { %v9788_v14 = vpop.eup %8650 }
 0xbc3   :  { %v2905_v8 = vsel %vm459_vm3, %v9788_v14, 0.0 }
 0xbc6   :  { %v9791_v4 = vpop.eup %8652 }
 0xbc7   :  { %v3071_v9 = vsel %vm459_vm3, %v9791_v4, 0.0 }
 0xbc9   :  { %2910 = vrot.lane.b32.xlu1 %v9711_v51, %s9105_s17 }
 0xbca   :  { %v9797_v10 = vpop.eup %8654 }
 0xbcb   :  { %v3237_v11 = vsel %vm459_vm3, %v9797_v10, 0.0 }
 0xbd2   :  { %3076 = vrot.lane.b32.xlu0 %v9711_v51, %s9107_s3 }
 0xbec   :  { %v3399_v2 = vpop.xlane.xlu1 %3398 }
 0xbed   :  { %v3400_v5 = vsub.f32 %v3396_v36, %v3399_v2  ;;  %2727 = vadd.xlane.f32.xlu1 %v2726_v3 }
 0xbef   :  { %v3401_v6 = vmul.f32 1.442695, %v3400_v5 }
 0xbf0   :  { %v2230_v7 = vpop.xlane.xlu0 %2229  ;;  %v2732_v19 = vpop.permute.xlu1 %2731 }
 0xbf1   :  { %8656 = vpow2.f32 %v3401_v6  ;;  %2906 = vadd.xlane.f32.xlu0 %v2905_v8  ;;  %3072 = vadd.xlane.f32.xlu1 %v3071_v9 }
 0xbf2   :  { %8658 = vrcp.f32 %v2230_v7 }
 0xbf5   :  { %3238 = vadd.xlane.f32.xlu0 %v3237_v11 }
 0xbfb   :  { %v9801_v12 = vpop.eup %8656 }
 0xbfc   :  { %v8659_v13 = vpop.eup %8658  ;;  %v3403_v17 = vsel %vm459_vm3, %v9801_v12, 0.0 }
 0xbfd   :  { %3404 = vadd.xlane.f32.xlu0 %v3403_v17  ;;  %v2232_v18 = vmul.f32 %v8659_v13, %v8643_v38 }
 0xbff   :  { %8045 = vmatmul.mubr.msk.f32.vlgmr.msra.gmra.mrb[24].mxu0 %vm459_vm3, %v2232_v18  ;;  %v7557_v18 = vld [vmem:[#allocation9] ss:$0 sm:$0xff] }
 0xc00   :  { %8053 = vmatpush3.msra.mxu0 %v2400_v1  ;;  %8054 = vmatprep.mubr.msk.f32.mxu0 %vm9103_vm2, %v9102_v16 }
 0xc01   :  { %8062 = vmatprep.subr.mxu0 %v9102_v16 }
 0xc02   :  { %3242 = vrot.lane.b32.xlu1 %v9711_v51, %s9106_s28 }
 0xc13   :  { %3408 = vrot.lane.b32.xlu0 %v9711_v51, %s9108_s21 }
 0xc45   :  { %v2396_v22 = vpop.xlane.xlu1 %2395 }
 0xc46   :  { %8660 = vrcp.f32 %v2396_v22 }
 0xc49   :  { %v2562_v23 = vpop.xlane.xlu0 %2561  ;;  %v2911_v51 = vpop.permute.xlu1 %2910 }
 0xc4a   :  { %8662 = vrcp.f32 %v2562_v23 }
 0xc4d   :  { %v3077_v27 = vpop.permute.xlu0 %3076 }
 0xc50   :  { %v8661_v20 = vpop.eup %8660 }
 0xc51   :  { %v2398_v24 = vmul.f32 %v8661_v20, %v8645_v49 }
 0xc53   :  { %8055 = vmatmul.mubr.msk.f32.vlgmr.msra.gmra.mrb[26].mxu0 %vm459_vm3, %v2398_v24 }
 0xc54   :  { %v8663_v25 = vpop.eup %8662  ;;  %8063 = vmatpush3.msra.mxu0 %v2566_v15  ;;  %8064 = vmatprep.mubr.msk.f32.mxu0 %vm9103_vm2, %v9102_v16 }
 0xc55   :  { %8072 = vmatprep.subr.mxu0 %v9102_v16  ;;  %v2564_v26 = vmul.f32 %v8663_v25, %v9780_v52 }
 0xc57   :  { %8065 = vmatmul.mubr.msk.f32.vlgmr.msra.gmra.mrb[28].mxu0 %vm459_vm3, %v2564_v26 }
 0xc58   :  { %8073 = vmatpush3.msra.mxu0 %v2732_v19  ;;  %8074 = vmatprep.mubr.msk.f32.mxu0 %vm9103_vm2, %v9102_v16 }
 0xc59   :  { %8082 = vmatprep.subr.mxu0 %v9102_v16 }
 0xc7a   :  { %v2728_v28 = vpop.xlane.xlu1 %2727 }
 0xc7b   :  { %8664 = vrcp.f32 %v2728_v28 }
 0xc7e   :  { %v2907_v29 = vpop.xlane.xlu0 %2906  ;;  %v3073_v30 = vpop.xlane.xlu1 %3072 }
 0xc7f   :  { %8666 = vrcp.f32 %v2907_v29 }
 0xc80   :  { %8668 = vrcp.f32 %v3073_v30 }
 0xc82   :  { %v3239_v31 = vpop.xlane.xlu0 %3238  ;;  %v3243_v40 = vpop.permute.xlu1 %3242 }
 0xc83   :  { %8670 = vrcp.f32 %v3239_v31 }
 0xc85   :  { %v8665_v32 = vpop.eup %8664 }
 0xc86   :  { %v2730_v33 = vmul.f32 %v8665_v32, %v8649_v0 }
 0xc88   :  { %8075 = vmatmul.mubr.msk.f32.vlgmr.msra.gmra.mrb[30].mxu0 %vm459_vm3, %v2730_v33 }
 0xc89   :  { %v8667_v34 = vpop.eup %8666  ;;  %8083 = vmatpush3.msra.mxu0 %v2911_v51  ;;  %8084 = vmatprep.mubr.msk.f32.mxu0 %vm9103_vm2, %v9102_v16 }
 0xc8a   :  { %v3405_v35 = vpop.xlane.xlu0 %3404  ;;  %8092 = vmatprep.subr.mxu0 %v9102_v16  ;;  %v2909_v36 = vmul.f32 %v8667_v34, %v9788_v14  ;;  %v8669_v37 = vpop.eup %8668 }
 0xc8b   :  { %8672 = vrcp.f32 %v3405_v35  ;;  %v3075_v38 = vmul.f32 %v8669_v37, %v9791_v4  ;;  %v3634_v37 = vld [vmem:[%s10416_s12 + $0x10] sm:$0xff] }
 0xc8c   :  { %8085 = vmatmul.mubr.msk.f32.vlgmr.msra.gmra.mrb[32].mxu0 %vm459_vm3, %v2909_v36  ;;  %v3633_v36 = vld [vmem:[%s10416_s12 + $0x8] sm:$0xff] }
 0xc8d   :  { %8093 = vmatpush3.msra.mxu0 %v3077_v27  ;;  %8094 = vmatprep.mubr.msk.f32.mxu0 %vm9103_vm2, %v9102_v16  ;;  %v8671_v39 = vpop.eup %8670 }
 0xc8e   :  { %8102 = vmatprep.subr.mxu0 %v9102_v16  ;;  %v3241_v41 = vmul.f32 %v8671_v39, %v9797_v10  ;;  %v3409_v44 = vpop.permute.xlu0 %3408  ;;  %v3635_v39 = vld [vmem:[%s10416_s12 + $0x18] sm:$0xff] }
 0xc90   :  { %8095 = vmatmul.mubr.msk.f32.vlgmr.msra.gmra.mrb[34].mxu0 %vm459_vm3, %v3075_v38 }
 0xc91   :  { %8103 = vmatpush3.msra.mxu0 %v3243_v40  ;;  %8104 = vmatprep.mubr.msk.f32.mxu0 %vm9103_vm2, %v9102_v16  ;;  %v8462_v40 = vpack.c.bf16 %v3635_v39, %v3634_v37 }
 0xc92   :  { %8112 = vmatprep.subr.mxu0 %v9102_v16 }
 0xc94   :  { %8105 = vmatmul.mubr.msk.f32.vlgmr.msra.gmra.mrb[36].mxu0 %vm459_vm3, %v3241_v41  ;;  %v3726_v41 = vld [vmem:[%s10418_s14] sm:$0xff] }
 0xc95   :  { %v8673_v45 = vpop.eup %8672  ;;  %8113 = vmatpush3.msra.mxu0 %v3409_v44  ;;  %8114 = vmatprep.mubr.msk.f32.mxu0 %vm9103_vm2, %v9102_v16  ;;  %v3727_v44 = vld [vmem:[%s10418_s14 + $0x8] sm:$0xff] }
 0xc96   :  { %v3407_v46 = vmul.f32 %v8673_v45, %v9801_v12  ;;  %v3728_v45 = vld [vmem:[%s10418_s14 + $0x10] sm:$0xff] }
 0xc98   :  { %8115 = vmatmul.mubr.msk.f32.vlgmr.msra.gmra.mrb[38].mxu0 %vm459_vm3, %v3407_v46  ;;  %v8466_v46 = vpack.c.bf16 %v3727_v44, %v3726_v41 }
 0xc9a   :  { %8467 = vmatprep.subr.bf16.mxu1 %v8466_v46 }
 0xcd2   :  { %v2305_v48 = vpop.f32.mrb[24].mxu0 }
 0xcd3   :  { %v8046_v49 = vpop.f32.mrb[25].mxu0 }
 0xd26   :  { %v2471_v50 = vpop.f32.mrb[26].mxu0 }
 0xd27   :  { %2808 = vrot.lane.b32.xlu1 %v2471_v50, %s9094_s25  ;;  %v8056_v52 = vpop.f32.mrb[27].mxu0  ;;  %v3730_v50 = vld [vmem:[%s10418_s14 + $0x20] sm:$0xff] }
 0xd28   :  { %v3731_v52 = vld [vmem:[%s10418_s14 + $0x28] sm:$0xff] }
 0xd2a   :  { %v2637_v53 = vpop.f32.mrb[28].mxu0 }
 0xd2b   :  { %2812 = vrot.lane.b32.xlu0 %v2637_v53, %s10442_s6  ;;  %v8066_v47 = vpop.f32.mrb[29].mxu0  ;;  %v8474_v53 = vpack.c.bf16 %v3731_v52, %v3730_v50 }
 0xd5b   :  { %v2803_v57 = vpop.f32.mrb[30].mxu0 }
 0xd5c   :  { %2816 = vrot.lane.b32.xlu0 %v2803_v57, %s10440_s20  ;;  %v8076_v59 = vpop.f32.mrb[31].mxu0 }
 0xd5d   :  { %v7560_v59 = vld [vmem:[#allocation16] ss:$0 sm:$0xff] }
 0xd5f   :  { %v2982_v61 = vpop.f32.mrb[32].mxu0 }
 0xd60   :  { %v8086_v62 = vpop.f32.mrb[33].mxu0 }
 0xd63   :  { %v3148_v63 = vpop.f32.mrb[34].mxu0 }
 0xd64   :  { %3485 = vrot.lane.b32.xlu1 %v3148_v63, %s9094_s25  ;;  %v8096_v15 = vpop.f32.mrb[35].mxu0  ;;  %v7561_v63 = vld [vmem:[#allocation18] ss:$0 sm:$0xff] }
 0xd67   :  { %v3314_v0 = vpop.f32.mrb[36].mxu0 }
 0xd68   :  { %3489 = vrot.lane.b32.xlu1 %v3314_v0, %s10442_s6  ;;  %v8106_v14 = vpop.f32.mrb[37].mxu0 }
 0xd6b   :  { %v3480_v1 = vpop.f32.mrb[38].mxu0 }
 0xd6c   :  { %3493 = vrot.lane.b32.xlu0 %v3480_v1, %s10440_s20  ;;  %v8116_v2 = vpop.f32.mrb[39].mxu0 }
 0xd6d   :  { %v3732_v2 = vld [vmem:[%s10418_s14 + $0x30] sm:$0xff] }
 0xd99   :  { %v2809_v3 = vpop.permute.xlu1 %2808 }
 0xd9a   :  { %v2819_v5 = vsel %vm459_vm3, %v2305_v48, %v2809_v3  ;;  %v3729_v48 = vld [vmem:[%s10418_s14 + $0x18] sm:$0xff] }
 0xd9b   :  { %v8470_v49 = vpack.c.bf16 %v3729_v48, %v3728_v45  ;;  %v3733_v3 = vld [vmem:[%s10418_s14 + $0x38] sm:$0xff]  ;;  %v7568_v48 = vld [vmem:[#allocation19] ss:$0 sm:$0xff] }
 0xd9d   :  { %v2813_v4 = vpop.permute.xlu0 %2812 }
 0xd9e   :  { %v2820_v6 = vsel %vm274_vm0, %v2819_v5, %v2813_v4  ;;  %v8478_v4 = vpack.c.bf16 %v3733_v3, %v3732_v2  ;;  %v7562_v5 = vld [vmem:[#allocation10] ss:$0 sm:$0xff] }
 0xdce   :  { %v2817_v7 = vpop.permute.xlu0 %2816 }
 0xdcf   :  { %v2821_v8 = vsel %vm1134_vm4, %v2820_v6, %v2817_v7 }
 0xdd0   :  { %8125 = vmatprep.mubr.msk.f32.mxu1 %vm374_vm1, %v2821_v8 }
 0xdd6   :  { %v3486_v9 = vpop.permute.xlu1 %3485 }
 0xdd7   :  { %v3496_v11 = vsel %vm459_vm3, %v2982_v61, %v3486_v9 }
 0xdda   :  { %v3490_v10 = vpop.permute.xlu1 %3489 }
 0xddb   :  { %v3497_v12 = vsel %vm274_vm0, %v3496_v11, %v3490_v10 }
 0xdde   :  { %v3494_v13 = vpop.permute.xlu0 %3493 }
 0xddf   :  { %v3498_v17 = vsel %vm1134_vm4, %v3497_v12, %v3494_v13  ;;  %v7565_v12 = vld [vmem:[#allocation12] ss:$0 sm:$0xff] }
 0xde0   :  { %8126 = vmatmul.mubr.msk.f32.vlgmr.msra.gmra.mrb[34].mxu1 %vm374_vm1, %v3498_v17 }
 0xde1   :  { %8469 = vmatpush3.bf16.msra.mxu1 %v8466_v46 }
 0xde2   :  { %8471 = vmatprep.subr.bf16.mxu1 %v8470_v49 }
 0xde5   :  { %8473 = vmatpush3.bf16.msra.mxu1 %v8470_v49 }
 0xde6   :  { %8475 = vmatprep.subr.bf16.mxu1 %v8474_v53 }
 0xde9   :  { %8477 = vmatpush3.bf16.msra.mxu1 %v8474_v53  ;;  %v7569_v53 = vld [vmem:[#allocation21] ss:$0 sm:$0xff] }
 0xdea   :  { %8479 = vmatprep.subr.bf16.mxu1 %v8478_v4 }
 0xded   :  { %8481 = vmatpush3.bf16.msra.mxu1 %v8478_v4 }
 0xdee   :  { %8179 = vmatprep.subr.mxu1 %v9102_v16 }
 0xeb3   :  { %v8127_v19 = vpop.f32.mrb[34].mxu1 }
 0xeb4   :  { %v3583_v22 = vadd.f32 %v8127_v19, %v7557_v18  ;;  %v3577_v23 = vpop.f32.mrb[35].mxu1 }
 0xeb5   :  { %v3578_v20 = vadd.f32 %v7557_v18, %v3577_v23 }
 0xeb6   :  { %v3589_v24 = vadd.f32 %v3583_v22, %v9692_v43 }
 0xeb7   :  { %v3588_v25 = vadd.f32 %v3578_v20, %v9690_v42  ;;  %v3632_v42 = vld [vmem:[%s10416_s12] sm:$0xff] }
 0xeb8   :  { %v3593_v26 = vsel %vm374_vm1, %v3589_v24, 0.0  ;;  %v8458_v38 = vpack.c.bf16 %v3633_v36, %v3632_v42  ;;  %v7573_v36 = vld [vmem:[%s10457_s15 + $0x38] sm:$0xff] }
 0xeb9   :  { %3594 = vadd.xlane.f32.xlu0 %v3593_v26  ;;  %v3590_v51 = vsel %vm374_vm1, %v3588_v25, 0.0 }
 0xeba   :  { %3591 = vadd.xlane.f32.xlu1 %v3590_v51  ;;  %8459 = vmatprep.subr.bf16.mxu0 %v8458_v38 }
 0xebb   :  { %8461 = vmatpush3.bf16.msra.mxu0 %v8458_v38 }
 0xebc   :  { %8463 = vmatprep.subr.bf16.mxu0 %v8462_v40 }
 0xebf   :  { %8465 = vmatpush3.bf16.msra.mxu0 %v8462_v40 }
 0xf46   :  { %v3595_v27 = vpop.xlane.xlu0 %3594 }
 0xf47   :  { %v3597_v28 = vmul.f32 0.03125, %v3595_v27  ;;  %v3592_v29 = vpop.xlane.xlu1 %3591 }
 0xf48   :  { %v3596_v30 = vmul.f32 0.03125, %v3592_v29 }
 0xf49   :  { %v3599_v31 = vsub.f32 %v3589_v24, %v3597_v28 }
 0xf4a   :  { %v3598_v32 = vsub.f32 %v3588_v25, %v3596_v30 }
 0xf4b   :  { %v3601_v33 = vmul.f32 %v3599_v31, %v3599_v31 }
 0xf4c   :  { %v3600_v34 = vmul.f32 %v3598_v32, %v3598_v32 }
 0xf4d   :  { %v3605_v35 = vsel %vm374_vm1, %v3601_v33, 0.0 }
 0xf4e   :  { %3606 = vadd.xlane.f32.xlu1 %v3605_v35  ;;  %v3602_v43 = vsel %vm374_vm1, %v3600_v34, 0.0  ;;  %v7570_v34 = vld [vmem:[%s10457_s15 + $0x20] sm:$0xff]  ;;  %v7571_v35 = vld [vmem:[%s10457_s15 + $0x28] sm:$0xff] }
 0xf4f   :  { %3603 = vadd.xlane.f32.xlu0 %v3602_v43  ;;  %v7572_v43 = vld [vmem:[%s10457_s15 + $0x30] sm:$0xff]  ;;  %v8482_v42 = vpack.c.bf16 %v7571_v35, %v7570_v34 }
 0xf50   :  { %v8486_v37 = vpack.c.bf16 %v7573_v36, %v7572_v43 }
 0xf51   :  { %8483 = vmatprep.subr.bf16.mxu0 %v8482_v42 }
 0xfdb   :  { %v3607_v47 = vpop.xlane.xlu1 %3606 }
 0xfdc   :  { %v3609_v54 = vmul.f32 0.03125, %v3607_v47  ;;  %v3604_v55 = vpop.xlane.xlu0 %3603 }
 0xfdd   :  { %v3608_v56 = vmul.f32 0.03125, %v3604_v55 }
 0xfde   :  { %v3611_v57 = vadd.f32 1e-05, %v3609_v54 }
 0xfdf   :  { %v3610_v58 = vadd.f32 1e-05, %v3608_v56 }
 0xfe0   :  { %8674 = vrsqrt.f32 %v3611_v57  ;;  %v7579_v57 = vld [vmem:[%s10458_s9 + $0x1] ss:$0 sm:$0xff]  ;;  %s10462_s9 = smov 40  }
 0xfe1   :  { %8676 = vrsqrt.f32 %v3610_v58 }
 0xfea   :  { %v8675_v21 = vpop.eup %8674 }
 0xfeb   :  { %v8677_v60 = vpop.eup %8676  ;;  %v3615_v61 = vmul.f32 %v8675_v21, %v3599_v31 }
 0xfec   :  { %v3614_v62 = vmul.f32 %v8677_v60, %v3598_v32 }
 0xfed   :  { %v3623_v15 = vmul.f32 %v7560_v59, %v3615_v61 }
 0xfee   :  { %v3622_v0 = vmul.f32 %v7560_v59, %v3614_v62 }
 0xfef   :  { %v3631_v1 = vadd.f32 %v7561_v63, %v3623_v15 }
 0xff0   :  { %v3630_v14 = vadd.f32 %v7561_v63, %v3622_v0 }
 0xff2   :  { %8136 = vmatprep.mubr.msk.f32.mxu0 %vm374_vm1, %v3630_v14 }
 0xff3   :  { %8137 = vmatmul.mubr.msk.f32.vlgmr.msra.gmra.mrb[40].mxu0 %vm374_vm1, %v3631_v1 }
 0xff4   :  { %8485 = vmatpush3.bf16.msra.mxu0 %v8482_v42 }
 0xff5   :  { %8487 = vmatprep.subr.bf16.mxu0 %v8486_v37 }
 0xff8   :  { %8489 = vmatpush3.bf16.msra.mxu0 %v8486_v37 }
 0xff9   :  { %8169 = vmatprep.subr.mxu0 %v9102_v16 }
0x10c6   :  { %v8138_v6 = vpop.f32.mrb[40].mxu0 }
0x10c7   :  { %v3721_v7 = vadd.f32 %v8138_v6, %v7562_v5  ;;  %v3715_v8 = vpop.f32.mrb[41].mxu0 }
0x10c8   :  { %v3716_v9 = vadd.f32 %v7562_v5, %v3715_v8 }
0x10c9   :  { %v3725_v11 = vmax.f32 %v3721_v7, 0.0 }
0x10ca   :  { %v3724_v10 = vmax.f32 %v3716_v9, 0.0 }
0x10cc   :  { %8155 = vmatprep.mubr.msk.f32.mxu1 %vm3741_vm5, %v3724_v10 }
0x10cd   :  { %8156 = vmatmul.mubr.msk.f32.vlgmr.msra.gmra.mrb[36].mxu1 %vm3741_vm5, %v3725_v11 }
0x10ce   :  { %8181 = vmatprep.mubr.msk.f32.mxu1 %vm9103_vm2, %v9102_v16 }
0x11a0   :  { %v8157_v13 = vpop.f32.mrb[36].mxu1 }
0x11a1   :  { %v3820_v17 = vadd.f32 %v8157_v13, %v7565_v12  ;;  %v3814_v18 = vpop.f32.mrb[37].mxu1 }
0x11a2   :  { %v3815_v19 = vadd.f32 %v7565_v12, %v3814_v18 }
0x11a3   :  { %v3826_v22 = vadd.f32 %v3820_v17, %v3631_v1 }
0x11a4   :  { %v3825_v23 = vadd.f32 %v3815_v19, %v3630_v14 }
0x11a5   :  { %v3830_v20 = vsel %vm374_vm1, %v3826_v22, 0.0 }
0x11a6   :  { %3831 = vadd.xlane.f32.xlu1 %v3830_v20  ;;  %v3827_v24 = vsel %vm374_vm1, %v3825_v23, 0.0 }
0x11a7   :  { %3828 = vadd.xlane.f32.xlu0 %v3827_v24 }
0x1233   :  { %v3832_v25 = vpop.xlane.xlu1 %3831 }
0x1234   :  { %v3834_v26 = vmul.f32 0.03125, %v3832_v25  ;;  %v3829_v51 = vpop.xlane.xlu0 %3828 }
0x1235   :  { %v3833_v27 = vmul.f32 0.03125, %v3829_v51 }
0x1236   :  { %v3836_v28 = vsub.f32 %v3826_v22, %v3834_v26 }
0x1237   :  { %v3835_v29 = vsub.f32 %v3825_v23, %v3833_v27 }
0x1238   :  { %v3838_v30 = vmul.f32 %v3836_v28, %v3836_v28 }
0x1239   :  { %v3837_v31 = vmul.f32 %v3835_v29, %v3835_v29 }
0x123a   :  { %v3842_v32 = vsel %vm374_vm1, %v3838_v30, 0.0 }
0x123b   :  { %3843 = vadd.xlane.f32.xlu1 %v3842_v32  ;;  %v3839_v33 = vsel %vm374_vm1, %v3837_v31, 0.0 }
0x123c   :  { %3840 = vadd.xlane.f32.xlu0 %v3839_v33 }
0x12c8   :  { %v3844_v38 = vpop.xlane.xlu1 %3843 }
0x12c9   :  { %v3846_v39 = vmul.f32 0.03125, %v3844_v38  ;;  %v3841_v40 = vpop.xlane.xlu0 %3840 }
0x12ca   :  { %v3845_v41 = vmul.f32 0.03125, %v3841_v40 }
0x12cb   :  { %v3848_v44 = vadd.f32 1e-05, %v3846_v39 }
0x12cc   :  { %v3847_v45 = vadd.f32 1e-05, %v3845_v41 }
0x12cd   :  { %8678 = vrsqrt.f32 %v3848_v44 }
0x12ce   :  { %8680 = vrsqrt.f32 %v3847_v45 }
0x12d7   :  { %v8679_v46 = vpop.eup %8678 }
0x12d8   :  { %v8681_v49 = vpop.eup %8680  ;;  %v3852_v50 = vmul.f32 %v8679_v46, %v3836_v28 }
0x12d9   :  { %v3851_v52 = vmul.f32 %v8681_v49, %v3835_v29 }
0x12da   :  { %v3860_v47 = vmul.f32 %v7568_v48, %v3852_v50 }
0x12db   :  { %v3859_v54 = vmul.f32 %v7568_v48, %v3851_v52 }
0x12dc   :  { %v9936_v56 = vadd.f32 %v7569_v53, %v3860_v47 }
0x12dd   :  { %v9934_v55 = vadd.f32 %v7569_v53, %v3859_v54 }
0x12df   :  { %8166 = vmatprep.mubr.msk.f32.mxu0 %vm374_vm1, %v9934_v55 }
0x12e0   :  { %8167 = vmatmul.mubr.msk.f32.vlgmr.msra.gmra.mrb[42].mxu0 %vm374_vm1, %v9936_v56 }
0x12e1   :  { %8171 = vmatprep.mubr.msk.f32.mxu0 %vm9103_vm2, %v9102_v16 }
0x13b3   :  { %v8168_v58 = vpop.f32.mrb[42].mxu0 }
0x13b4   :  { %v3961_v21 = vpop.f32.mrb[43].mxu0  ;;  %v9961_v60 = vadd.f32 %v8168_v58, %v7579_v57 }
0x13b5   :  { %v9947_v59 = vadd.f32 %v7579_v57, %v3961_v21 }
0x13b7   :  { %4137 = vrot.lane.b32.xlu1 %v9947_v59, %s9107_s3  ;;  %3971 = vrot.lane.b32.xlu0 %v9947_v59, %s9105_s17 }
0x13bb   :  { %4135 = vrot.lane.b32.xlu1 %v9947_v59, %s9104_s18  ;;  %4303 = vrot.lane.b32.xlu0 %v9947_v59, %s9106_s28 }
0x13bf   :  { %4301 = vrot.lane.b32.xlu1 %v9947_v59, %s9109_s8  ;;  %4469 = vrot.lane.b32.xlu0 %v9947_v59, %s9108_s21 }
0x13c3   :  { %4467 = vrot.lane.b32.xlu1 %v9947_v59, %s9110_s27  ;;  %4649 = vrot.lane.b32.xlu0 %v9961_v60, %s9105_s17 }
0x13c7   :  { %4815 = vrot.lane.b32.xlu1 %v9961_v60, %s9107_s3  ;;  %4813 = vrot.lane.b32.xlu0 %v9961_v60, %s9104_s18 }
0x13cb   :  { %4981 = vrot.lane.b32.xlu1 %v9961_v60, %s9106_s28  ;;  %4979 = vrot.lane.b32.xlu0 %v9961_v60, %s9109_s8 }
0x13cf   :  { %5147 = vrot.lane.b32.xlu1 %v9961_v60, %s9108_s21  ;;  %5145 = vrot.lane.b32.xlu0 %v9961_v60, %s9110_s27 }
0x13d3   :  { %4059 = vrot.lane.b32.xlu1 %v9947_v59, %s9112_s5 }
0x1429   :  { %v4138_v61 = vpop.permute.xlu1 %4137  ;;  %v3972_v62 = vpop.permute.xlu0 %3971 }
0x142a   :  { %8170 = vmatpush3.xpose.msk.msra.mxu0 %vm459_vm3, %v3972_v62  ;;  %8180 = vmatpush3.xpose.msk.msra.mxu1 %vm459_vm3, %v4138_v61 }
0x142b   :  { %8189 = vmatprep.subr.mxu1 %v9102_v16  ;;  %8174 = vmatprep.subr.mxu0 %v9102_v16 }
0x142d   :  { %v4136_v63 = vpop.permute.xlu1 %4135  ;;  %8172 = vmatmul.mubr.msk.f32.vlgmr.msra.gmra.mrb[44].mxu0 %vm459_vm3, %v9947_v59  ;;  %v4304_v15 = vpop.permute.xlu0 %4303 }
0x142e   :  { %8182 = vmatmul.mubr.msk.f32.vlgmr.msra.gmra.mrb[38].mxu1 %vm459_vm3, %v4136_v63  ;;  %8176 = vmatprep.mubr.msk.f32.mxu0 %vm9103_vm2, %v9102_v16 }
0x142f   :  { %8190 = vmatpush3.xpose.msk.msra.mxu1 %vm459_vm3, %v4304_v15  ;;  %8191 = vmatprep.mubr.msk.f32.mxu1 %vm9103_vm2, %v9102_v16 }
0x1430   :  { %8199 = vmatprep.subr.mxu1 %v9102_v16 }
0x1431   :  { %v4302_v0 = vpop.permute.xlu1 %4301  ;;  %v4470_v14 = vpop.permute.xlu0 %4469 }
0x1432   :  { %8192 = vmatmul.mubr.msk.f32.vlgmr.msra.gmra.mrb[40].mxu1 %vm459_vm3, %v4302_v0 }
0x1433   :  { %8200 = vmatpush3.xpose.msk.msra.mxu1 %vm459_vm3, %v4470_v14  ;;  %8201 = vmatprep.mubr.msk.f32.mxu1 %vm9103_vm2, %v9102_v16 }
0x1434   :  { %8209 = vmatprep.subr.mxu1 %v9102_v16 }
0x1435   :  { %v4468_v1 = vpop.permute.xlu1 %4467  ;;  %v4650_v2 = vpop.permute.xlu0 %4649 }
0x1436   :  { %8202 = vmatmul.mubr.msk.f32.vlgmr.msra.gmra.mrb[42].mxu1 %vm459_vm3, %v4468_v1 }
0x1437   :  { %8210 = vmatpush3.xpose.msk.msra.mxu1 %vm459_vm3, %v4650_v2  ;;  %8211 = vmatprep.mubr.msk.f32.mxu1 %vm9103_vm2, %v9102_v16 }
0x1438   :  { %8219 = vmatprep.subr.mxu1 %v9102_v16 }
0x1439   :  { %v4816_v3 = vpop.permute.xlu1 %4815  ;;  %v4814_v4 = vpop.permute.xlu0 %4813 }
0x143a   :  { %8212 = vmatmul.mubr.msk.f32.vlgmr.msra.gmra.mrb[44].mxu1 %vm459_vm3, %v9961_v60 }
0x143b   :  { %8220 = vmatpush3.xpose.msk.msra.mxu1 %vm459_vm3, %v4816_v3  ;;  %8221 = vmatprep.mubr.msk.f32.mxu1 %vm9103_vm2, %v9102_v16 }
0x143c   :  { %8229 = vmatprep.subr.mxu1 %v9102_v16 }
0x143d   :  { %v4982_v5 = vpop.permute.xlu1 %4981  ;;  %v4980_v6 = vpop.permute.xlu0 %4979 }
0x143e   :  { %8222 = vmatmul.mubr.msk.f32.vlgmr.msra.gmra.mrb[46].mxu1 %vm459_vm3, %v4814_v4 }
0x143f   :  { %8230 = vmatpush3.xpose.msk.msra.mxu1 %vm459_vm3, %v4982_v5  ;;  %8231 = vmatprep.mubr.msk.f32.mxu1 %vm9103_vm2, %v9102_v16 }
0x1440   :  { %8239 = vmatprep.subr.mxu1 %v9102_v16 }
0x1441   :  { %v5148_v7 = vpop.permute.xlu1 %5147  ;;  %v5146_v8 = vpop.permute.xlu0 %5145 }
0x1442   :  { %8232 = vmatmul.mubr.msk.f32.vlgmr.msra.gmra.mrb[48].mxu1 %vm459_vm3, %v4980_v6 }
0x1443   :  { %8240 = vmatpush3.xpose.msk.msra.mxu1 %vm459_vm3, %v5148_v7  ;;  %8241 = vmatprep.mubr.msk.f32.mxu1 %vm9103_vm2, %v9102_v16 }
0x1445   :  { %v4060_v9 = vpop.permute.xlu1 %4059 }
0x1446   :  { %8175 = vmatpush3.msra.mxu0 %v4060_v9  ;;  %8242 = vmatmul.mubr.msk.f32.vlgmr.msra.gmra.mrb[50].mxu1 %vm459_vm3, %v5146_v8 }
0x1447   :  { %8184 = vmatprep.subr.mxu0 %v9102_v16 }
0x1500   :  { %v4043_v10 = vpop.f32.mrb[44].mxu0 }
0x1501   :  { %v4047_v11 = vmul.f32 0.35355338, %v4043_v10  ;;  %v8173_v12 = vpop.f32.mrb[45].mxu0  ;;  %v4209_v13 = vpop.f32.mrb[38].mxu1 }
0x1502   :  { %v4213_v17 = vmul.f32 0.35355338, %v4209_v13  ;;  %v8183_v18 = vpop.f32.mrb[39].mxu1 }
0x1503   :  { %v4048_v19 = vsel %vm459_vm3, %v4047_v11, -inf }
0x1504   :  { %4049 = vmax.xlane.f32.xlu1 %v4048_v19  ;;  %v4214_v22 = vsel %vm459_vm3, %v4213_v17, -inf }
0x1505   :  { %4215 = vmax.xlane.f32.xlu0 %v4214_v22  ;;  %v4375_v23 = vpop.f32.mrb[40].mxu1 }
0x1506   :  { %v4379_v20 = vmul.f32 0.35355338, %v4375_v23  ;;  %v8193_v24 = vpop.f32.mrb[41].mxu1 }
0x1508   :  { %v4380_v25 = vsel %vm459_vm3, %v4379_v20, -inf }
0x1509   :  { %4381 = vmax.xlane.f32.xlu0 %v4380_v25  ;;  %v4541_v26 = vpop.f32.mrb[42].mxu1 }
0x150a   :  { %v4545_v51 = vmul.f32 0.35355338, %v4541_v26  ;;  %v8203_v27 = vpop.f32.mrb[43].mxu1 }
0x150c   :  { %v4546_v28 = vsel %vm459_vm3, %v4545_v51, -inf }
0x150d   :  { %4547 = vmax.xlane.f32.xlu1 %v4546_v28  ;;  %v4721_v29 = vpop.f32.mrb[44].mxu1 }
0x150e   :  { %v4725_v30 = vmul.f32 0.35355338, %v4721_v29  ;;  %v8213_v31 = vpop.f32.mrb[45].mxu1 }
0x1510   :  { %v4726_v32 = vsel %vm459_vm3, %v4725_v30, -inf }
0x1511   :  { %4727 = vmax.xlane.f32.xlu0 %v4726_v32  ;;  %v4887_v33 = vpop.f32.mrb[46].mxu1 }
0x1512   :  { %v4891_v34 = vmul.f32 0.35355338, %v4887_v33  ;;  %v8223_v35 = vpop.f32.mrb[47].mxu1 }
0x1514   :  { %v4892_v43 = vsel %vm459_vm3, %v4891_v34, -inf }
0x1515   :  { %4893 = vmax.xlane.f32.xlu1 %v4892_v43  ;;  %v5053_v42 = vpop.f32.mrb[48].mxu1 }
0x1516   :  { %v5057_v36 = vmul.f32 0.35355338, %v5053_v42  ;;  %v8233_v37 = vpop.f32.mrb[49].mxu1 }
0x1518   :  { %v5058_v38 = vsel %vm459_vm3, %v5057_v36, -inf }
0x1519   :  { %5059 = vmax.xlane.f32.xlu0 %v5058_v38  ;;  %v5219_v39 = vpop.f32.mrb[50].mxu1 }
0x151a   :  { %v8243_v40 = vpop.f32.mrb[51].mxu1  ;;  %v5223_v41 = vmul.f32 0.35355338, %v5219_v39 }
0x151c   :  { %v5224_v44 = vsel %vm459_vm3, %v5223_v41, -inf }
0x1526   :  { %4391 = vrot.lane.b32.xlu1 %v9947_v59, %s9114_s4 }
0x152f   :  { %4225 = vrot.lane.b32.xlu0 %v9947_v59, %s9111_s23 }
0x154a   :  { %5225 = vmax.xlane.f32.xlu1 %v5224_v44 }
0x155b   :  { %4557 = vrot.lane.b32.xlu1 %v9947_v59, %s10462_s9 }
0x1591   :  { %v4050_v45 = vpop.xlane.xlu1 %4049 }
0x1592   :  { %v4051_v46 = vsub.f32 %v4047_v11, %v4050_v45  ;;  %v4216_v48 = vpop.xlane.xlu0 %4215 }
0x1593   :  { %v4217_v49 = vsub.f32 %v4213_v17, %v4216_v48 }
0x1594   :  { %v4052_v50 = vmul.f32 1.442695, %v4051_v46 }
0x1595   :  { %v4218_v52 = vmul.f32 1.442695, %v4217_v49 }
0x1596   :  { %8682 = vpow2.f32 %v4052_v50  ;;  %v4382_v53 = vpop.xlane.xlu0 %4381 }
0x1597   :  { %8684 = vpow2.f32 %v4218_v52  ;;  %v4383_v47 = vsub.f32 %v4379_v20, %v4382_v53 }
0x1599   :  { %v4384_v54 = vmul.f32 1.442695, %v4383_v47 }
0x159a   :  { %v4548_v63 = vpop.xlane.xlu1 %4547 }
0x159b   :  { %8686 = vpow2.f32 %v4384_v54  ;;  %v4549_v15 = vsub.f32 %v4545_v51, %v4548_v63 }
0x159d   :  { %v4550_v2 = vmul.f32 1.442695, %v4549_v15  ;;  %v7575_v15 = vld [vmem:[%s10459_s0 + $0x20] sm:$0xff] }
0x159e   :  { %v4728_v0 = vpop.xlane.xlu0 %4727 }
0x159f   :  { %v4729_v1 = vsub.f32 %v4725_v30, %v4728_v0  ;;  %8688 = vpow2.f32 %v4550_v2  ;;  %v7576_v0 = vld [vmem:[%s10459_s0 + $0x28] sm:$0xff]  ;;  %v7577_v2 = vld [vmem:[%s10459_s0 + $0x30] sm:$0xff] }
0x15a0   :  { %v8683_v57 = vpop.eup %8682 }
0x15a1   :  { %v8685_v58 = vpop.eup %8684  ;;  %v4054_v21 = vsel %vm459_vm3, %v8683_v57, 0.0  ;;  %v4730_v5 = vmul.f32 1.442695, %v4729_v1 }
0x15a2   :  { %4055 = vadd.xlane.f32.xlu0 %v4054_v21  ;;  %v4220_v61 = vsel %vm459_vm3, %v8685_v58, 0.0  ;;  %v4894_v14 = vpop.xlane.xlu1 %4893 }
0x15a3   :  { %4221 = vadd.xlane.f32.xlu1 %v4220_v61  ;;  %v4895_v3 = vsub.f32 %v4891_v34, %v4894_v14  ;;  %8690 = vpow2.f32 %v4730_v5  ;;  %v8490_v14 = vpack.c.bf16 %v7576_v0, %v7575_v15 }
0x15a5   :  { %v10037_v59 = vpop.eup %8686  ;;  %v4896_v6 = vmul.f32 1.442695, %v4895_v3  ;;  %8491 = vmatprep.subr.bf16.mxu1 %v8490_v14  ;;  %v7578_v3 = vld [vmem:[%s10459_s0 + $0x38] sm:$0xff] }
0x15a6   :  { %v4386_v62 = vsel %vm459_vm3, %v10037_v59, 0.0  ;;  %v5060_v4 = vpop.xlane.xlu0 %5059  ;;  %v4392_v9 = vpop.permute.xlu1 %4391  ;;  %8493 = vmatpush3.bf16.msra.mxu1 %v8490_v14  ;;  %v8494_v5 = vpack.c.bf16 %v7578_v3, %v7577_v2 }
0x15a7   :  { %4387 = vadd.xlane.f32.xlu0 %v4386_v62  ;;  %v5061_v7 = vsub.f32 %v5057_v36, %v5060_v4  ;;  %8692 = vpow2.f32 %v4896_v6 }
0x15a8   :  { %8495 = vmatprep.subr.bf16.mxu1 %v8494_v5 }
0x15a9   :  { %v5062_v8 = vmul.f32 1.442695, %v5061_v7  ;;  %v8689_v10 = vpop.eup %8688 }
0x15aa   :  { %v4552_v13 = vsel %vm459_vm3, %v8689_v10, 0.0  ;;  %v4226_v51 = vpop.permute.xlu0 %4225  ;;  %8497 = vmatpush3.bf16.msra.mxu1 %v8494_v5 }
0x15ab   :  { %8694 = vpow2.f32 %v5062_v8 }
0x15ad   :  { %v10045_v11 = vpop.eup %8690 }
0x15ae   :  { %v4732_v23 = vsel %vm459_vm3, %v10045_v11, 0.0 }
0x15b1   :  { %v10048_v17 = vpop.eup %8692 }
0x15b2   :  { %v4898_v22 = vsel %vm459_vm3, %v10048_v17, 0.0 }
0x15b4   :  { %4737 = vrot.lane.b32.xlu1 %v9961_v60, %s9112_s5 }
0x15b5   :  { %v10054_v20 = vpop.eup %8694 }
0x15b6   :  { %v5064_v24 = vsel %vm459_vm3, %v10054_v20, 0.0 }
0x15bd   :  { %4903 = vrot.lane.b32.xlu0 %v9961_v60, %s9111_s23  ;;  %s10463_s23 = smov 16  }
0x15d7   :  { %v5226_v12 = vpop.xlane.xlu1 %5225 }
0x15d8   :  { %v5227_v18 = vsub.f32 %v5223_v41, %v5226_v12  ;;  %4553 = vadd.xlane.f32.xlu1 %v4552_v13 }
0x15da   :  { %v5228_v19 = vmul.f32 1.442695, %v5227_v18 }
0x15db   :  { %v4558_v27 = vpop.permute.xlu1 %4557 }
0x15dc   :  { %8696 = vpow2.f32 %v5228_v19  ;;  %4899 = vadd.xlane.f32.xlu1 %v4898_v22  ;;  %4733 = vadd.xlane.f32.xlu0 %v4732_v23 }
0x15e0   :  { %5065 = vadd.xlane.f32.xlu0 %v5064_v24 }
0x15e6   :  { %v10058_v25 = vpop.eup %8696 }
0x15e7   :  { %v5230_v26 = vsel %vm459_vm3, %v10058_v25, 0.0 }
0x15e8   :  { %5231 = vadd.xlane.f32.xlu0 %v5230_v26 }
0x15ed   :  { %5069 = vrot.lane.b32.xlu1 %v9961_v60, %s9114_s4 }
0x15fe   :  { %5235 = vrot.lane.b32.xlu0 %v9961_v60, %s10462_s9 }
0x162f   :  { %v4056_v28 = vpop.xlane.xlu0 %4055 }
0x1630   :  { %8698 = vrcp.f32 %v4056_v28  ;;  %v4222_v29 = vpop.xlane.xlu1 %4221 }
0x1631   :  { %8700 = vrcp.f32 %v4222_v29  ;;  %v8758_v29 = vld [vmem:[%s10461_s19] sm:$0xff] }
0x1634   :  { %v4388_v30 = vpop.xlane.xlu0 %4387  ;;  %v4738_v43 = vpop.permute.xlu1 %4737 }
0x1635   :  { %8702 = vrcp.f32 %v4388_v30  ;;  %v7606_v30 = vld [vmem:[#allocation6 + $0x1] ss:$0 sm:$0xff] }
0x1638   :  { %v4904_v42 = vpop.permute.xlu0 %4903 }
0x163a   :  { %v8699_v31 = vpop.eup %8698 }
0x163b   :  { %v4058_v32 = vmul.f32 %v8699_v31, %v8683_v57  ;;  %v8701_v33 = vpop.eup %8700 }
0x163c   :  { %v4224_v34 = vmul.f32 %v8701_v33, %v8685_v58 }
0x163d   :  { %8177 = vmatmul.mubr.msk.f32.vlgmr.msra.gmra.mrb[46].mxu0 %vm459_vm3, %v4058_v32 }
0x163e   :  { %8185 = vmatpush3.msra.mxu0 %v4226_v51  ;;  %8186 = vmatprep.mubr.msk.f32.mxu0 %vm9103_vm2, %v9102_v16 }
0x163f   :  { %8194 = vmatprep.subr.mxu0 %v9102_v16  ;;  %v8703_v60 = vpop.eup %8702 }
0x1640   :  { %v4390_v35 = vmul.f32 %v8703_v60, %v10037_v59 }
0x1641   :  { %8187 = vmatmul.mubr.msk.f32.vlgmr.msra.gmra.mrb[48].mxu0 %vm459_vm3, %v4224_v34 }
0x1642   :  { %8195 = vmatpush3.msra.mxu0 %v4392_v9  ;;  %8196 = vmatprep.mubr.msk.f32.mxu0 %vm9103_vm2, %v9102_v16 }
0x1643   :  { %8204 = vmatprep.subr.mxu0 %v9102_v16 }
0x1645   :  { %8197 = vmatmul.mubr.msk.f32.vlgmr.msra.gmra.mrb[50].mxu0 %vm459_vm3, %v4390_v35 }
0x1646   :  { %8205 = vmatpush3.msra.mxu0 %v4558_v27  ;;  %8206 = vmatprep.mubr.msk.f32.mxu0 %vm9103_vm2, %v9102_v16 }
0x1647   :  { %8214 = vmatprep.subr.mxu0 %v9102_v16 }
0x1665   :  { %v4554_v36 = vpop.xlane.xlu1 %4553 }
0x1666   :  { %8704 = vrcp.f32 %v4554_v36 }
0x1669   :  { %v4734_v37 = vpop.xlane.xlu0 %4733  ;;  %v4900_v38 = vpop.xlane.xlu1 %4899 }
0x166a   :  { %8706 = vrcp.f32 %v4734_v37 }
0x166b   :  { %8708 = vrcp.f32 %v4900_v38 }
0x166d   :  { %v5066_v39 = vpop.xlane.xlu0 %5065  ;;  %v5070_v52 = vpop.permute.xlu1 %5069 }
0x166e   :  { %8710 = vrcp.f32 %v5066_v39 }
0x1670   :  { %v8705_v40 = vpop.eup %8704 }
0x1671   :  { %v4556_v41 = vmul.f32 %v8705_v40, %v8689_v10 }
0x1673   :  { %8207 = vmatmul.mubr.msk.f32.vlgmr.msra.gmra.mrb[52].mxu0 %vm459_vm3, %v4556_v41 }
0x1674   :  { %8215 = vmatpush3.msra.mxu0 %v4738_v43  ;;  %8216 = vmatprep.mubr.msk.f32.mxu0 %vm9103_vm2, %v9102_v16  ;;  %v8707_v44 = vpop.eup %8706 }
0x1675   :  { %v5232_v45 = vpop.xlane.xlu0 %5231  ;;  %8224 = vmatprep.subr.mxu0 %v9102_v16  ;;  %v4736_v46 = vmul.f32 %v8707_v44, %v10045_v11  ;;  %v8709_v48 = vpop.eup %8708 }
0x1676   :  { %8712 = vrcp.f32 %v5232_v45  ;;  %v4902_v49 = vmul.f32 %v8709_v48, %v10048_v17  ;;  %v7614_v48 = vld [vmem:[%s10460_s2 + $0x38] sm:$0xff] }
0x1677   :  { %8217 = vmatmul.mubr.msk.f32.vlgmr.msra.gmra.mrb[54].mxu0 %vm459_vm3, %v4736_v46 }
0x1678   :  { %8225 = vmatpush3.msra.mxu0 %v4904_v42  ;;  %8226 = vmatprep.mubr.msk.f32.mxu0 %vm9103_vm2, %v9102_v16  ;;  %v8711_v50 = vpop.eup %8710 }
0x1679   :  { %8234 = vmatprep.subr.mxu0 %v9102_v16  ;;  %v5068_v53 = vmul.f32 %v8711_v50, %v10054_v20  ;;  %v5236_v54 = vpop.permute.xlu0 %5235  ;;  %v7611_v50 = vld [vmem:[%s10460_s2 + $0x20] sm:$0xff] }
0x167b   :  { %8227 = vmatmul.mubr.msk.f32.vlgmr.msra.gmra.mrb[56].mxu0 %vm459_vm3, %v4902_v49 }
0x167c   :  { %8235 = vmatpush3.msra.mxu0 %v5070_v52  ;;  %8236 = vmatprep.mubr.msk.f32.mxu0 %vm9103_vm2, %v9102_v16  ;;  %v7612_v52 = vld [vmem:[%s10460_s2 + $0x28] sm:$0xff] }
0x167d   :  { %8244 = vmatprep.subr.mxu0 %v9102_v16 }
0x167f   :  { %8237 = vmatmul.mubr.msk.f32.vlgmr.msra.gmra.mrb[58].mxu0 %vm459_vm3, %v5068_v53  ;;  %v8596_v53 = vpack.i.bf16 %v7612_v52, %v7611_v50 }
0x1680   :  { %v8713_v47 = vpop.eup %8712  ;;  %8245 = vmatpush3.msra.mxu0 %v5236_v54  ;;  %8246 = vmatprep.mubr.msk.f32.mxu0 %vm9103_vm2, %v9102_v16 }
0x1681   :  { %v5234_v57 = vmul.f32 %v8713_v47, %v10058_v25  ;;  %v8498_v47 = vpack.c.bf16 %v7612_v52, %v7611_v50 }
0x1683   :  { %8247 = vmatmul.mubr.msk.f32.vlgmr.msra.gmra.mrb[60].mxu0 %vm459_vm3, %v5234_v57  ;;  %8499 = vmatprep.subr.bf16.mxu0 %v8498_v47  ;;  %v7619_v57 = vld [vmem:[#allocation7 + $0x1] ss:$0 sm:$0xff] }
0x1684   :  { %8501 = vmatpush3.bf16.msra.mxu0 %v8498_v47 }
0x1710   :  { %v4131_v58 = vpop.f32.mrb[46].mxu0 }
0x1711   :  { %v8178_v21 = vpop.f32.mrb[47].mxu0 }
0x1714   :  { %v4297_v61 = vpop.f32.mrb[48].mxu0 }
0x1715   :  { %4634 = vrot.lane.b32.xlu1 %v4297_v61, %s9094_s25  ;;  %v8188_v59 = vpop.f32.mrb[49].mxu0 }
0x1718   :  { %v4463_v62 = vpop.f32.mrb[50].mxu0 }
0x1719   :  { %4638 = vrot.lane.b32.xlu0 %v4463_v62, %s10463_s23  ;;  %v8198_v63 = vpop.f32.mrb[51].mxu0 }
0x1746   :  { %v4629_v1 = vpop.f32.mrb[52].mxu0 }
0x1747   :  { %4642 = vrot.lane.b32.xlu0 %v4629_v1, %s10464_s11  ;;  %v8208_v4 = vpop.f32.mrb[53].mxu0 }
0x174a   :  { %v4809_v6 = vpop.f32.mrb[54].mxu0 }
0x174b   :  { %v8218_v7 = vpop.f32.mrb[55].mxu0 }
0x174c   :  { %v7609_v7 = vld [vmem:[#allocation13 + $0x1] ss:$0 sm:$0xff] }
0x174e   :  { %v4975_v8 = vpop.f32.mrb[56].mxu0 }
0x174f   :  { %5312 = vrot.lane.b32.xlu1 %v4975_v8, %s9094_s25  ;;  %v8228_v9 = vpop.f32.mrb[57].mxu0 }
0x1752   :  { %v5141_v10 = vpop.f32.mrb[58].mxu0 }
0x1753   :  { %5316 = vrot.lane.b32.xlu1 %v5141_v10, %s10463_s23  ;;  %v8238_v11 = vpop.f32.mrb[59].mxu0 }
0x1754   :  { %v8759_v11 = vld [vmem:[%s10461_s19 + $0x8] sm:$0xff] }
0x1756   :  { %v5307_v12 = vpop.f32.mrb[60].mxu0 }
0x1757   :  { %5320 = vrot.lane.b32.xlu0 %v5307_v12, %s10464_s11  ;;  %v8248_v13 = vpop.f32.mrb[61].mxu0  ;;  %v7610_v12 = vld [vmem:[#allocation15 + $0x1] ss:$0 sm:$0xff] }
0x1787   :  { %v4635_v17 = vpop.permute.xlu1 %4634 }
0x1788   :  { %v4645_v19 = vsel %vm459_vm3, %v4131_v58, %v4635_v17 }
0x178b   :  { %v4639_v18 = vpop.permute.xlu0 %4638 }
0x178c   :  { %v4646_v22 = vsel %vm274_vm0, %v4645_v19, %v4639_v18 }
0x17b9   :  { %v4643_v23 = vpop.permute.xlu0 %4642 }
0x17ba   :  { %v4647_v20 = vsel %vm1134_vm4, %v4646_v22, %v4643_v23 }
0x17bb   :  { %8257 = vmatprep.mubr.msk.f32.mxu1 %vm374_vm1, %v4647_v20 }
0x17c1   :  { %v5313_v24 = vpop.permute.xlu1 %5312 }
0x17c2   :  { %v5323_v26 = vsel %vm459_vm3, %v4809_v6, %v5313_v24 }
0x17c5   :  { %v5317_v25 = vpop.permute.xlu1 %5316 }
0x17c6   :  { %v5324_v51 = vsel %vm274_vm0, %v5323_v26, %v5317_v25 }
0x17c9   :  { %v5321_v27 = vpop.permute.xlu0 %5320 }
0x17ca   :  { %v5325_v28 = vsel %vm1134_vm4, %v5324_v51, %v5321_v27 }
0x17cb   :  { %8258 = vmatmul.mubr.msk.f32.vlgmr.msra.gmra.mrb[52].mxu1 %vm374_vm1, %v5325_v28 }
0x17cc   :  { %8279 = vmatprep.mubr.msk.f32.mxu1 %vm374_vm1, %v8758_v29 }
0x189e   :  { %v8259_v31 = vpop.f32.mrb[52].mxu1 }
0x189f   :  { %v5410_v32 = vadd.f32 %v8259_v31, %v7606_v30  ;;  %v5404_v33 = vpop.f32.mrb[53].mxu1 }
0x18a0   :  { %v5405_v34 = vadd.f32 %v7606_v30, %v5404_v33 }
0x18a1   :  { %v5418_v60 = vadd.f32 %v5410_v32, %v9936_v56 }
0x18a2   :  { %v5417_v35 = vadd.f32 %v5405_v34, %v9934_v55  ;;  %v7613_v55 = vld [vmem:[%s10460_s2 + $0x30] sm:$0xff] }
0x18a3   :  { %v5422_v43 = vsel %vm374_vm1, %v5418_v60, 0.0  ;;  %v8601_v49 = vpack.i.bf16 %v7614_v48, %v7613_v55  ;;  %v8502_v54 = vpack.c.bf16 %v7614_v48, %v7613_v55 }
0x18a4   :  { %5423 = vadd.xlane.f32.xlu0 %v5422_v43  ;;  %v5419_v42 = vsel %vm374_vm1, %v5417_v35, 0.0 }
0x18a5   :  { %5420 = vadd.xlane.f32.xlu1 %v5419_v42  ;;  %8503 = vmatprep.subr.bf16.mxu0 %v8502_v54 }
0x18a6   :  { %8505 = vmatpush3.bf16.msra.mxu0 %v8502_v54 }
0x18a7   :  { %8282 = vmatprep.subr.mxu0 %v9102_v16 }
0x1931   :  { %v5424_v36 = vpop.xlane.xlu0 %5423 }
0x1932   :  { %v5426_v37 = vmul.f32 0.03125, %v5424_v36  ;;  %v5421_v38 = vpop.xlane.xlu1 %5420 }
0x1933   :  { %v5425_v39 = vmul.f32 0.03125, %v5421_v38 }
0x1934   :  { %v5428_v40 = vsub.f32 %v5418_v60, %v5426_v37 }
0x1935   :  { %v5427_v41 = vsub.f32 %v5417_v35, %v5425_v39 }
0x1936   :  { %v5430_v44 = vmul.f32 %v5428_v40, %v5428_v40 }
0x1937   :  { %v5429_v45 = vmul.f32 %v5427_v41, %v5427_v41 }
0x1938   :  { %v5434_v46 = vsel %vm374_vm1, %v5430_v44, 0.0 }
0x1939   :  { %5435 = vadd.xlane.f32.xlu1 %v5434_v46  ;;  %v5431_v56 = vsel %vm374_vm1, %v5429_v45, 0.0 }
0x193a   :  { %5432 = vadd.xlane.f32.xlu0 %v5431_v56 }
0x194a   :  { %8602 = vrot.lane.b32.xlu1 %v8601_v49, %s9105_s17 }
0x194e   :  { %5578 = vrot.lane.b32.xlu1 %v7619_v57, %s9105_s17 }
0x1950   :  { %8597 = vrot.lane.b32.xlu0 %v8596_v53, %s9105_s17 }
0x19c6   :  { %v5436_v58 = vpop.xlane.xlu1 %5435 }
0x19c7   :  { %v5438_v21 = vmul.f32 0.03125, %v5436_v58  ;;  %v5433_v61 = vpop.xlane.xlu0 %5432 }
0x19c8   :  { %v5437_v59 = vmul.f32 0.03125, %v5433_v61 }
0x19c9   :  { %v5440_v62 = vadd.f32 1e-05, %v5438_v21 }
0x19ca   :  { %v5439_v63 = vadd.f32 1e-05, %v5437_v59  ;;  %v8603_v15 = vpop.permute.xlu1 %8602 }
0x19cb   :  { %8714 = vrsqrt.f32 %v5440_v62  ;;  %v8598_v0 = vpop.permute.xlu0 %8597  ;;  %v8605_v14 = vunpack.i.h.bf16 %v8603_v15  ;;  %v8604_v1 = vunpack.i.l.bf16 %v8603_v15 }
0x19cc   :  { %8716 = vrsqrt.f32 %v5439_v63  ;;  %v8600_v2 = vunpack.i.h.bf16 %v8598_v0  ;;  %v8599_v3 = vunpack.i.l.bf16 %v8598_v0 }
0x19cd   :  { %v8510_v5 = vpack.c.bf16 %v8605_v14, %v8604_v1 }
0x19ce   :  { %v8506_v4 = vpack.c.bf16 %v8600_v2, %v8599_v3  ;;  %v5579_v22 = vpop.permute.xlu1 %5578 }
0x19d0   :  { %8507 = vmatprep.subr.bf16.mxu1 %v8506_v4 }
0x19d1   :  { %8509 = vmatpush3.bf16.msra.mxu1 %v8506_v4 }
0x19d2   :  { %8511 = vmatprep.subr.bf16.mxu1 %v8510_v5 }
0x19d5   :  { %v8715_v6 = vpop.eup %8714  ;;  %8513 = vmatpush3.bf16.msra.mxu1 %v8510_v5 }
0x19d6   :  { %v8717_v8 = vpop.eup %8716  ;;  %v5444_v9 = vmul.f32 %v8715_v6, %v5428_v40  ;;  %8292 = vmatprep.subr.mxu1 %v9102_v16 }
0x19d7   :  { %v5443_v10 = vmul.f32 %v8717_v8, %v5427_v41 }
0x19d8   :  { %8280 = vmatmul.mubr.msk.f32.vlgmr.msra.gmra.mrb[54].mxu1 %vm374_vm1, %v8759_v11  ;;  %v5452_v13 = vmul.f32 %v7609_v7, %v5444_v9 }
0x19d9   :  { %v5451_v17 = vmul.f32 %v7609_v7, %v5443_v10  ;;  %8294 = vmatprep.mubr.msk.f32.mxu1 %vm9103_vm2, %v9102_v16 }
0x19da   :  { %v10160_v19 = vadd.f32 %v7610_v12, %v5452_v13 }
0x19db   :  { %v10158_v18 = vadd.f32 %v7610_v12, %v5451_v17 }
0x19dd   :  { %8268 = vmatprep.mubr.msk.f32.mxu0 %vm374_vm1, %v10158_v18 }
0x19de   :  { %8269 = vmatmul.mubr.msk.f32.vlgmr.msra.gmra.mrb[62].mxu0 %vm374_vm1, %v10160_v19 }
0x19df   :  { %8284 = vmatprep.mubr.msk.f32.mxu0 %vm9103_vm2, %v9102_v16 }
0x1aab   :  { %v8281_v23 = vpop.f32.mrb[54].mxu1 }
0x1aac   :  { %v5647_v20 = vpop.f32.mrb[55].mxu1  ;;  %v10183_v27 = vadd.f32 %v8281_v23, %v5579_v22 }
0x1aad   :  { %v10168_v24 = vadd.f32 %v5647_v20, %v5579_v22 }
0x1aaf   :  { %5822 = vrot.lane.b32.xlu0 %v10168_v24, %s9104_s18  ;;  %8283 = vmatpush3.xpose.msk.msra.mxu0 %vm459_vm3, %v10168_v24 }
0x1ab0   :  { %8287 = vmatprep.subr.mxu0 %v9102_v16 }
0x1ab1   :  { %v8270_v25 = vpop.f32.mrb[62].mxu0 }
0x1ab2   :  { %v5553_v26 = vpop.f32.mrb[63].mxu0  ;;  %v5559_v28 = vadd.f32 %v8270_v25, %v7619_v57 }
0x1ab3   :  { %v5554_v51 = vadd.f32 %v7619_v57, %v5553_v26  ;;  %5988 = vrot.lane.b32.xlu0 %v10168_v24, %s9109_s8 }
0x1ab5   :  { %5820 = vrot.lane.b32.xlu1 %v5554_v51, %s9104_s18  ;;  %8285 = vmatmul.mubr.msk.f32.vlgmr.msra.gmra.mrb[64].mxu0 %vm459_vm3, %v5554_v51 }
0x1ab6   :  { %8289 = vmatprep.mubr.msk.f32.mxu0 %vm9103_vm2, %v9102_v16 }
0x1ab7   :  { %6154 = vrot.lane.b32.xlu0 %v10168_v24, %s9110_s27 }
0x1ab9   :  { %5986 = vrot.lane.b32.xlu1 %v5554_v51, %s9109_s8 }
0x1abb   :  { %6499 = vrot.lane.b32.xlu0 %v10183_v27, %s9104_s18 }
0x1abd   :  { %6152 = vrot.lane.b32.xlu1 %v5554_v51, %s9110_s27 }
0x1abf   :  { %6665 = vrot.lane.b32.xlu0 %v10183_v27, %s9109_s8 }
0x1ac1   :  { %6497 = vrot.lane.b32.xlu1 %v5559_v28, %s9104_s18 }
0x1ac3   :  { %6831 = vrot.lane.b32.xlu0 %v10183_v27, %s9110_s27 }
0x1ac5   :  { %6663 = vrot.lane.b32.xlu1 %v5559_v28, %s9109_s8 }
0x1ac7   :  { %5744 = vrot.lane.b32.xlu0 %v10168_v24, %s9105_s17 }
0x1ac9   :  { %6829 = vrot.lane.b32.xlu1 %v5559_v28, %s9110_s27 }
0x1acd   :  { %5910 = vrot.lane.b32.xlu1 %v10168_v24, %s9107_s3 }
0x1b21   :  { %v5823_v29 = vpop.permute.xlu0 %5822 }
0x1b22   :  { %8293 = vmatpush3.xpose.msk.msra.mxu1 %vm459_vm3, %v5823_v29 }
0x1b23   :  { %8302 = vmatprep.subr.mxu1 %v9102_v16 }
0x1b25   :  { %v5989_v30 = vpop.permute.xlu0 %5988 }
0x1b27   :  { %v5821_v31 = vpop.permute.xlu1 %5820 }
0x1b28   :  { %8295 = vmatmul.mubr.msk.f32.vlgmr.msra.gmra.mrb[56].mxu1 %vm459_vm3, %v5821_v31 }
0x1b29   :  { %8303 = vmatpush3.xpose.msk.msra.mxu1 %vm459_vm3, %v5989_v30  ;;  %v6155_v32 = vpop.permute.xlu0 %6154  ;;  %8304 = vmatprep.mubr.msk.f32.mxu1 %vm9103_vm2, %v9102_v16 }
0x1b2a   :  { %8312 = vmatprep.subr.mxu1 %v9102_v16 }
0x1b2b   :  { %v5987_v33 = vpop.permute.xlu1 %5986 }
0x1b2c   :  { %8305 = vmatmul.mubr.msk.f32.vlgmr.msra.gmra.mrb[58].mxu1 %vm459_vm3, %v5987_v33 }
0x1b2d   :  { %8313 = vmatpush3.xpose.msk.msra.mxu1 %vm459_vm3, %v6155_v32  ;;  %v6500_v34 = vpop.permute.xlu0 %6499  ;;  %8314 = vmatprep.mubr.msk.f32.mxu1 %vm9103_vm2, %v9102_v16 }
0x1b2e   :  { %8322 = vmatprep.subr.mxu1 %v9102_v16 }
0x1b2f   :  { %v6153_v60 = vpop.permute.xlu1 %6152 }
0x1b30   :  { %8315 = vmatmul.mubr.msk.f32.vlgmr.msra.gmra.mrb[60].mxu1 %vm459_vm3, %v6153_v60 }
0x1b31   :  { %8323 = vmatpush3.xpose.msk.msra.mxu1 %vm459_vm3, %v10183_v27  ;;  %v6666_v35 = vpop.permute.xlu0 %6665  ;;  %8324 = vmatprep.mubr.msk.f32.mxu1 %vm9103_vm2, %v9102_v16 }
0x1b32   :  { %8332 = vmatprep.subr.mxu1 %v9102_v16 }
0x1b33   :  { %v6498_v43 = vpop.permute.xlu1 %6497 }
0x1b34   :  { %8325 = vmatmul.mubr.msk.f32.vlgmr.msra.gmra.mrb[62].mxu1 %vm459_vm3, %v5559_v28 }
0x1b35   :  { %8333 = vmatpush3.xpose.msk.msra.mxu1 %vm459_vm3, %v6500_v34  ;;  %v6832_v42 = vpop.permute.xlu0 %6831  ;;  %8334 = vmatprep.mubr.msk.f32.mxu1 %vm9103_vm2, %v9102_v16 }
0x1b36   :  { %8342 = vmatprep.subr.mxu1 %v9102_v16 }
0x1b37   :  { %v6664_v36 = vpop.permute.xlu1 %6663 }
0x1b38   :  { %8335 = vmatmul.mubr.msk.f32.vlgmr.msra.gmra.mrb[64].mxu1 %vm459_vm3, %v6498_v43 }
0x1b39   :  { %8343 = vmatpush3.xpose.msk.msra.mxu1 %vm459_vm3, %v6666_v35  ;;  %v5745_v37 = vpop.permute.xlu0 %5744  ;;  %8344 = vmatprep.mubr.msk.f32.mxu1 %vm9103_vm2, %v9102_v16 }
0x1b3a   :  { %8288 = vmatpush3.msra.mxu0 %v5745_v37  ;;  %8352 = vmatprep.subr.mxu1 %v9102_v16 }
0x1b3b   :  { %8297 = vmatprep.subr.mxu0 %v9102_v16  ;;  %v6830_v38 = vpop.permute.xlu1 %6829 }
0x1b3c   :  { %8345 = vmatmul.mubr.msk.f32.vlgmr.msra.gmra.mrb[66].mxu1 %vm459_vm3, %v6664_v36 }
0x1b3d   :  { %8353 = vmatpush3.xpose.msk.msra.mxu1 %vm459_vm3, %v6832_v42  ;;  %8354 = vmatprep.mubr.msk.f32.mxu1 %vm9103_vm2, %v9102_v16 }
0x1b3f   :  { %v5911_v13 = vpop.permute.xlu1 %5910 }
0x1b40   :  { %8355 = vmatmul.mubr.msk.f32.vlgmr.msra.gmra.mrb[68].mxu1 %vm459_vm3, %v6830_v38 }
0x1b88   :  { %v5728_v39 = vpop.f32.mrb[64].mxu0 }
0x1b89   :  { %v5732_v40 = vmul.f32 0.35355338, %v5728_v39  ;;  %v8286_v41 = vpop.f32.mrb[65].mxu0 }
0x1b8b   :  { %v5733_v44 = vsel %vm459_vm3, %v5732_v40, -inf }
0x1b8c   :  { %5734 = vmax.xlane.f32.xlu0 %v5733_v44 }
0x1bfb   :  { %v5894_v45 = vpop.f32.mrb[56].mxu1 }
0x1bfc   :  { %v5898_v46 = vmul.f32 0.35355338, %v5894_v45  ;;  %v8296_v56 = vpop.f32.mrb[57].mxu1 }
0x1bfe   :  { %v5899_v55 = vsel %vm459_vm3, %v5898_v46, -inf }
0x1bff   :  { %5900 = vmax.xlane.f32.xlu1 %v5899_v55  ;;  %v6060_v48 = vpop.f32.mrb[58].mxu1 }
0x1c00   :  { %v6064_v49 = vmul.f32 0.35355338, %v6060_v48  ;;  %v8306_v50 = vpop.f32.mrb[59].mxu1 }
0x1c02   :  { %v6065_v52 = vsel %vm459_vm3, %v6064_v49, -inf }
0x1c03   :  { %v6226_v53 = vpop.f32.mrb[60].mxu1  ;;  %6066 = vmax.xlane.f32.xlu0 %v6065_v52 }
0x1c04   :  { %v6230_v47 = vmul.f32 0.35355338, %v6226_v53  ;;  %v8316_v54 = vpop.f32.mrb[61].mxu1 }
0x1c06   :  { %v6231_v57 = vsel %vm459_vm3, %v6230_v47, -inf }
0x1c07   :  { %v6405_v58 = vpop.f32.mrb[62].mxu1  ;;  %6232 = vmax.xlane.f32.xlu0 %v6231_v57 }
0x1c08   :  { %v6409_v21 = vmul.f32 0.35355338, %v6405_v58  ;;  %v8326_v61 = vpop.f32.mrb[63].mxu1 }
0x1c0a   :  { %v6410_v59 = vsel %vm459_vm3, %v6409_v21, -inf }
0x1c0b   :  { %6411 = vmax.xlane.f32.xlu1 %v6410_v59  ;;  %v6571_v62 = vpop.f32.mrb[64].mxu1 }
0x1c0c   :  { %v6575_v63 = vmul.f32 0.35355338, %v6571_v62  ;;  %v8336_v15 = vpop.f32.mrb[65].mxu1 }
0x1c0e   :  { %v6576_v0 = vsel %vm459_vm3, %v6575_v63, -inf }
0x1c0f   :  { %v6737_v14 = vpop.f32.mrb[66].mxu1  ;;  %6577 = vmax.xlane.f32.xlu0 %v6576_v0 }
0x1c10   :  { %v6741_v1 = vmul.f32 0.35355338, %v6737_v14  ;;  %v8346_v2 = vpop.f32.mrb[67].mxu1 }
0x1c12   :  { %v6742_v3 = vsel %vm459_vm3, %v6741_v1, -inf }
0x1c13   :  { %6743 = vmax.xlane.f32.xlu1 %v6742_v3  ;;  %v6903_v4 = vpop.f32.mrb[68].mxu1 }
0x1c14   :  { %v6907_v5 = vmul.f32 0.35355338, %v6903_v4  ;;  %v8356_v6 = vpop.f32.mrb[69].mxu1 }
0x1c16   :  { %v6908_v7 = vsel %vm459_vm3, %v6907_v5, -inf }
0x1c17   :  { %6909 = vmax.xlane.f32.xlu0 %v6908_v7 }
0x1c19   :  { %v5735_v8 = vpop.xlane.xlu0 %5734 }
0x1c1a   :  { %v5736_v9 = vsub.f32 %v5732_v40, %v5735_v8 }
0x1c1c   :  { %v5737_v10 = vmul.f32 1.442695, %v5736_v9 }
0x1c1e   :  { %8718 = vpow2.f32 %v5737_v10 }
0x1c24   :  { %6242 = vrot.lane.b32.xlu1 %v10168_v24, %s9108_s21 }
0x1c28   :  { %v8719_v11 = vpop.eup %8718 }
0x1c29   :  { %v5739_v12 = vsel %vm459_vm3, %v8719_v11, 0.0 }
0x1c2d   :  { %6076 = vrot.lane.b32.xlu0 %v10168_v24, %s9106_s28 }
0x1c48   :  { %5740 = vadd.xlane.f32.xlu1 %v5739_v12 }
0x1c8c   :  { %v5901_v17 = vpop.xlane.xlu1 %5900 }
0x1c8d   :  { %v5902_v22 = vsub.f32 %v5898_v46, %v5901_v17 }
0x1c8f   :  { %v5903_v23 = vmul.f32 1.442695, %v5902_v22 }
0x1c90   :  { %v6067_v20 = vpop.xlane.xlu0 %6066 }
0x1c91   :  { %8720 = vpow2.f32 %v5903_v23  ;;  %v6068_v25 = vsub.f32 %v6064_v49, %v6067_v20 }
0x1c93   :  { %v6069_v26 = vmul.f32 1.442695, %v6068_v25 }
0x1c94   :  { %v6233_v51 = vpop.xlane.xlu0 %6232 }
0x1c95   :  { %8722 = vpow2.f32 %v6069_v26  ;;  %v6234_v28 = vsub.f32 %v6230_v47, %v6233_v51 }
0x1c97   :  { %v6235_v24 = vmul.f32 1.442695, %v6234_v28 }
0x1c98   :  { %v6412_v60 = vpop.xlane.xlu1 %6411 }
0x1c99   :  { %8724 = vpow2.f32 %v6235_v24  ;;  %v6413_v35 = vsub.f32 %v6409_v21, %v6412_v60  ;;  %v7618_v60 = vld [vmem:[%s10414_s10 + $0x38] sm:$0xff] }
0x1c9b   :  { %v8721_v29 = vpop.eup %8720  ;;  %v6414_v37 = vmul.f32 1.442695, %v6413_v35 }
0x1c9c   :  { %v5905_v30 = vsel %vm459_vm3, %v8721_v29, 0.0  ;;  %v6578_v43 = vpop.xlane.xlu0 %6577 }
0x1c9d   :  { %5906 = vadd.xlane.f32.xlu0 %v5905_v30  ;;  %v6579_v36 = vsub.f32 %v6575_v63, %v6578_v43  ;;  %8726 = vpow2.f32 %v6414_v37 }
0x1c9f   :  { %v8723_v31 = vpop.eup %8722  ;;  %v6580_v40 = vmul.f32 1.442695, %v6579_v36 }
0x1ca0   :  { %v6071_v32 = vsel %vm459_vm3, %v8723_v31, 0.0  ;;  %v6744_v42 = vpop.xlane.xlu1 %6743 }
0x1ca1   :  { %6072 = vadd.xlane.f32.xlu1 %v6071_v32  ;;  %v6745_v38 = vsub.f32 %v6741_v1, %v6744_v42  ;;  %8728 = vpow2.f32 %v6580_v40  ;;  %v7616_v32 = vld [vmem:[%s10414_s10 + $0x28] sm:$0xff] }
0x1ca3   :  { %v10249_v33 = vpop.eup %8724  ;;  %v6746_v41 = vmul.f32 1.442695, %v6745_v38 }
0x1ca4   :  { %v6237_v34 = vsel %vm459_vm3, %v10249_v33, 0.0  ;;  %v6910_v39 = vpop.xlane.xlu0 %6909  ;;  %v6243_v46 = vpop.permute.xlu1 %6242 }
0x1ca5   :  { %6238 = vadd.xlane.f32.xlu0 %v6237_v34  ;;  %v6911_v44 = vsub.f32 %v6907_v5, %v6910_v39  ;;  %8730 = vpow2.f32 %v6746_v41  ;;  %v7617_v34 = vld [vmem:[%s10414_s10 + $0x30] sm:$0xff] }
0x1ca6   :  { %v8518_v35 = vpack.c.bf16 %v7618_v60, %v7617_v34  ;;  %v7651_v34 = vld [vmem:[#allocation16 + $0x1] ss:$0 sm:$0xff] }
0x1ca7   :  { %v6912_v45 = vmul.f32 1.442695, %v6911_v44  ;;  %v8727_v56 = vpop.eup %8726 }
0x1ca8   :  { %v6416_v49 = vsel %vm459_vm3, %v8727_v56, 0.0  ;;  %v6077_v21 = vpop.permute.xlu0 %6076 }
0x1ca9   :  { %8732 = vpow2.f32 %v6912_v45 }
0x1cab   :  { %v10257_v55 = vpop.eup %8728 }
0x1cac   :  { %v6582_v53 = vsel %vm459_vm3, %v10257_v55, 0.0 }
0x1caf   :  { %v10260_v50 = vpop.eup %8730 }
0x1cb0   :  { %v6748_v52 = vsel %vm459_vm3, %v10260_v50, 0.0 }
0x1cb2   :  { %6587 = vrot.lane.b32.xlu1 %v10183_v27, %s9107_s3 }
0x1cb3   :  { %v10266_v47 = vpop.eup %8732 }
0x1cb4   :  { %v6914_v54 = vsel %vm459_vm3, %v10266_v47, 0.0 }
0x1cbb   :  { %6421 = vrot.lane.b32.xlu0 %v10183_v27, %s9105_s17 }
0x1cd5   :  { %v5741_v48 = vpop.xlane.xlu1 %5740 }
0x1cd6   :  { %8734 = vrcp.f32 %v5741_v48  ;;  %6417 = vadd.xlane.f32.xlu1 %v6416_v49 }
0x1cda   :  { %6749 = vadd.xlane.f32.xlu1 %v6748_v52  ;;  %6583 = vadd.xlane.f32.xlu0 %v6582_v53 }
0x1cde   :  { %6915 = vadd.xlane.f32.xlu1 %v6914_v54 }
0x1ce0   :  { %v8735_v57 = vpop.eup %8734 }
0x1ce1   :  { %v5743_v58 = vmul.f32 %v8735_v57, %v8719_v11  ;;  %v7648_v57 = vld [vmem:[#allocation9 + $0x1] ss:$0 sm:$0xff] }
0x1ce3   :  { %8290 = vmatmul.mubr.msk.f32.vlgmr.msra.gmra.mrb[66].mxu0 %vm459_vm3, %v5743_v58 }
0x1ce4   :  { %8298 = vmatpush3.msra.mxu0 %v5911_v13  ;;  %8299 = vmatprep.mubr.msk.f32.mxu0 %vm9103_vm2, %v9102_v16 }
0x1ce5   :  { %8307 = vmatprep.subr.mxu0 %v9102_v16 }
0x1cef   :  { %6919 = vrot.lane.b32.xlu1 %v10183_v27, %s9108_s21 }
0x1cf0   :  { %6753 = vrot.lane.b32.xlu0 %v10183_v27, %s9106_s28 }
0x1d2a   :  { %v5907_v61 = vpop.xlane.xlu0 %5906 }
0x1d2b   :  { %8736 = vrcp.f32 %v5907_v61 }
0x1d2e   :  { %v6073_v59 = vpop.xlane.xlu1 %6072 }
0x1d2f   :  { %8738 = vrcp.f32 %v6073_v59 }
0x1d32   :  { %v6239_v62 = vpop.xlane.xlu0 %6238  ;;  %v6588_v3 = vpop.permute.xlu1 %6587 }
0x1d33   :  { %8740 = vrcp.f32 %v6239_v62 }
0x1d35   :  { %v8737_v63 = vpop.eup %8736 }
0x1d36   :  { %v5909_v15 = vmul.f32 %v8737_v63, %v8721_v29  ;;  %v6422_v2 = vpop.permute.xlu0 %6421 }
0x1d38   :  { %8300 = vmatmul.mubr.msk.f32.vlgmr.msra.gmra.mrb[68].mxu0 %vm459_vm3, %v5909_v15 }
0x1d39   :  { %v8739_v0 = vpop.eup %8738  ;;  %8308 = vmatpush3.msra.mxu0 %v6077_v21  ;;  %8309 = vmatprep.mubr.msk.f32.mxu0 %vm9103_vm2, %v9102_v16 }
0x1d3a   :  { %v6075_v14 = vmul.f32 %v8739_v0, %v8723_v31  ;;  %8317 = vmatprep.subr.mxu0 %v9102_v16 }
0x1d3c   :  { %8310 = vmatmul.mubr.msk.f32.vlgmr.msra.gmra.mrb[70].mxu0 %vm459_vm3, %v6075_v14 }
0x1d3d   :  { %v8741_v27 = vpop.eup %8740  ;;  %8318 = vmatpush3.msra.mxu0 %v6243_v46  ;;  %8319 = vmatprep.mubr.msk.f32.mxu0 %vm9103_vm2, %v9102_v16 }
0x1d3e   :  { %v6241_v1 = vmul.f32 %v8741_v27, %v10249_v33  ;;  %8327 = vmatprep.subr.mxu0 %v9102_v16 }
0x1d40   :  { %8320 = vmatmul.mubr.msk.f32.vlgmr.msra.gmra.mrb[72].mxu0 %vm459_vm3, %v6241_v1 }
0x1d41   :  { %8328 = vmatpush3.msra.mxu0 %v6422_v2  ;;  %8329 = vmatprep.mubr.msk.f32.mxu0 %vm9103_vm2, %v9102_v16 }
0x1d42   :  { %8337 = vmatprep.subr.mxu0 %v9102_v16 }
0x1d63   :  { %v6418_v4 = vpop.xlane.xlu1 %6417 }
0x1d64   :  { %8742 = vrcp.f32 %v6418_v4 }
0x1d67   :  { %v6750_v5 = vpop.xlane.xlu1 %6749  ;;  %v6584_v6 = vpop.xlane.xlu0 %6583 }
0x1d68   :  { %8744 = vrcp.f32 %v6584_v6 }
0x1d69   :  { %8746 = vrcp.f32 %v6750_v5 }
0x1d6b   :  { %v6916_v7 = vpop.xlane.xlu1 %6915  ;;  %v6754_v13 = vpop.permute.xlu0 %6753 }
0x1d6c   :  { %8748 = vrcp.f32 %v6916_v7 }
0x1d6e   :  { %v8743_v8 = vpop.eup %8742 }
0x1d6f   :  { %v6420_v9 = vmul.f32 %v8743_v8, %v8727_v56  ;;  %v6920_v23 = vpop.permute.xlu1 %6919  ;;  %v7654_v8 = vld [vmem:[%s10416_s12 + $0x28] sm:$0xff] }
0x1d71   :  { %8330 = vmatmul.mubr.msk.f32.vlgmr.msra.gmra.mrb[74].mxu0 %vm459_vm3, %v6420_v9 }
0x1d72   :  { %8338 = vmatpush3.msra.mxu0 %v6588_v3  ;;  %8339 = vmatprep.mubr.msk.f32.mxu0 %vm9103_vm2, %v9102_v16  ;;  %v8745_v10 = vpop.eup %8744 }
0x1d73   :  { %8347 = vmatprep.subr.mxu0 %v9102_v16  ;;  %v6586_v11 = vmul.f32 %v8745_v10, %v10257_v55  ;;  %v8747_v12 = vpop.eup %8746  ;;  %v7655_v10 = vld [vmem:[%s10416_s12 + $0x30] sm:$0xff] }
0x1d74   :  { %v6752_v17 = vmul.f32 %v8747_v12, %v10260_v50 }
0x1d75   :  { %8340 = vmatmul.mubr.msk.f32.vlgmr.msra.gmra.mrb[76].mxu0 %vm459_vm3, %v6586_v11  ;;  %v7656_v11 = vld [vmem:[%s10416_s12 + $0x38] sm:$0xff] }
0x1d76   :  { %8348 = vmatpush3.msra.mxu0 %v6754_v13  ;;  %8349 = vmatprep.mubr.msk.f32.mxu0 %vm9103_vm2, %v9102_v16  ;;  %v8749_v22 = vpop.eup %8748  ;;  %v8526_v12 = vpack.c.bf16 %v7656_v11, %v7655_v10  ;;  %v7660_v13 = vld [vmem:[%s10418_s14 + $0x40] sm:$0xff] }
0x1d77   :  { %8357 = vmatprep.subr.mxu0 %v9102_v16  ;;  %v6918_v20 = vmul.f32 %v8749_v22, %v10266_v47  ;;  %v7662_v22 = vld [vmem:[%s10418_s14 + $0x50] sm:$0xff] }
0x1d79   :  { %8350 = vmatmul.mubr.msk.f32.vlgmr.msra.gmra.mrb[78].mxu0 %vm459_vm3, %v6752_v17  ;;  %v7661_v17 = vld [vmem:[%s10418_s14 + $0x48] sm:$0xff] }
0x1d7a   :  { %8358 = vmatpush3.msra.mxu0 %v6920_v23  ;;  %8359 = vmatprep.mubr.msk.f32.mxu0 %vm9103_vm2, %v9102_v16  ;;  %v7615_v16 = vld [vmem:[%s10414_s10 + $0x20] sm:$0xff]  ;;  %v8530_v23 = vpack.c.bf16 %v7661_v17, %v7660_v13 }
0x1d7b   :  { %v8514_v33 = vpack.c.bf16 %v7616_v32, %v7615_v16 }
0x1d7d   :  { %8360 = vmatmul.mubr.msk.f32.vlgmr.msra.gmra.mrb[80].mxu0 %vm459_vm3, %v6918_v20  ;;  %8515 = vmatprep.subr.bf16.mxu1 %v8514_v33  ;;  %v7663_v20 = vld [vmem:[%s10418_s14 + $0x58] sm:$0xff] }
0x1d7e   :  { %8517 = vmatpush3.bf16.msra.mxu1 %v8514_v33 }
0x1d7f   :  { %8519 = vmatprep.subr.bf16.mxu1 %v8518_v35 }
0x1d82   :  { %8521 = vmatpush3.bf16.msra.mxu1 %v8518_v35  ;;  %v7652_v35 = vld [vmem:[#allocation18 + $0x1] ss:$0 sm:$0xff] }
0x1d83   :  { %8531 = vmatprep.subr.bf16.mxu1 %v8530_v23 }
0x1db6   :  { %v5816_v25 = vpop.f32.mrb[66].mxu0 }
0x1db7   :  { %v8291_v26 = vpop.f32.mrb[67].mxu0 }
0x1db8   :  { %v7664_v26 = vld [vmem:[%s10418_s14 + $0x60] sm:$0xff] }
0x1e0b   :  { %v5982_v51 = vpop.f32.mrb[68].mxu0 }
0x1e0c   :  { %6319 = vrot.lane.b32.xlu0 %v5982_v51, %s9094_s25  ;;  %v8301_v28 = vpop.f32.mrb[69].mxu0  ;;  %v7665_v51 = vld [vmem:[%s10418_s14 + $0x68] sm:$0xff] }
0x1e0d   :  { %v8538_v28 = vpack.c.bf16 %v7665_v51, %v7664_v26  ;;  %v7672_v51 = vld [vmem:[#allocation21 + $0x1] ss:$0 sm:$0xff] }
0x1e0f   :  { %v6148_v24 = vpop.f32.mrb[70].mxu0 }
0x1e10   :  { %6323 = vrot.lane.b32.xlu1 %v6148_v24, %s10463_s23  ;;  %v8311_v29 = vpop.f32.mrb[71].mxu0 }
0x1e13   :  { %v6314_v30 = vpop.f32.mrb[72].mxu0 }
0x1e14   :  { %6327 = vrot.lane.b32.xlu1 %v6314_v30, %s10464_s11  ;;  %v8321_v31 = vpop.f32.mrb[73].mxu0 }
0x1e44   :  { %v6493_v43 = vpop.f32.mrb[74].mxu0 }
0x1e45   :  { %v8331_v42 = vpop.f32.mrb[75].mxu0 }
0x1e48   :  { %v6659_v36 = vpop.f32.mrb[76].mxu0 }
0x1e49   :  { %6996 = vrot.lane.b32.xlu0 %v6659_v36, %s9094_s25  ;;  %v8341_v37 = vpop.f32.mrb[77].mxu0 }
0x1e4c   :  { %v6825_v38 = vpop.f32.mrb[78].mxu0 }
0x1e4d   :  { %7000 = vrot.lane.b32.xlu0 %v6825_v38, %s10463_s23  ;;  %v8351_v39 = vpop.f32.mrb[79].mxu0 }
0x1e50   :  { %v6991_v40 = vpop.f32.mrb[80].mxu0 }
0x1e51   :  { %7004 = vrot.lane.b32.xlu1 %v6991_v40, %s10464_s11  ;;  %v8361_v41 = vpop.f32.mrb[81].mxu0  ;;  %v7666_v40 = vld [vmem:[%s10418_s14 + $0x70] sm:$0xff] }
0x1e52   :  { %v7667_v41 = vld [vmem:[%s10418_s14 + $0x78] sm:$0xff] }
0x1e7e   :  { %v6320_v44 = vpop.permute.xlu0 %6319 }
0x1e7f   :  { %v6330_v46 = vsel %vm459_vm3, %v5816_v25, %v6320_v44  ;;  %v8534_v25 = vpack.c.bf16 %v7663_v20, %v7662_v22  ;;  %v8542_v44 = vpack.c.bf16 %v7667_v41, %v7666_v40 }
0x1e82   :  { %v6324_v45 = vpop.permute.xlu1 %6323 }
0x1e83   :  { %v6331_v56 = vsel %vm274_vm0, %v6330_v46, %v6324_v45  ;;  %v7657_v45 = vld [vmem:[#allocation10 + $0x1] ss:$0 sm:$0xff] }
0x1e86   :  { %v6328_v55 = vpop.permute.xlu1 %6327 }
0x1e87   :  { %v6332_v48 = vsel %vm1134_vm4, %v6331_v56, %v6328_v55 }
0x1e88   :  { %8370 = vmatprep.mubr.msk.f32.mxu1 %vm374_vm1, %v6332_v48 }
0x1ebb   :  { %v6997_v49 = vpop.permute.xlu0 %6996 }
0x1ebc   :  { %v7007_v52 = vsel %vm459_vm3, %v6493_v43, %v6997_v49 }
0x1ebf   :  { %v7001_v50 = vpop.permute.xlu0 %7000 }
0x1ec0   :  { %v7008_v53 = vsel %vm274_vm0, %v7007_v52, %v7001_v50  ;;  %v7668_v52 = vld [vmem:[#allocation12 + $0x1] ss:$0 sm:$0xff] }
0x1ec3   :  { %v7005_v47 = vpop.permute.xlu1 %7004 }
0x1ec4   :  { %v7009_v54 = vsel %vm1134_vm4, %v7008_v53, %v7005_v47 }
0x1ec5   :  { %8371 = vmatmul.mubr.msk.f32.vlgmr.msra.gmra.mrb[70].mxu1 %vm374_vm1, %v7009_v54 }
0x1ec6   :  { %8533 = vmatpush3.bf16.msra.mxu1 %v8530_v23  ;;  %v7671_v23 = vld [vmem:[#allocation19 + $0x1] ss:$0 sm:$0xff] }
0x1ec7   :  { %8535 = vmatprep.subr.bf16.mxu1 %v8534_v25 }
0x1eca   :  { %8537 = vmatpush3.bf16.msra.mxu1 %v8534_v25 }
0x1ecb   :  { %8539 = vmatprep.subr.bf16.mxu1 %v8538_v28 }
0x1ece   :  { %8541 = vmatpush3.bf16.msra.mxu1 %v8538_v28 }
0x1ecf   :  { %8543 = vmatprep.subr.bf16.mxu1 %v8542_v44 }
0x1ed2   :  { %8545 = vmatpush3.bf16.msra.mxu1 %v8542_v44 }
0x1f98   :  { %v8372_v58 = vpop.f32.mrb[70].mxu1 }
0x1f99   :  { %v7094_v21 = vadd.f32 %v8372_v58, %v7648_v57  ;;  %v7088_v61 = vpop.f32.mrb[71].mxu1 }
0x1f9a   :  { %v7089_v59 = vadd.f32 %v7648_v57, %v7088_v61 }
0x1f9b   :  { %v7102_v62 = vadd.f32 %v7094_v21, %v10160_v19 }
0x1f9c   :  { %v7101_v63 = vadd.f32 %v7089_v59, %v10158_v18  ;;  %v7653_v18 = vld [vmem:[%s10416_s12 + $0x20] sm:$0xff] }
0x1f9d   :  { %v7106_v15 = vsel %vm374_vm1, %v7102_v62, 0.0  ;;  %v8522_v9 = vpack.c.bf16 %v7654_v8, %v7653_v18  ;;  %v7390_v18 = vld [vmem:[%s10426_s22 + $0x18] sm:$0xff] }
0x1f9e   :  { %7107 = vadd.xlane.f32.xlu1 %v7106_v15  ;;  %v7103_v0 = vsel %vm374_vm1, %v7101_v63, 0.0 }
0x1f9f   :  { %7104 = vadd.xlane.f32.xlu0 %v7103_v0  ;;  %8523 = vmatprep.subr.bf16.mxu0 %v8522_v9 }
0x1fa0   :  { %8525 = vmatpush3.bf16.msra.mxu0 %v8522_v9 }
0x1fa1   :  { %8527 = vmatprep.subr.bf16.mxu0 %v8526_v12 }
0x1fa4   :  { %8529 = vmatpush3.bf16.msra.mxu0 %v8526_v12 }
0x202b   :  { %v7108_v14 = vpop.xlane.xlu1 %7107 }
0x202c   :  { %v7110_v27 = vmul.f32 0.03125, %v7108_v14  ;;  %v7105_v1 = vpop.xlane.xlu0 %7104 }
0x202d   :  { %v7109_v2 = vmul.f32 0.03125, %v7105_v1 }
0x202e   :  { %v7112_v3 = vsub.f32 %v7102_v62, %v7110_v27 }
0x202f   :  { %v7111_v4 = vsub.f32 %v7101_v63, %v7109_v2 }
0x2030   :  { %v7114_v7 = vmul.f32 %v7112_v3, %v7112_v3 }
0x2031   :  { %v7113_v5 = vmul.f32 %v7111_v4, %v7111_v4 }
0x2032   :  { %v7118_v19 = vsel %vm374_vm1, %v7114_v7, 0.0 }
0x2033   :  { %v7115_v6 = vsel %vm374_vm1, %v7113_v5, 0.0  ;;  %v7387_v5 = vld [vmem:[%s10426_s22] sm:$0xff] }
0x2034   :  { %7116 = vadd.xlane.f32.xlu0 %v7115_v6  ;;  %v7388_v6 = vld [vmem:[%s10426_s22 + $0x8] sm:$0xff] }
0x2035   :  { %v8546_v7 = vpack.c.bf16 %v7388_v6, %v7387_v5 }
0x2037   :  { %8547 = vmatprep.subr.bf16.mxu0 %v8546_v7 }
0x2038   :  { %7119 = vadd.xlane.f32.xlu0 %v7118_v19  ;;  %v7389_v19 = vld [vmem:[%s10426_s22 + $0x10] sm:$0xff] }
0x2039   :  { %v8550_v8 = vpack.c.bf16 %v7390_v18, %v7389_v19 }
0x20c1   :  { %v7117_v24 = vpop.xlane.xlu0 %7116 }
0x20c2   :  { %v7121_v29 = vmul.f32 0.03125, %v7117_v24 }
0x20c4   :  { %v7123_v30 = vadd.f32 1e-05, %v7121_v29 }
0x20c5   :  { %v7120_v31 = vpop.xlane.xlu0 %7119 }
0x20c6   :  { %8750 = vrsqrt.f32 %v7123_v30  ;;  %v7122_v16 = vmul.f32 0.03125, %v7120_v31  ;;  %v7673_v31 = vld [vmem:[#allocation22] ss:$0 sm:$0xff] }
0x20c8   :  { %v7124_v32 = vadd.f32 1e-05, %v7122_v16 }
0x20ca   :  { %8752 = vrsqrt.f32 %v7124_v32 }
0x20d0   :  { %v8751_v33 = vpop.eup %8750 }
0x20d1   :  { %v7127_v60 = vmul.f32 %v8751_v33, %v7111_v4 }
0x20d3   :  { %v7135_v43 = vmul.f32 %v7651_v34, %v7127_v60 }
0x20d4   :  { %v8753_v42 = vpop.eup %8752 }
0x20d5   :  { %v7128_v36 = vmul.f32 %v8753_v42, %v7112_v3  ;;  %v7143_v37 = vadd.f32 %v7652_v35, %v7135_v43 }
0x20d7   :  { %v7136_v38 = vmul.f32 %v7651_v34, %v7128_v36  ;;  %8381 = vmatprep.mubr.msk.f32.mxu0 %vm374_vm1, %v7143_v37 }
0x20d9   :  { %v7144_v39 = vadd.f32 %v7652_v35, %v7136_v38 }
0x20db   :  { %8382 = vmatmul.mubr.msk.f32.vlgmr.msra.gmra.mrb[82].mxu0 %vm374_vm1, %v7144_v39 }
0x20dc   :  { %8549 = vmatpush3.bf16.msra.mxu0 %v8546_v7 }
0x20dd   :  { %8551 = vmatprep.subr.bf16.mxu0 %v8550_v8 }
0x20e0   :  { %8553 = vmatpush3.bf16.msra.mxu0 %v8550_v8 }
0x21ae   :  { %v8383_v46 = vpop.f32.mrb[82].mxu0 }
0x21af   :  { %v7236_v56 = vadd.f32 %v8383_v46, %v7657_v45  ;;  %v7230_v55 = vpop.f32.mrb[83].mxu0 }
0x21b0   :  { %v7231_v48 = vadd.f32 %v7657_v45, %v7230_v55 }
0x21b1   :  { %v7240_v50 = vmax.f32 %v7236_v56, 0.0 }
0x21b2   :  { %v7239_v49 = vmax.f32 %v7231_v48, 0.0 }
0x21b4   :  { %8400 = vmatprep.mubr.msk.f32.mxu1 %vm3741_vm5, %v7239_v49 }
0x21b5   :  { %8401 = vmatmul.mubr.msk.f32.vlgmr.msra.gmra.mrb[72].mxu1 %vm3741_vm5, %v7240_v50 }
0x2288   :  { %v8402_v53 = vpop.f32.mrb[72].mxu1 }
0x2289   :  { %v7336_v47 = vadd.f32 %v8402_v53, %v7668_v52  ;;  %v7330_v54 = vpop.f32.mrb[73].mxu1 }
0x228a   :  { %v7331_v57 = vadd.f32 %v7668_v52, %v7330_v54 }
0x228b   :  { %v7344_v58 = vadd.f32 %v7336_v47, %v7144_v39 }
0x228c   :  { %v7343_v21 = vadd.f32 %v7331_v57, %v7143_v37 }
0x228d   :  { %v7348_v61 = vsel %vm374_vm1, %v7344_v58, 0.0 }
0x228e   :  { %7349 = vadd.xlane.f32.xlu0 %v7348_v61  ;;  %v7345_v59 = vsel %vm374_vm1, %v7343_v21, 0.0 }
0x228f   :  { %7346 = vadd.xlane.f32.xlu1 %v7345_v59 }
0x231b   :  { %v7350_v62 = vpop.xlane.xlu0 %7349 }
0x231c   :  { %v7352_v63 = vmul.f32 0.03125, %v7350_v62  ;;  %v7347_v15 = vpop.xlane.xlu1 %7346 }
0x231d   :  { %v7351_v0 = vmul.f32 0.03125, %v7347_v15 }
0x231e   :  { %v7354_v14 = vsub.f32 %v7344_v58, %v7352_v63 }
0x231f   :  { %v7353_v27 = vsub.f32 %v7343_v21, %v7351_v0 }
0x2320   :  { %v7356_v1 = vmul.f32 %v7354_v14, %v7354_v14 }
0x2321   :  { %v7355_v2 = vmul.f32 %v7353_v27, %v7353_v27 }
0x2322   :  { %v7360_v3 = vsel %vm374_vm1, %v7356_v1, 0.0 }
0x2323   :  { %7361 = vadd.xlane.f32.xlu0 %v7360_v3  ;;  %v7357_v4 = vsel %vm374_vm1, %v7355_v2, 0.0 }
0x2324   :  { %7358 = vadd.xlane.f32.xlu1 %v7357_v4 }
0x23b0   :  { %v7362_v9 = vpop.xlane.xlu0 %7361 }
0x23b1   :  { %v7364_v10 = vmul.f32 0.03125, %v7362_v9  ;;  %v7359_v11 = vpop.xlane.xlu1 %7358 }
0x23b2   :  { %v7363_v12 = vmul.f32 0.03125, %v7359_v11 }
0x23b3   :  { %v7366_v13 = vadd.f32 1e-05, %v7364_v10 }
0x23b4   :  { %v7365_v17 = vadd.f32 1e-05, %v7363_v12 }
0x23b5   :  { %8754 = vrsqrt.f32 %v7366_v13 }
0x23b6   :  { %8756 = vrsqrt.f32 %v7365_v17 }
0x23bf   :  { %v8755_v22 = vpop.eup %8754 }
0x23c0   :  { %v8757_v20 = vpop.eup %8756  ;;  %v7370_v25 = vmul.f32 %v8755_v22, %v7354_v14 }
0x23c1   :  { %v7369_v26 = vmul.f32 %v8757_v20, %v7353_v27 }
0x23c2   :  { %v7378_v28 = vmul.f32 %v7671_v23, %v7370_v25 }
0x23c3   :  { %v7377_v24 = vmul.f32 %v7671_v23, %v7369_v26 }
0x23c4   :  { %v7386_v30 = vadd.f32 %v7672_v51, %v7378_v28 }
0x23c5   :  { %v7385_v29 = vadd.f32 %v7672_v51, %v7377_v24 }
0x23c7   :  { %8411 = vmatprep.mubr.msk.f32.mxu0 %vm374_vm1, %v7385_v29 }
0x23c8   :  { %8412 = vmatmul.mubr.msk.f32.vlgmr.msra.gmra.mrb[84].mxu0 %vm374_vm1, %v7386_v30 }
0x249b   :  { %v8413_v16 = vpop.f32.mrb[84].mxu0 }
0x249c   :  { %v7476_v32 = vadd.f32 %v8413_v16, %v7673_v31  ;;  %v7470_v33 = vpop.f32.mrb[85].mxu0 }
0x249d   :  { %v7471_v34 = vadd.f32 %v7673_v31, %v7470_v33 }
0x249e   :  { %7480 = vst.msk [vmem:[%s10428_s24 + $0x8] sm:$0xff] %vm1134_vm4, %v7476_v32 }
0x249f   :  { %7479 = vst.msk [vmem:[%s10428_s24] sm:$0xff] %vm1134_vm4, %v7471_v34 }
0x24a0   :  { %7485 = vsyncpa [#allocation3], 1 }
0x24a1   :  { %7486 = vsyncpa [#allocation5], 1 }
0x24a2   :  { %7487 = vsyncpa [#allocation8], 1 }
0x24a3   :  { %7488 = vsyncpa [#allocation11], 1 }
0x24a4   :  { %7489 = vsyncpa [#allocation14], 1 }
0x24a5   :  { %7490 = vsyncpa [#allocation17], 1 }
0x24a6   :  { %7491 = vsyncpa [#allocation20], 1 }
0x24a7   :  { %7492 = vsyncpa [#allocation23], 1 }

</bundles_post_ra>
